<compile_context>
chip_gen: v7x
topology: tpu7x:2x2x1
jax: 0.10.0
libtpu: 0.0.40
codegen_flags: <defaults>
</compile_context>

<pallas_src>
import functools
import math

import numpy as np

import jax
import jax.numpy as jnp
from jax.experimental import pallas as pl
from jax.experimental.pallas import tpu as pltpu


# ----------------------------------------------------------------------------
# Fused Pallas kernel
# ----------------------------------------------------------------------------
def _basic_block_kernel(*refs, n_levels, width, npix, halo, eps):
    """refs = (x, tap_mask, <packed weights...>, out, z_scratch).

    All activations are (C_level, npix) f32 slabs (pixel axis on lanes).
    """
    out_ref = refs[-2]
    z_scr = refs[-1]
    it = iter(refs[:-2])
    x_ref = next(it)
    mask_ref = next(it)                                  # (9, npix) f32 0/1
    restr = [(next(it), next(it)) for _ in range(n_levels)]
    convc_w, convc_b = next(it), next(it)
    stages = [tuple(next(it) for _ in range(6)) for _ in range(n_levels)]

    # Lane-padded scratch: the halo stays zero so the 9 spatial shifts of each
    # 3x3 conv become cheap static window reads (no jnp.pad, no roll).
    z_scr[...] = jnp.zeros_like(z_scr)

    def conv1x1(xv, w_ref, b_ref):
        # groups merged into a block-diagonal weight -> one MXU matmul
        return jnp.dot(w_ref[...], xv,
                       preferred_element_type=jnp.float32) + b_ref[...]

    def conv3x3(xv, w_ref, b_ref):
        # One matmul for all groups AND all 9 taps: weight is (9*Cout, Cin).
        cout = b_ref.shape[0]
        z = jnp.dot(w_ref[...], xv, preferred_element_type=jnp.float32)
        z_scr[0:9 * cout, halo:halo + npix] = z          # lane-aligned store
        acc = jnp.zeros((cout, npix), jnp.float32)
        t = 0
        for dh in (-1, 0, 1):
            for dw in (-1, 0, 1):
                d = dh * width + dw
                tap = z_scr[t * cout:(t + 1) * cout,
                            halo + d:halo + d + npix]    # shifted window read
                acc = acc + tap * mask_ref[t:t + 1, :]   # zero out-of-image
                t += 1
        return acc + b_ref[...]

    def batchnorm(pv, gamma_ref, beta_ref):
        # training-mode BatchNorm2d: biased batch stats over (N, H, W)
        mu = jnp.mean(pv, axis=1, keepdims=True)
        var = jnp.mean(jnp.square(pv - mu), axis=1, keepdims=True)
        return ((pv - mu) * jax.lax.rsqrt(var + eps) * gamma_ref[...]
                + beta_ref[...])

    xv = x_ref[...]
    x_seq = [xv]
    out = xv
    for lv in range(n_levels):            # restriction chain (fine -> coarse)
        w_r, b_r = restr[lv]
        out = conv1x1(out, w_r, b_r)
        x_seq.append(out)

    out = conv3x3(out, convc_w, convc_b)  # coarsest-level dense 3x3 conv

    x_rev = x_seq[::-1]
    for lv in range(n_levels):            # prolongation chain (coarse -> fine)
        w_p, b_p, gamma, beta, w_c, b_c = stages[lv]
        p = conv1x1(out - x_rev[lv], w_p, b_p)
        out = x_rev[lv + 1] + batchnorm(p, gamma, beta)
        out = conv3x3(out, w_c, b_c)

    out_ref[...] = out


def _tap_masks(n, h, w):
    """(9, n*h*w) f32 validity mask per 3x3 tap, output-pixel indexed."""
    hh, ww = np.meshgrid(np.arange(h), np.arange(w), indexing="ij")
    rows = []
    for dh in (-1, 0, 1):
        for dw in (-1, 0, 1):
            ok = ((hh + dh >= 0) & (hh + dh < h) &
                  (ww + dw >= 0) & (ww + dw < w))
            rows.append(np.tile(ok[None], (n, 1, 1)).reshape(-1))
    return jnp.asarray(np.stack(rows, axis=0), dtype=jnp.float32)


def basic_block_forward(x_nchw, kernel_params, seq):
    """x_nchw: (N, C, H, W) f32.  kernel_params: list from pack_kernel_params."""
    N, C, H, W = x_nchw.shape
    M = N * H * W
    halo = pl.cdiv(W + 1, 128) * 128            # lane-tile-aligned shift halo
    n_levels = len(seq)

    # layout plumbing only: channel-major, lane-dense (C, N*H*W) slab
    x_flat = x_nchw.transpose(1, 0, 2, 3).reshape(C, M)
    tap_mask = _tap_masks(N, H, W)

    inputs = [x_flat, tap_mask] + list(kernel_params)

    kernel = functools.partial(
        _basic_block_kernel, n_levels=n_levels, width=W, npix=M, halo=halo,
        eps=1e-5)

    out_flat = pl.pallas_call(
        kernel,
        out_shape=jax.ShapeDtypeStruct((C, M), jnp.float32),
        in_specs=[pl.BlockSpec(memory_space=pltpu.MemorySpace.VMEM)]
        * len(inputs),
        out_specs=pl.BlockSpec(memory_space=pltpu.MemorySpace.VMEM),
        scratch_shapes=[pltpu.VMEM((9 * C, M + 2 * halo), jnp.float32)],
    )(*inputs)

    return out_flat.reshape(C, N, H, W).transpose(1, 0, 2, 3)


# ----------------------------------------------------------------------------
# Parameters: raw grouped (PyTorch-equivalent) + packed dense kernel form
# ----------------------------------------------------------------------------
def _init_grouped_conv(key, groups, kh, kw, cin_g, cout_g):
    wkey, bkey = jax.random.split(key)
    bound = 1.0 / math.sqrt(cin_g * kh * kw)
    w = jax.random.uniform(wkey, (groups, kh, kw, cin_g, cout_g),
                           jnp.float32, -bound, bound)
    b = jax.random.uniform(bkey, (groups, cout_g), jnp.float32, -bound, bound)
    return w, b


def build_raw_params(key, cin, seq):
    n_levels = len(seq)
    lc = [cin // math.prod(seq[:lv]) for lv in range(n_levels + 1)]
    keys = iter(jax.random.split(key, 4 * n_levels + 1))
    raw = {"restr": [], "prol": [], "conv": [], "bn": [], "convc": None}
    for lv in range(n_levels):
        g = seq[lv]
        # Restr2d(lc[lv], g): 1x1, in=lc[lv], out=lc[lv]//g, groups=g
        raw["restr"].append(_init_grouped_conv(next(keys), g, 1, 1,
                                               lc[lv] // g, lc[lv] // g // g))
        # Prol2d(lc[lv+1], g): 1x1, in=lc[lv+1], out=lc[lv+1]*g, groups=g
        raw["prol"].append(_init_grouped_conv(next(keys), g, 1, 1,
                                              lc[lv + 1] // g, lc[lv + 1]))
    for lv in range(n_levels - 1, -1, -1):      # conv_seq / bn_seq: coarse->fine
        g = seq[lv]
        raw["conv"].append(_init_grouped_conv(next(keys), g, 3, 3,
                                              lc[lv] // g, lc[lv] // g))
        raw["bn"].append((jnp.ones((lc[lv],), jnp.float32),
                          jnp.zeros((lc[lv],), jnp.float32)))
    raw["convc"] = _init_grouped_conv(next(keys), 1, 3, 3, lc[-1], lc[-1])
    return raw


def _block_diag_t(w_tap):
    """(groups, cin_g, cout_g) tap -> dense block-diagonal (Cout, Cin)."""
    groups, cin_g, cout_g = w_tap.shape
    wd = jnp.zeros((groups * cout_g, groups * cin_g), jnp.float32)
    for g in range(groups):
        wd = wd.at[g * cout_g:(g + 1) * cout_g,
                   g * cin_g:(g + 1) * cin_g].set(w_tap[g].T)
    return wd


def _pack_1x1(w, b):
    return _block_diag_t(w[:, 0, 0]), b.reshape(-1, 1)


def _pack_3x3(w, b):
    # row-block t = kh*3+kw holds the block-diagonal weight of tap (kh, kw)
    blocks = [_block_diag_t(w[:, kh, kw]) for kh in range(3) for kw in range(3)]
    return jnp.concatenate(blocks, axis=0), b.reshape(-1, 1)


def pack_kernel_params(raw, seq):
    n_levels = len(seq)
    packed = []
    for lv in range(n_levels):
        packed.extend(_pack_1x1(*raw["restr"][lv]))
    packed.extend(_pack_3x3(*raw["convc"]))
    prol_rev = raw["prol"][::-1]
    for lv in range(n_levels):
        packed.extend(_pack_1x1(*prol_rev[lv]))
        gamma, beta = raw["bn"][lv]
        packed.extend((gamma.reshape(-1, 1), beta.reshape(-1, 1)))
        packed.extend(_pack_3x3(*raw["conv"][lv]))
    return packed


# ----------------------------------------------------------------------------
# Pure-JAX reference (mirrors the PyTorch module, training-mode BN)
# ----------------------------------------------------------------------------
def _reference_forward(x, raw, seq):
    def conv(inp, w, b, padding):
        groups, kh, kw, cin_g, cout_g = w.shape
        w_oihw = jnp.transpose(w, (0, 4, 3, 1, 2)).reshape(
            groups * cout_g, cin_g, kh, kw)
        out = jax.lax.conv_general_dilated(
            inp, w_oihw, window_strides=(1, 1),
            padding=[(padding, padding)] * 2,
            dimension_numbers=("NCHW", "OIHW", "NCHW"),
            feature_group_count=groups,
            precision=jax.lax.Precision.HIGHEST)
        return out + b.reshape(1, -1, 1, 1)

    def bn(p, gamma, beta, eps=1e-5):
        mu = jnp.mean(p, axis=(0, 2, 3), keepdims=True)
        var = jnp.mean(jnp.square(p - mu), axis=(0, 2, 3), keepdims=True)
        return ((p - mu) * jax.lax.rsqrt(var + eps)
                * gamma.reshape(1, -1, 1, 1) + beta.reshape(1, -1, 1, 1))

    n_levels = len(seq)
    x_seq = [x]
    out = x
    for lv in range(n_levels):
        out = conv(out, *raw["restr"][lv], padding=0)
        x_seq.append(out)
    out = conv(out, *raw["convc"], padding=1)
    x_rev = x_seq[::-1]
    prol_rev = raw["prol"][::-1]
    for lv in range(n_levels):
        p = conv(out - x_rev[lv], *prol_rev[lv], padding=0)
        out = x_rev[lv + 1] + bn(p, *raw["bn"][lv])
        out = conv(out, *raw["conv"][lv], padding=1)
    return out


# ----------------------------------------------------------------------------
if __name__ == "__main__":
    key = jax.random.PRNGKey(0)
    k_params, k_x = jax.random.split(key)

    # BasicBlock(in_channels=16, planes=16, seq=(2, 2)); NCHW input (2,16,16,16)
    N, C, H, W = 2, 16, 16, 16
    seq = (2, 2)

    raw = build_raw_params(k_params, C, seq)
    packed = pack_kernel_params(raw, seq)
    x = jax.random.normal(k_x, (N, C, H, W), jnp.float32)

    fwd = jax.jit(functools.partial(basic_block_forward, seq=seq))
    out = fwd(x, packed)
    out = jax.block_until_ready(out)
    assert out.shape == (N, C, H, W) and out.dtype == jnp.float32

    ref = _reference_forward(x, raw, seq)
    max_err = float(jnp.max(jnp.abs(out - ref)))
    assert max_err < 5e-2, f"kernel/reference mismatch: max |err| = {max_err}"
    print("KERNEL_OK")
</pallas_src>

<mosaic_0001>
module attributes {stable_mosaic.version = 11 : i64} {
  func.func @_basic_block_kernel(%arg0: memref<16x512xf32, #tpu.memory_space<vmem>>, %arg1: memref<9x512xf32, #tpu.memory_space<vmem>>, %arg2: memref<8x16xf32, #tpu.memory_space<vmem>>, %arg3: memref<8x1xf32, #tpu.memory_space<vmem>>, %arg4: memref<4x8xf32, #tpu.memory_space<vmem>>, %arg5: memref<4x1xf32, #tpu.memory_space<vmem>>, %arg6: memref<36x4xf32, #tpu.memory_space<vmem>>, %arg7: memref<4x1xf32, #tpu.memory_space<vmem>>, %arg8: memref<8x4xf32, #tpu.memory_space<vmem>>, %arg9: memref<8x1xf32, #tpu.memory_space<vmem>>, %arg10: memref<8x1xf32, #tpu.memory_space<vmem>>, %arg11: memref<8x1xf32, #tpu.memory_space<vmem>>, %arg12: memref<72x8xf32, #tpu.memory_space<vmem>>, %arg13: memref<8x1xf32, #tpu.memory_space<vmem>>, %arg14: memref<16x8xf32, #tpu.memory_space<vmem>>, %arg15: memref<16x1xf32, #tpu.memory_space<vmem>>, %arg16: memref<16x1xf32, #tpu.memory_space<vmem>>, %arg17: memref<16x1xf32, #tpu.memory_space<vmem>>, %arg18: memref<144x16xf32, #tpu.memory_space<vmem>>, %arg19: memref<16x1xf32, #tpu.memory_space<vmem>>, %arg20: memref<16x512xf32, #tpu.memory_space<vmem>>, %arg21: memref<144x768xf32, #tpu.memory_space<vmem>>) attributes {dimension_semantics = [], scalar_prefetch = 0 : i64, scratch_operands = 1 : i64, tpu.core_type = #tpu.core_type<tc>} {
    %cst = arith.constant 0.000000e+00 : f32
    %0 = vector.broadcast %cst : f32 to vector<144x768xf32>
    %c0 = arith.constant 0 : index
    %c0_0 = arith.constant 0 : index
    %1 = vector.load %arg21[%c0, %c0_0] : memref<144x768xf32, #tpu.memory_space<vmem>>, vector<144x768xf32>
    tpu.vector_store %arg21[%c0, %c0_0], %0 {strides = array<i32>} : memref<144x768xf32, #tpu.memory_space<vmem>>, vector<144x768xf32>,
    %c0_1 = arith.constant 0 : index
    %c0_2 = arith.constant 0 : index
    %2 = vector.load %arg0[%c0_1, %c0_2] : memref<16x512xf32, #tpu.memory_space<vmem>>, vector<16x512xf32>
    %c0_3 = arith.constant 0 : index
    %c0_4 = arith.constant 0 : index
    %3 = vector.load %arg2[%c0_3, %c0_4] : memref<8x16xf32, #tpu.memory_space<vmem>>, vector<8x16xf32>
    %cst_5 = arith.constant dense<0.000000e+00> : vector<8x512xf32>
    %4 = tpu.matmul %3, %2, %cst_5 {dimension_numbers = #tpu.dot_dimension_numbers<[1], [0], [0], [1], [0, 0, 1, 1], [], []>} : vector<8x16xf32>, vector<16x512xf32>, vector<8x512xf32> -> vector<8x512xf32>
    %c0_6 = arith.constant 0 : index
    %c0_7 = arith.constant 0 : index
    %5 = vector.load %arg3[%c0_6, %c0_7] : memref<8x1xf32, #tpu.memory_space<vmem>>, vector<8x1xf32>
    %6 = vector.broadcast %5 : vector<8x1xf32> to vector<8x512xf32>
    %7 = arith.addf %4, %6 : vector<8x512xf32>
    %c0_8 = arith.constant 0 : index
    %c0_9 = arith.constant 0 : index
    %8 = vector.load %arg4[%c0_8, %c0_9] : memref<4x8xf32, #tpu.memory_space<vmem>>, vector<4x8xf32>
    %cst_10 = arith.constant dense<0.000000e+00> : vector<4x512xf32>
    %9 = tpu.matmul %8, %7, %cst_10 {dimension_numbers = #tpu.dot_dimension_numbers<[1], [0], [0], [1], [0, 0, 1, 1], [], []>} : vector<4x8xf32>, vector<8x512xf32>, vector<4x512xf32> -> vector<4x512xf32>
    %c0_11 = arith.constant 0 : index
    %c0_12 = arith.constant 0 : index
    %10 = vector.load %arg5[%c0_11, %c0_12] : memref<4x1xf32, #tpu.memory_space<vmem>>, vector<4x1xf32>
    %11 = vector.broadcast %10 : vector<4x1xf32> to vector<4x512xf32>
    %12 = arith.addf %9, %11 : vector<4x512xf32>
    %c0_13 = arith.constant 0 : index
    %c0_14 = arith.constant 0 : index
    %13 = vector.load %arg6[%c0_13, %c0_14] : memref<36x4xf32, #tpu.memory_space<vmem>>, vector<36x4xf32>
    %cst_15 = arith.constant dense<0.000000e+00> : vector<36x512xf32>
    %14 = tpu.matmul %13, %12, %cst_15 {dimension_numbers = #tpu.dot_dimension_numbers<[1], [0], [0], [1], [0, 0, 1, 1], [], []>} : vector<36x4xf32>, vector<4x512xf32>, vector<36x512xf32> -> vector<36x512xf32>
    %c0_16 = arith.constant 0 : index
    %c128 = arith.constant 128 : index
    %15 = vector.load %arg21[%c0_16, %c128] : memref<144x768xf32, #tpu.memory_space<vmem>>, vector<36x512xf32>
    tpu.vector_store %arg21[%c0_16, %c128], %14 {strides = array<i32>} : memref<144x768xf32, #tpu.memory_space<vmem>>, vector<36x512xf32>,
    %cst_17 = arith.constant 0.000000e+00 : f32
    %16 = vector.broadcast %cst_17 : f32 to vector<4x512xf32>
    %c0_18 = arith.constant 0 : index
    %c111 = arith.constant 111 : index
    %17 = vector.load %arg21[%c0_18, %c111] : memref<144x768xf32, #tpu.memory_space<vmem>>, vector<4x512xf32>
    %c0_19 = arith.constant 0 : index
    %c0_20 = arith.constant 0 : index
    %18 = vector.load %arg1[%c0_19, %c0_20] : memref<9x512xf32, #tpu.memory_space<vmem>>, vector<1x512xf32>
    %19 = vector.broadcast %18 : vector<1x512xf32> to vector<4x512xf32>
    %20 = arith.mulf %17, %19 : vector<4x512xf32>
    %21 = arith.addf %16, %20 : vector<4x512xf32>
    %c4 = arith.constant 4 : index
    %c112 = arith.constant 112 : index
    %22 = vector.load %arg21[%c4, %c112] : memref<144x768xf32, #tpu.memory_space<vmem>>, vector<4x512xf32>
    %c1 = arith.constant 1 : index
    %c0_21 = arith.constant 0 : index
    %23 = vector.load %arg1[%c1, %c0_21] : memref<9x512xf32, #tpu.memory_space<vmem>>, vector<1x512xf32>
    %24 = vector.broadcast %23 : vector<1x512xf32> to vector<4x512xf32>
    %25 = arith.mulf %22, %24 : vector<4x512xf32>
    %26 = arith.addf %21, %25 : vector<4x512xf32>
    %c8 = arith.constant 8 : index
    %c113 = arith.constant 113 : index
    %27 = vector.load %arg21[%c8, %c113] : memref<144x768xf32, #tpu.memory_space<vmem>>, vector<4x512xf32>
    %c2 = arith.constant 2 : index
    %c0_22 = arith.constant 0 : index
    %28 = vector.load %arg1[%c2, %c0_22] : memref<9x512xf32, #tpu.memory_space<vmem>>, vector<1x512xf32>
    %29 = vector.broadcast %28 : vector<1x512xf32> to vector<4x512xf32>
    %30 = arith.mulf %27, %29 : vector<4x512xf32>
    %31 = arith.addf %26, %30 : vector<4x512xf32>
    %c12 = arith.constant 12 : index
    %c127 = arith.constant 127 : index
    %32 = vector.load %arg21[%c12, %c127] : memref<144x768xf32, #tpu.memory_space<vmem>>, vector<4x512xf32>
    %c3 = arith.constant 3 : index
    %c0_23 = arith.constant 0 : index
    %33 = vector.load %arg1[%c3, %c0_23] : memref<9x512xf32, #tpu.memory_space<vmem>>, vector<1x512xf32>
    %34 = vector.broadcast %33 : vector<1x512xf32> to vector<4x512xf32>
    %35 = arith.mulf %32, %34 : vector<4x512xf32>
    %36 = arith.addf %31, %35 : vector<4x512xf32>
    %c16 = arith.constant 16 : index
    %c128_24 = arith.constant 128 : index
    %37 = vector.load %arg21[%c16, %c128_24] : memref<144x768xf32, #tpu.memory_space<vmem>>, vector<4x512xf32>
    %c4_25 = arith.constant 4 : index
    %c0_26 = arith.constant 0 : index
    %38 = vector.load %arg1[%c4_25, %c0_26] : memref<9x512xf32, #tpu.memory_space<vmem>>, vector<1x512xf32>
    %39 = vector.broadcast %38 : vector<1x512xf32> to vector<4x512xf32>
    %40 = arith.mulf %37, %39 : vector<4x512xf32>
    %41 = arith.addf %36, %40 : vector<4x512xf32>
    %c20 = arith.constant 20 : index
    %c129 = arith.constant 129 : index
    %42 = vector.load %arg21[%c20, %c129] : memref<144x768xf32, #tpu.memory_space<vmem>>, vector<4x512xf32>
    %c5 = arith.constant 5 : index
    %c0_27 = arith.constant 0 : index
    %43 = vector.load %arg1[%c5, %c0_27] : memref<9x512xf32, #tpu.memory_space<vmem>>, vector<1x512xf32>
    %44 = vector.broadcast %43 : vector<1x512xf32> to vector<4x512xf32>
    %45 = arith.mulf %42, %44 : vector<4x512xf32>
    %46 = arith.addf %41, %45 : vector<4x512xf32>
    %c24 = arith.constant 24 : index
    %c143 = arith.constant 143 : index
    %47 = vector.load %arg21[%c24, %c143] : memref<144x768xf32, #tpu.memory_space<vmem>>, vector<4x512xf32>
    %c6 = arith.constant 6 : index
    %c0_28 = arith.constant 0 : index
    %48 = vector.load %arg1[%c6, %c0_28] : memref<9x512xf32, #tpu.memory_space<vmem>>, vector<1x512xf32>
    %49 = vector.broadcast %48 : vector<1x512xf32> to vector<4x512xf32>
    %50 = arith.mulf %47, %49 : vector<4x512xf32>
    %51 = arith.addf %46, %50 : vector<4x512xf32>
    %c28 = arith.constant 28 : index
    %c144 = arith.constant 144 : index
    %52 = vector.load %arg21[%c28, %c144] : memref<144x768xf32, #tpu.memory_space<vmem>>, vector<4x512xf32>
    %c7 = arith.constant 7 : index
    %c0_29 = arith.constant 0 : index
    %53 = vector.load %arg1[%c7, %c0_29] : memref<9x512xf32, #tpu.memory_space<vmem>>, vector<1x512xf32>
    %54 = vector.broadcast %53 : vector<1x512xf32> to vector<4x512xf32>
    %55 = arith.mulf %52, %54 : vector<4x512xf32>
    %56 = arith.addf %51, %55 : vector<4x512xf32>
    %c32 = arith.constant 32 : index
    %c145 = arith.constant 145 : index
    %57 = vector.load %arg21[%c32, %c145] : memref<144x768xf32, #tpu.memory_space<vmem>>, vector<4x512xf32>
    %c8_30 = arith.constant 8 : index
    %c0_31 = arith.constant 0 : index
    %58 = vector.load %arg1[%c8_30, %c0_31] : memref<9x512xf32, #tpu.memory_space<vmem>>, vector<1x512xf32>
    %59 = vector.broadcast %58 : vector<1x512xf32> to vector<4x512xf32>
    %60 = arith.mulf %57, %59 : vector<4x512xf32>
    %61 = arith.addf %56, %60 : vector<4x512xf32>
    %c0_32 = arith.constant 0 : index
    %c0_33 = arith.constant 0 : index
    %62 = vector.load %arg7[%c0_32, %c0_33] : memref<4x1xf32, #tpu.memory_space<vmem>>, vector<4x1xf32>
    %63 = vector.broadcast %62 : vector<4x1xf32> to vector<4x512xf32>
    %64 = arith.addf %61, %63 : vector<4x512xf32>
    %65 = arith.subf %64, %12 : vector<4x512xf32>
    %c0_34 = arith.constant 0 : index
    %c0_35 = arith.constant 0 : index
    %66 = vector.load %arg8[%c0_34, %c0_35] : memref<8x4xf32, #tpu.memory_space<vmem>>, vector<8x4xf32>
    %cst_36 = arith.constant dense<0.000000e+00> : vector<8x512xf32>
    %67 = tpu.matmul %66, %65, %cst_36 {dimension_numbers = #tpu.dot_dimension_numbers<[1], [0], [0], [1], [0, 0, 1, 1], [], []>} : vector<8x4xf32>, vector<4x512xf32>, vector<8x512xf32> -> vector<8x512xf32>
    %c0_37 = arith.constant 0 : index
    %c0_38 = arith.constant 0 : index
    %68 = vector.load %arg9[%c0_37, %c0_38] : memref<8x1xf32, #tpu.memory_space<vmem>>, vector<8x1xf32>
    %69 = vector.broadcast %68 : vector<8x1xf32> to vector<8x512xf32>
    %70 = arith.addf %67, %69 : vector<8x512xf32>
    %cst_39 = arith.constant dense<0.000000e+00> : vector<8xf32>
    %71 = vector.multi_reduction <add>, %70, %cst_39 [1] : vector<8x512xf32> to vector<8xf32>
    %72 = vector.shape_cast %71 : vector<8xf32> to vector<8x1xf32>
    %cst_40 = arith.constant 5.120000e+02 : f32
    %73 = vector.broadcast %cst_40 : f32 to vector<8x1xf32>
    %74 = arith.divf %72, %73 : vector<8x1xf32>
    %75 = vector.broadcast %74 : vector<8x1xf32> to vector<8x512xf32>
    %76 = arith.subf %70, %75 : vector<8x512xf32>
    %77 = arith.mulf %76, %76 : vector<8x512xf32>
    %cst_41 = arith.constant dense<0.000000e+00> : vector<8xf32>
    %78 = vector.multi_reduction <add>, %77, %cst_41 [1] : vector<8x512xf32> to vector<8xf32>
    %79 = vector.shape_cast %78 : vector<8xf32> to vector<8x1xf32>
    %cst_42 = arith.constant 5.120000e+02 : f32
    %80 = vector.broadcast %cst_42 : f32 to vector<8x1xf32>
    %81 = arith.divf %79, %80 : vector<8x1xf32>
    %82 = vector.broadcast %74 : vector<8x1xf32> to vector<8x512xf32>
    %83 = arith.subf %70, %82 : vector<8x512xf32>
    %cst_43 = arith.constant 9.99999974E-6 : f32
    %84 = vector.broadcast %cst_43 : f32 to vector<8x1xf32>
    %85 = arith.addf %81, %84 : vector<8x1xf32>
    %86 = math.rsqrt %85 : vector<8x1xf32>
    %87 = vector.broadcast %86 : vector<8x1xf32> to vector<8x512xf32>
    %88 = arith.mulf %83, %87 : vector<8x512xf32>
    %c0_44 = arith.constant 0 : index
    %c0_45 = arith.constant 0 : index
    %89 = vector.load %arg10[%c0_44, %c0_45] : memref<8x1xf32, #tpu.memory_space<vmem>>, vector<8x1xf32>
    %90 = vector.broadcast %89 : vector<8x1xf32> to vector<8x512xf32>
    %91 = arith.mulf %88, %90 : vector<8x512xf32>
    %c0_46 = arith.constant 0 : index
    %c0_47 = arith.constant 0 : index
    %92 = vector.load %arg11[%c0_46, %c0_47] : memref<8x1xf32, #tpu.memory_space<vmem>>, vector<8x1xf32>
    %93 = vector.broadcast %92 : vector<8x1xf32> to vector<8x512xf32>
    %94 = arith.addf %91, %93 : vector<8x512xf32>
    %95 = arith.addf %7, %94 : vector<8x512xf32>
    %c0_48 = arith.constant 0 : index
    %c0_49 = arith.constant 0 : index
    %96 = vector.load %arg12[%c0_48, %c0_49] : memref<72x8xf32, #tpu.memory_space<vmem>>, vector<72x8xf32>
    %cst_50 = arith.constant dense<0.000000e+00> : vector<72x512xf32>
    %97 = tpu.matmul %96, %95, %cst_50 {dimension_numbers = #tpu.dot_dimension_numbers<[1], [0], [0], [1], [0, 0, 1, 1], [], []>} : vector<72x8xf32>, vector<8x512xf32>, vector<72x512xf32> -> vector<72x512xf32>
    %c0_51 = arith.constant 0 : index
    %c128_52 = arith.constant 128 : index
    %98 = vector.load %arg21[%c0_51, %c128_52] : memref<144x768xf32, #tpu.memory_space<vmem>>, vector<72x512xf32>
    tpu.vector_store %arg21[%c0_51, %c128_52], %97 {strides = array<i32>} : memref<144x768xf32, #tpu.memory_space<vmem>>, vector<72x512xf32>,
    %cst_53 = arith.constant 0.000000e+00 : f32
    %99 = vector.broadcast %cst_53 : f32 to vector<8x512xf32>
    %c0_54 = arith.constant 0 : index
    %c111_55 = arith.constant 111 : index
    %100 = vector.load %arg21[%c0_54, %c111_55] : memref<144x768xf32, #tpu.memory_space<vmem>>, vector<8x512xf32>
    %c0_56 = arith.constant 0 : index
    %c0_57 = arith.constant 0 : index
    %101 = vector.load %arg1[%c0_56, %c0_57] : memref<9x512xf32, #tpu.memory_space<vmem>>, vector<1x512xf32>
    %102 = vector.broadcast %101 : vector<1x512xf32> to vector<8x512xf32>
    %103 = arith.mulf %100, %102 : vector<8x512xf32>
    %104 = arith.addf %99, %103 : vector<8x512xf32>
    %c8_58 = arith.constant 8 : index
    %c112_59 = arith.constant 112 : index
    %105 = vector.load %arg21[%c8_58, %c112_59] : memref<144x768xf32, #tpu.memory_space<vmem>>, vector<8x512xf32>
    %c1_60 = arith.constant 1 : index
    %c0_61 = arith.constant 0 : index
    %106 = vector.load %arg1[%c1_60, %c0_61] : memref<9x512xf32, #tpu.memory_space<vmem>>, vector<1x512xf32>
    %107 = vector.broadcast %106 : vector<1x512xf32> to vector<8x512xf32>
    %108 = arith.mulf %105, %107 : vector<8x512xf32>
    %109 = arith.addf %104, %108 : vector<8x512xf32>
    %c16_62 = arith.constant 16 : index
    %c113_63 = arith.constant 113 : index
    %110 = vector.load %arg21[%c16_62, %c113_63] : memref<144x768xf32, #tpu.memory_space<vmem>>, vector<8x512xf32>
    %c2_64 = arith.constant 2 : index
    %c0_65 = arith.constant 0 : index
    %111 = vector.load %arg1[%c2_64, %c0_65] : memref<9x512xf32, #tpu.memory_space<vmem>>, vector<1x512xf32>
    %112 = vector.broadcast %111 : vector<1x512xf32> to vector<8x512xf32>
    %113 = arith.mulf %110, %112 : vector<8x512xf32>
    %114 = arith.addf %109, %113 : vector<8x512xf32>
    %c24_66 = arith.constant 24 : index
    %c127_67 = arith.constant 127 : index
    %115 = vector.load %arg21[%c24_66, %c127_67] : memref<144x768xf32, #tpu.memory_space<vmem>>, vector<8x512xf32>
    %c3_68 = arith.constant 3 : index
    %c0_69 = arith.constant 0 : index
    %116 = vector.load %arg1[%c3_68, %c0_69] : memref<9x512xf32, #tpu.memory_space<vmem>>, vector<1x512xf32>
    %117 = vector.broadcast %116 : vector<1x512xf32> to vector<8x512xf32>
    %118 = arith.mulf %115, %117 : vector<8x512xf32>
    %119 = arith.addf %114, %118 : vector<8x512xf32>
    %c32_70 = arith.constant 32 : index
    %c128_71 = arith.constant 128 : index
    %120 = vector.load %arg21[%c32_70, %c128_71] : memref<144x768xf32, #tpu.memory_space<vmem>>, vector<8x512xf32>
    %c4_72 = arith.constant 4 : index
    %c0_73 = arith.constant 0 : index
    %121 = vector.load %arg1[%c4_72, %c0_73] : memref<9x512xf32, #tpu.memory_space<vmem>>, vector<1x512xf32>
    %122 = vector.broadcast %121 : vector<1x512xf32> to vector<8x512xf32>
    %123 = arith.mulf %120, %122 : vector<8x512xf32>
    %124 = arith.addf %119, %123 : vector<8x512xf32>
    %c40 = arith.constant 40 : index
    %c129_74 = arith.constant 129 : index
    %125 = vector.load %arg21[%c40, %c129_74] : memref<144x768xf32, #tpu.memory_space<vmem>>, vector<8x512xf32>
    %c5_75 = arith.constant 5 : index
    %c0_76 = arith.constant 0 : index
    %126 = vector.load %arg1[%c5_75, %c0_76] : memref<9x512xf32, #tpu.memory_space<vmem>>, vector<1x512xf32>
    %127 = vector.broadcast %126 : vector<1x512xf32> to vector<8x512xf32>
    %128 = arith.mulf %125, %127 : vector<8x512xf32>
    %129 = arith.addf %124, %128 : vector<8x512xf32>
    %c48 = arith.constant 48 : index
    %c143_77 = arith.constant 143 : index
    %130 = vector.load %arg21[%c48, %c143_77] : memref<144x768xf32, #tpu.memory_space<vmem>>, vector<8x512xf32>
    %c6_78 = arith.constant 6 : index
    %c0_79 = arith.constant 0 : index
    %131 = vector.load %arg1[%c6_78, %c0_79] : memref<9x512xf32, #tpu.memory_space<vmem>>, vector<1x512xf32>
    %132 = vector.broadcast %131 : vector<1x512xf32> to vector<8x512xf32>
    %133 = arith.mulf %130, %132 : vector<8x512xf32>
    %134 = arith.addf %129, %133 : vector<8x512xf32>
    %c56 = arith.constant 56 : index
    %c144_80 = arith.constant 144 : index
    %135 = vector.load %arg21[%c56, %c144_80] : memref<144x768xf32, #tpu.memory_space<vmem>>, vector<8x512xf32>
    %c7_81 = arith.constant 7 : index
    %c0_82 = arith.constant 0 : index
    %136 = vector.load %arg1[%c7_81, %c0_82] : memref<9x512xf32, #tpu.memory_space<vmem>>, vector<1x512xf32>
    %137 = vector.broadcast %136 : vector<1x512xf32> to vector<8x512xf32>
    %138 = arith.mulf %135, %137 : vector<8x512xf32>
    %139 = arith.addf %134, %138 : vector<8x512xf32>
    %c64 = arith.constant 64 : index
    %c145_83 = arith.constant 145 : index
    %140 = vector.load %arg21[%c64, %c145_83] : memref<144x768xf32, #tpu.memory_space<vmem>>, vector<8x512xf32>
    %c8_84 = arith.constant 8 : index
    %c0_85 = arith.constant 0 : index
    %141 = vector.load %arg1[%c8_84, %c0_85] : memref<9x512xf32, #tpu.memory_space<vmem>>, vector<1x512xf32>
    %142 = vector.broadcast %141 : vector<1x512xf32> to vector<8x512xf32>
    %143 = arith.mulf %140, %142 : vector<8x512xf32>
    %144 = arith.addf %139, %143 : vector<8x512xf32>
    %c0_86 = arith.constant 0 : index
    %c0_87 = arith.constant 0 : index
    %145 = vector.load %arg13[%c0_86, %c0_87] : memref<8x1xf32, #tpu.memory_space<vmem>>, vector<8x1xf32>
    %146 = vector.broadcast %145 : vector<8x1xf32> to vector<8x512xf32>
    %147 = arith.addf %144, %146 : vector<8x512xf32>
    %148 = arith.subf %147, %7 : vector<8x512xf32>
    %c0_88 = arith.constant 0 : index
    %c0_89 = arith.constant 0 : index
    %149 = vector.load %arg14[%c0_88, %c0_89] : memref<16x8xf32, #tpu.memory_space<vmem>>, vector<16x8xf32>
    %cst_90 = arith.constant dense<0.000000e+00> : vector<16x512xf32>
    %150 = tpu.matmul %149, %148, %cst_90 {dimension_numbers = #tpu.dot_dimension_numbers<[1], [0], [0], [1], [0, 0, 1, 1], [], []>} : vector<16x8xf32>, vector<8x512xf32>, vector<16x512xf32> -> vector<16x512xf32>
    %c0_91 = arith.constant 0 : index
    %c0_92 = arith.constant 0 : index
    %151 = vector.load %arg15[%c0_91, %c0_92] : memref<16x1xf32, #tpu.memory_space<vmem>>, vector<16x1xf32>
    %152 = vector.broadcast %151 : vector<16x1xf32> to vector<16x512xf32>
    %153 = arith.addf %150, %152 : vector<16x512xf32>
    %cst_93 = arith.constant dense<0.000000e+00> : vector<16xf32>
    %154 = vector.multi_reduction <add>, %153, %cst_93 [1] : vector<16x512xf32> to vector<16xf32>
    %155 = vector.shape_cast %154 : vector<16xf32> to vector<16x1xf32>
    %cst_94 = arith.constant 5.120000e+02 : f32
    %156 = vector.broadcast %cst_94 : f32 to vector<16x1xf32>
    %157 = arith.divf %155, %156 : vector<16x1xf32>
    %158 = vector.broadcast %157 : vector<16x1xf32> to vector<16x512xf32>
    %159 = arith.subf %153, %158 : vector<16x512xf32>
    %160 = arith.mulf %159, %159 : vector<16x512xf32>
    %cst_95 = arith.constant dense<0.000000e+00> : vector<16xf32>
    %161 = vector.multi_reduction <add>, %160, %cst_95 [1] : vector<16x512xf32> to vector<16xf32>
    %162 = vector.shape_cast %161 : vector<16xf32> to vector<16x1xf32>
    %cst_96 = arith.constant 5.120000e+02 : f32
    %163 = vector.broadcast %cst_96 : f32 to vector<16x1xf32>
    %164 = arith.divf %162, %163 : vector<16x1xf32>
    %165 = vector.broadcast %157 : vector<16x1xf32> to vector<16x512xf32>
    %166 = arith.subf %153, %165 : vector<16x512xf32>
    %cst_97 = arith.constant 9.99999974E-6 : f32
    %167 = vector.broadcast %cst_97 : f32 to vector<16x1xf32>
    %168 = arith.addf %164, %167 : vector<16x1xf32>
    %169 = math.rsqrt %168 : vector<16x1xf32>
    %170 = vector.broadcast %169 : vector<16x1xf32> to vector<16x512xf32>
    %171 = arith.mulf %166, %170 : vector<16x512xf32>
    %c0_98 = arith.constant 0 : index
    %c0_99 = arith.constant 0 : index
    %172 = vector.load %arg16[%c0_98, %c0_99] : memref<16x1xf32, #tpu.memory_space<vmem>>, vector<16x1xf32>
    %173 = vector.broadcast %172 : vector<16x1xf32> to vector<16x512xf32>
    %174 = arith.mulf %171, %173 : vector<16x512xf32>
    %c0_100 = arith.constant 0 : index
    %c0_101 = arith.constant 0 : index
    %175 = vector.load %arg17[%c0_100, %c0_101] : memref<16x1xf32, #tpu.memory_space<vmem>>, vector<16x1xf32>
    %176 = vector.broadcast %175 : vector<16x1xf32> to vector<16x512xf32>
    %177 = arith.addf %174, %176 : vector<16x512xf32>
    %178 = arith.addf %2, %177 : vector<16x512xf32>
    %c0_102 = arith.constant 0 : index
    %c0_103 = arith.constant 0 : index
    %179 = vector.load %arg18[%c0_102, %c0_103] : memref<144x16xf32, #tpu.memory_space<vmem>>, vector<144x16xf32>
    %cst_104 = arith.constant dense<0.000000e+00> : vector<144x512xf32>
    %180 = tpu.matmul %179, %178, %cst_104 {dimension_numbers = #tpu.dot_dimension_numbers<[1], [0], [0], [1], [0, 0, 1, 1], [], []>} : vector<144x16xf32>, vector<16x512xf32>, vector<144x512xf32> -> vector<144x512xf32>
    %c0_105 = arith.constant 0 : index
    %c128_106 = arith.constant 128 : index
    %181 = vector.load %arg21[%c0_105, %c128_106] : memref<144x768xf32, #tpu.memory_space<vmem>>, vector<144x512xf32>
    tpu.vector_store %arg21[%c0_105, %c128_106], %180 {strides = array<i32>} : memref<144x768xf32, #tpu.memory_space<vmem>>, vector<144x512xf32>,
    %cst_107 = arith.constant 0.000000e+00 : f32
    %182 = vector.broadcast %cst_107 : f32 to vector<16x512xf32>
    %c0_108 = arith.constant 0 : index
    %c111_109 = arith.constant 111 : index
    %183 = vector.load %arg21[%c0_108, %c111_109] : memref<144x768xf32, #tpu.memory_space<vmem>>, vector<16x512xf32>
    %c0_110 = arith.constant 0 : index
    %c0_111 = arith.constant 0 : index
    %184 = vector.load %arg1[%c0_110, %c0_111] : memref<9x512xf32, #tpu.memory_space<vmem>>, vector<1x512xf32>
    %185 = vector.broadcast %184 : vector<1x512xf32> to vector<16x512xf32>
    %186 = arith.mulf %183, %185 : vector<16x512xf32>
    %187 = arith.addf %182, %186 : vector<16x512xf32>
    %c16_112 = arith.constant 16 : index
    %c112_113 = arith.constant 112 : index
    %188 = vector.load %arg21[%c16_112, %c112_113] : memref<144x768xf32, #tpu.memory_space<vmem>>, vector<16x512xf32>
    %c1_114 = arith.constant 1 : index
    %c0_115 = arith.constant 0 : index
    %189 = vector.load %arg1[%c1_114, %c0_115] : memref<9x512xf32, #tpu.memory_space<vmem>>, vector<1x512xf32>
    %190 = vector.broadcast %189 : vector<1x512xf32> to vector<16x512xf32>
    %191 = arith.mulf %188, %190 : vector<16x512xf32>
    %192 = arith.addf %187, %191 : vector<16x512xf32>
    %c32_116 = arith.constant 32 : index
    %c113_117 = arith.constant 113 : index
    %193 = vector.load %arg21[%c32_116, %c113_117] : memref<144x768xf32, #tpu.memory_space<vmem>>, vector<16x512xf32>
    %c2_118 = arith.constant 2 : index
    %c0_119 = arith.constant 0 : index
    %194 = vector.load %arg1[%c2_118, %c0_119] : memref<9x512xf32, #tpu.memory_space<vmem>>, vector<1x512xf32>
    %195 = vector.broadcast %194 : vector<1x512xf32> to vector<16x512xf32>
    %196 = arith.mulf %193, %195 : vector<16x512xf32>
    %197 = arith.addf %192, %196 : vector<16x512xf32>
    %c48_120 = arith.constant 48 : index
    %c127_121 = arith.constant 127 : index
    %198 = vector.load %arg21[%c48_120, %c127_121] : memref<144x768xf32, #tpu.memory_space<vmem>>, vector<16x512xf32>
    %c3_122 = arith.constant 3 : index
    %c0_123 = arith.constant 0 : index
    %199 = vector.load %arg1[%c3_122, %c0_123] : memref<9x512xf32, #tpu.memory_space<vmem>>, vector<1x512xf32>
    %200 = vector.broadcast %199 : vector<1x512xf32> to vector<16x512xf32>
    %201 = arith.mulf %198, %200 : vector<16x512xf32>
    %202 = arith.addf %197, %201 : vector<16x512xf32>
    %c64_124 = arith.constant 64 : index
    %c128_125 = arith.constant 128 : index
    %203 = vector.load %arg21[%c64_124, %c128_125] : memref<144x768xf32, #tpu.memory_space<vmem>>, vector<16x512xf32>
    %c4_126 = arith.constant 4 : index
    %c0_127 = arith.constant 0 : index
    %204 = vector.load %arg1[%c4_126, %c0_127] : memref<9x512xf32, #tpu.memory_space<vmem>>, vector<1x512xf32>
    %205 = vector.broadcast %204 : vector<1x512xf32> to vector<16x512xf32>
    %206 = arith.mulf %203, %205 : vector<16x512xf32>
    %207 = arith.addf %202, %206 : vector<16x512xf32>
    %c80 = arith.constant 80 : index
    %c129_128 = arith.constant 129 : index
    %208 = vector.load %arg21[%c80, %c129_128] : memref<144x768xf32, #tpu.memory_space<vmem>>, vector<16x512xf32>
    %c5_129 = arith.constant 5 : index
    %c0_130 = arith.constant 0 : index
    %209 = vector.load %arg1[%c5_129, %c0_130] : memref<9x512xf32, #tpu.memory_space<vmem>>, vector<1x512xf32>
    %210 = vector.broadcast %209 : vector<1x512xf32> to vector<16x512xf32>
    %211 = arith.mulf %208, %210 : vector<16x512xf32>
    %212 = arith.addf %207, %211 : vector<16x512xf32>
    %c96 = arith.constant 96 : index
    %c143_131 = arith.constant 143 : index
    %213 = vector.load %arg21[%c96, %c143_131] : memref<144x768xf32, #tpu.memory_space<vmem>>, vector<16x512xf32>
    %c6_132 = arith.constant 6 : index
    %c0_133 = arith.constant 0 : index
    %214 = vector.load %arg1[%c6_132, %c0_133] : memref<9x512xf32, #tpu.memory_space<vmem>>, vector<1x512xf32>
    %215 = vector.broadcast %214 : vector<1x512xf32> to vector<16x512xf32>
    %216 = arith.mulf %213, %215 : vector<16x512xf32>
    %217 = arith.addf %212, %216 : vector<16x512xf32>
    %c112_134 = arith.constant 112 : index
    %c144_135 = arith.constant 144 : index
    %218 = vector.load %arg21[%c112_134, %c144_135] : memref<144x768xf32, #tpu.memory_space<vmem>>, vector<16x512xf32>
    %c7_136 = arith.constant 7 : index
    %c0_137 = arith.constant 0 : index
    %219 = vector.load %arg1[%c7_136, %c0_137] : memref<9x512xf32, #tpu.memory_space<vmem>>, vector<1x512xf32>
    %220 = vector.broadcast %219 : vector<1x512xf32> to vector<16x512xf32>
    %221 = arith.mulf %218, %220 : vector<16x512xf32>
    %222 = arith.addf %217, %221 : vector<16x512xf32>
    %c128_138 = arith.constant 128 : index
    %c145_139 = arith.constant 145 : index
    %223 = vector.load %arg21[%c128_138, %c145_139] : memref<144x768xf32, #tpu.memory_space<vmem>>, vector<16x512xf32>
    %c8_140 = arith.constant 8 : index
    %c0_141 = arith.constant 0 : index
    %224 = vector.load %arg1[%c8_140, %c0_141] : memref<9x512xf32, #tpu.memory_space<vmem>>, vector<1x512xf32>
    %225 = vector.broadcast %224 : vector<1x512xf32> to vector<16x512xf32>
    %226 = arith.mulf %223, %225 : vector<16x512xf32>
    %227 = arith.addf %222, %226 : vector<16x512xf32>
    %c0_142 = arith.constant 0 : index
    %c0_143 = arith.constant 0 : index
    %228 = vector.load %arg19[%c0_142, %c0_143] : memref<16x1xf32, #tpu.memory_space<vmem>>, vector<16x1xf32>
    %229 = vector.broadcast %228 : vector<16x1xf32> to vector<16x512xf32>
    %230 = arith.addf %227, %229 : vector<16x512xf32>
    %c0_144 = arith.constant 0 : index
    %c0_145 = arith.constant 0 : index
    %231 = vector.load %arg20[%c0_144, %c0_145] : memref<16x512xf32, #tpu.memory_space<vmem>>, vector<16x512xf32>
    tpu.vector_store %arg20[%c0_144, %c0_145], %230 {strides = array<i32>} : memref<16x512xf32, #tpu.memory_space<vmem>>, vector<16x512xf32>,
    return
  }
}

</mosaic_0001>

<bundles_post_ra>
// kernel: basic_block_forward.1
= control target key start
LH: loop header
LB: loop body
LE: loop exit
PB: predicated region body
PF: predicated region fallthrough
CT: control target
= control target key end

     0   :  { %v4568_v3 = vmov 0.0   ;;  %v4569_v8 = vmov 0   ;;  %vm188_vm0 = vcmask 130048   ;;  %v738_v17 = vlaneseq  ;;  %s4570_s24 = smov 112   ;;  %s4572_s26 = smov 127   ;;  %s6745_s0 = inlined_call_operand.vmem [shape: f32[16,512], index: 0, kind: input, shape index: {}]   ;;  %s6746_s3 = inlined_call_operand.vmem [shape: f32[8,1], index: 3, kind: input, shape index: {}]   ;;  %s6747_s2 = inlined_call_operand.vmem [shape: f32[8,16], index: 2, kind: input, shape index: {}]   ;;  %s6748_s5 = inlined_call_operand.vmem [shape: f32[4,1], index: 5, kind: input, shape index: {}]   ;;  %s6749_s1 = inlined_call_operand.vmem [shape: f32[9,512], index: 1, kind: input, shape index: {}]   ;;  %s6750_s4 = inlined_call_operand.vmem [shape: f32[4,8], index: 4, kind: input, shape index: {}]   ;;  %s6751_s7 = inlined_call_operand.vmem [shape: f32[4,1], index: 7, kind: input, shape index: {}]   ;;  %s6752_s6 = inlined_call_operand.vmem [shape: f32[36,4], index: 6, kind: input, shape index: {}]   ;;  %s6753_s9 = inlined_call_operand.vmem [shape: f32[8,1], index: 9, kind: input, shape index: {}]   ;;  %s6754_s8 = inlined_call_operand.vmem [shape: f32[8,4], index: 8, kind: input, shape index: {}]   ;;  %s6755_s10 = inlined_call_operand.vmem [shape: f32[8,1], index: 10, kind: input, shape index: {}]   ;;  %s6756_s11 = inlined_call_operand.vmem [shape: f32[8,1], index: 11, kind: input, shape index: {}]   ;;  %s6757_s13 = inlined_call_operand.vmem [shape: f32[8,1], index: 13, kind: input, shape index: {}]   ;;  %s6758_s12 = inlined_call_operand.vmem [shape: f32[72,8], index: 12, kind: input, shape index: {}]   ;;  %s6759_s15 = inlined_call_operand.vmem [shape: f32[16,1], index: 15, kind: input, shape index: {}]   ;;  %s6760_s14 = inlined_call_operand.vmem [shape: f32[16,8], index: 14, kind: input, shape index: {}]   ;;  %s6761_s16 = inlined_call_operand.vmem [shape: f32[16,1], index: 16, kind: input, shape index: {}]   ;;  %s6762_s17 = inlined_call_operand.vmem [shape: f32[16,1], index: 17, kind: input, shape index: {}]   ;;  %s6763_s18 = inlined_call_operand.vmem [shape: f32[144,16], index: 18, kind: input, shape index: {}]   ;;  %s6764_s19 = inlined_call_operand.vmem [shape: f32[16,1], index: 19, kind: input, shape index: {}]   ;;  %s6765_s20 = inlined_call_operand.vmem [shape: f32[16,512], index: 20, kind: output, shape index: {}]  }
   0x1   :  { %6789 = sst [smem:[#allocation45_spill]] %s6745_s0  ;;  %70 = vst [vmem:[#allocation2 + $0x28] sm:$0xff] %v4568_v3  ;;  %256 = vmatprep.mubr.f32.mxu0 %v4568_v3  ;;  %65 = vst [vmem:[#allocation2] sm:$0xff] %v4568_v3  ;;  %327 = vmatprep.mubr.f32.mxu1 %v4568_v3  ;;  %s4574_s0 = smov 15   ;;  %v334_v62 = vld [vmem:[%s6750_s4] sm:$0xf] }
   0x2   :  { %6790 = sst [smem:[#allocation46_spill]] %s6746_s3  ;;  %s6794_s23 = sld [smem:[#allocation45_spill]]  ;;  %71 = vst [vmem:[#allocation2 + $0x30] sm:$0xff] %v4568_v3  ;;  %82 = vst [vmem:[#allocation2 + $0x88] sm:$0xff] %v4568_v3  ;;  %4549 = vset.pattern.permute.xlu0 %v4569_v8  ;;  %4550 = vset.pattern.permute.xlu1 %v4569_v8  ;;  %v739_v18 = vshrl.u32 %v738_v17, 7  ;;  %vm341_vm1 = vcmask 64512  }
   0x3   :  { %6791 = sst [smem:[#allocation47_spill]] %s6747_s2  ;;  %88 = vst [vmem:[#allocation2 + $0xb8] sm:$0xff] %v4568_v3  ;;  %90 = vst [vmem:[#allocation2 + $0xc8] sm:$0xff] %v4568_v3  ;;  %s6795_s25 = sld [smem:[#allocation46_spill]]  ;;  %vm508_vm2 = vcmask 1043456   ;;  %vm492_vm3 = vcmask 31744  }
   0x4   :  { %6792 = sst [smem:[#allocation48_spill]] %s6748_s5  ;;  %91 = vst [vmem:[#allocation2 + $0xd0] sm:$0xff] %v4568_v3  ;;  %92 = vst [vmem:[#allocation2 + $0xd8] sm:$0xff] %v4568_v3  ;;  %s6796_s27 = sld [smem:[#allocation47_spill]]  ;;  %v4740_v20 = vsub.s32 2, %v739_v18  ;;  %v4742_v21 = vsub.s32 0, %v739_v18 }
   0x5   :  { %6793 = sst [smem:[#allocation49_spill]] %s6749_s1  ;;  %93 = vst [vmem:[#allocation2 + $0xe0] sm:$0xff] %v4568_v3  ;;  %94 = vst [vmem:[#allocation2 + $0xe8] sm:$0xff] %v4568_v3  ;;  %s6797_s29 = sld [smem:[#allocation48_spill]]  ;;  %v4784_v34 = vsub.s32 1, %v739_v18  ;;  %v4792_v37 = vsub.s32 3, %v739_v18 }
   0x6   :  { %s6798_s21 = sld [smem:[#allocation49_spill]]  ;;  %6799 = vst [vmem:[#allocation3_spill] sm:$0xff] %v4740_v20  ;;  %s4571_s2 = smov 113   ;;  %vm813_vm4 = vcmask 916480   ;;  %vm894_vm5 = vcmask 924672   ;;  %vm847_vm6 = vcmask 1039360  }
   0x7   :  { %s4573_s1 = smov 1   ;;  %s4576_s28 = smov 17   ;;  %vm1105_vm7 = vcmask 7168   ;;  %vm1186_vm8 = vcmask 121856   ;;  %vm1342_vm9 = vcmask 138240   ;;  %vm923_vm10 = vcmask 1031168  }
   0x8   :  { %v174_v0 = vld [vmem:[%s6794_s23 + $0x8] sm:$0xff]  ;;  %v176_v2 = vld [vmem:[%s6794_s23 + $0x18] sm:$0xff]  ;;  %v173_v6 = vld [vmem:[%s6794_s23] sm:$0xff]  ;;  %s4577_s3 = smov 111   ;;  %s4578_s4 = smov 126   ;;  %vm762_vm11 = vcmask 908288  }
   0x9   :  { %v178_v1 = vld [vmem:[%s6794_s23 + $0x28] sm:$0xff]  ;;  %v180_v5 = vld [vmem:[%s6794_s23 + $0x38] sm:$0xff]  ;;  %v177_v7 = vld [vmem:[%s6794_s23 + $0x20] sm:$0xff]  ;;  %s4582_s22 = smov 95   ;;  %vm1139_vm12 = vcmask 900096   ;;  %vm1215_vm13 = vcmask 785408  }
   0xa   :  { %v4518_v4 = vpack.c.bf16 %v178_v1, %v174_v0  ;;  %v4522_v9 = vpack.c.bf16 %v180_v5, %v176_v2  ;;  %v4520_v10 = vpack.c.bf16 %v177_v7, %v173_v6  ;;  %v175_v11 = vld [vmem:[%s6794_s23 + $0x10] sm:$0xff]  ;;  %v182_v14 = vld [vmem:[%s6795_s25] sm:$0xff]  ;;  %s4575_s25 = smov 16   ;;  %vm1295_vm14 = vcmask 777216  }
   0xb   :  { %v179_v12 = vld [vmem:[%s6794_s23 + $0x30] sm:$0xff]  ;;  %v181_v15 = vld [vmem:[%s6796_s27] sm:$0xff]  ;;  %185 = vperm.xlu0 %4549, %v182_v14   ;;  %s4579_s27 = smov 96   ;;  %vm1371_vm15 = vcmask 769024  }
   0xc   :  { %4519 = vmatprep.subr.bf16.mxu0 %v4518_v4  ;;  %v4524_v13 = vpack.c.bf16 %v179_v12, %v175_v11  ;;  %4523 = vmatprep.subr.bf16.mxu1 %v4522_v9  ;;  %v335_v16 = vld [vmem:[%s6797_s29] sm:$0xf]  ;;  %v4770_v29 = vld [vmem:[%s6798_s21 + $0x5] ss:$8 sm:$0xf] }
   0xd   :  { %4521 = vmatpush1.bf16.msra.mxu0 %v4520_v10  ;;  %v4430_v19 = vld [vmem:[%s6798_s21 + $0x1] ss:$8 sm:$0xf]  ;;  %v4747_v22 = vld [vmem:[%s6798_s21 + $0x2] ss:$8 sm:$0xf]  ;;  %v1084_v30 = vrot.slane %v4770_v29, %v4742_v21  ;;  %v1092_v32 = vrot.slane %v4770_v29, %v4740_v20  ;;  %v1088_v17 = vrot.slane %v4770_v29, %v4784_v34  ;;  %v1096_v18 = vrot.slane %v4770_v29, %v4792_v37 }
   0xe   :  { %4525 = vmatpush1.bf16.msra.mxu1 %v4524_v13  ;;  %v800_v23 = vrot.slane %v4430_v19, %v4740_v20  ;;  %v873_v24 = vrot.slane %v4747_v22, %v4742_v21  ;;  %v881_v25 = vrot.slane %v4747_v22, %v4740_v20  ;;  %v4759_v26 = vld [vmem:[%s6798_s21 + $0x3] ss:$8 sm:$0xf]  ;;  %v792_v31 = vrot.slane %v4430_v19, %v4742_v21  ;;  %v4782_v33 = vld [vmem:[%s6798_s21 + $0x6] ss:$8 sm:$0xf] }
   0xf   :  { %338 = vperm.xlu0 %4549, %v335_v16   ;;  %v949_v27 = vrot.slane %v4759_v26, %v4742_v21  ;;  %v957_v28 = vrot.slane %v4759_v26, %v4740_v20  ;;  %v796_v35 = vrot.slane %v4430_v19, %v4784_v34  ;;  %v1165_v36 = vrot.slane %v4782_v33, %v4742_v21  ;;  %v4801_v40 = vld [vmem:[%s6798_s21 + $0x7] ss:$8 sm:$0xf]  ;;  %v4816_v44 = vld [vmem:[%s6798_s21 + $0x20] ss:$8 sm:$0xf] }
  0x10   :  { %4412 = vmatmul.mubr.msk.f32.vlgmr.msra.gmra.mrb[0].mxu0 %vm188_vm0, %v181_v15  ;;  %805 = vrot.lane.b32.xlu1 %v792_v31, %s4570_s24  ;;  %v1173_v38 = vrot.slane %v4782_v33, %v4740_v20  ;;  %v804_v39 = vrot.slane %v4430_v19, %v4792_v37  ;;  %v877_v41 = vrot.slane %v4747_v22, %v4784_v34  ;;  %v4827_v47 = vld [vmem:[%s6798_s21] ss:$8 sm:$0xf] }
  0x11   :  { %4413 = vmatmul.mubr.msk.f32.vlgmr.msra.gmra.mrb[0].mxu1 %vm188_vm0, %v181_v15  ;;  %409 = vmatprep.mubr.f32.mxu0 %v4568_v3  ;;  %v1245_v42 = vrot.slane %v4801_v40, %v4784_v34  ;;  %v1177_v43 = vrot.slane %v4782_v33, %v4792_v37  ;;  %v1321_v45 = vrot.slane %v4816_v44, %v4742_v21  ;;  %v862_v63 = vld [vmem:[#allocation2 + $0x30] sm:$0xf]  ;;  %v1158_v11 = vld [vmem:[#allocation2 + $0xb8] sm:$0xf] }
  0x12   :  { %480 = vmatprep.mubr.f32.mxu1 %v4568_v3  ;;  %v1329_v46 = vrot.slane %v4816_v44, %v4740_v20  ;;  %v741_v48 = vrot.slane %v4827_v47, %v4742_v21  ;;  %v749_v49 = vrot.slane %v4827_v47, %v4740_v20  ;;  %v753_v50 = vrot.slane %v4827_v47, %v4792_v37 }
  0x13   :  { %809 = vrot.lane.b32.xlu0 %v800_v23, %s4570_s24  ;;  %v885_v14 = vrot.slane %v4747_v22, %v4792_v37  ;;  %v953_v15 = vrot.slane %v4759_v26, %v4784_v34  ;;  %v961_v16 = vrot.slane %v4759_v26, %v4792_v37  ;;  %v1169_v19 = vrot.slane %v4782_v33, %v4784_v34 }
  0x14   :  { %807 = vrot.lane.b32.xlu1 %v796_v35, %s4570_s24  ;;  %v1241_v22 = vrot.slane %v4801_v40, %v4742_v21  ;;  %v1249_v23 = vrot.slane %v4801_v40, %v4740_v20  ;;  %v1333_v26 = vrot.slane %v4816_v44, %v4792_v37 }
  0x17   :  { %886 = vrot.lane.b32.xlu0 %v873_v24, %s4571_s2  ;;  %v1253_v24 = vrot.slane %v4801_v40, %v4792_v37 }
  0x18   :  { %811 = vrot.lane.b32.xlu1 %v804_v39, %s4570_s24 }
  0x1b   :  { %890 = vrot.lane.b32.xlu0 %v881_v25, %s4571_s2  ;;  %v1325_v25 = vrot.slane %v4816_v44, %v4784_v34 }
  0x1c   :  { %888 = vrot.lane.b32.xlu1 %v877_v41, %s4571_s2 }
  0x1f   :  { %962 = vrot.lane.b32.xlu0 %v949_v27, %s4572_s26  ;;  %v745_v27 = vrot.slane %v4827_v47, %v4784_v34 }
  0x20   :  { %892 = vrot.lane.b32.xlu1 %v885_v14, %s4571_s2 }
  0x23   :  { %966 = vrot.lane.b32.xlu0 %v957_v28, %s4572_s26 }
  0x24   :  { %964 = vrot.lane.b32.xlu1 %v953_v15, %s4572_s26 }
  0x27   :  { %1097 = vrot.lane.b32.xlu0 %v1084_v30, %s4573_s1 }
  0x28   :  { %968 = vrot.lane.b32.xlu1 %v961_v16, %s4572_s26 }
  0x2b   :  { %1101 = vrot.lane.b32.xlu0 %v1092_v32, %s4573_s1  ;;  %v1386_v32 = vld [vmem:[%s6751_s7] sm:$0xf]  ;;  %s4581_s7 = smov 110  }
  0x2c   :  { %1099 = vrot.lane.b32.xlu1 %v1088_v17, %s4573_s1 }
  0x2f   :  { %1178 = vrot.lane.b32.xlu0 %v1165_v36, %s4574_s0 }
  0x30   :  { %1103 = vrot.lane.b32.xlu1 %v1096_v18, %s4573_s1  ;;  %v1077_v18 = vld [vmem:[#allocation2 + $0x88] sm:$0xf0] }
  0x33   :  { %1182 = vrot.lane.b32.xlu0 %v1173_v38, %s4574_s0 }
  0x34   :  { %1180 = vrot.lane.b32.xlu1 %v1169_v19, %s4574_s0 }
  0x37   :  { %1256 = vrot.lane.b32.xlu0 %v1245_v42, %s4575_s25 }
  0x38   :  { %1254 = vrot.lane.b32.xlu1 %v1241_v22, %s4575_s25  ;;  %v1234_v22 = vld [vmem:[#allocation2 + $0xb8] sm:$0xf0] }
  0x3b   :  { %1184 = vrot.lane.b32.xlu0 %v1177_v43, %s4574_s0 }
  0x3c   :  { %1258 = vrot.lane.b32.xlu1 %v1249_v23, %s4575_s25 }
  0x3f   :  { %1334 = vrot.lane.b32.xlu0 %v1321_v45, %s4576_s28  ;;  %v487_v45 = vld [vmem:[%s6752_s6] sm:$0xff] }
  0x40   :  { %1260 = vrot.lane.b32.xlu1 %v1253_v24, %s4575_s25 }
  0x43   :  { %1338 = vrot.lane.b32.xlu0 %v1329_v46, %s4576_s28 }
  0x44   :  { %1336 = vrot.lane.b32.xlu1 %v1325_v25, %s4576_s28 }
  0x47   :  { %754 = vrot.lane.b32.xlu0 %v741_v48, %s4577_s3  ;;  %v488_v48 = vld [vmem:[%s6752_s6 + $0x8] sm:$0xff] }
  0x48   :  { %1340 = vrot.lane.b32.xlu1 %v1333_v26, %s4576_s28 }
  0x4b   :  { %758 = vrot.lane.b32.xlu0 %v749_v49, %s4577_s3 }
  0x4c   :  { %756 = vrot.lane.b32.xlu1 %v745_v27, %s4577_s3 }
  0x4f   :  { %760 = vrot.lane.b32.xlu0 %v753_v50, %s4577_s3  ;;  %v489_v50 = vld [vmem:[%s6752_s6 + $0x10] sm:$0xff] }
  0x50   :  { %1389 = vperm.xlu1 %4550, %v1386_v32  }
  0x82   :  { %v4922_v28 = vpop.permute.xlu1 %805 }
  0x86   :  { %v4924_v29 = vpop.permute.xlu1 %807 }
  0x8a   :  { %v186_v51 = vpop.permute.xlu0 %185  ;;  %v4926_v30 = vpop.permute.xlu1 %811 }
  0x8e   :  { %v4839_v52 = vpop.permute.xlu0 %338  ;;  %v4928_v31 = vpop.permute.xlu1 %888 }
  0x92   :  { %v4845_v59 = vpop.permute.xlu0 %809  ;;  %v4933_v33 = vpop.permute.xlu1 %892 }
  0x96   :  { %v4859_v0 = vpop.permute.xlu0 %886  ;;  %v4935_v35 = vpop.permute.xlu1 %964 }
  0x97   :  { %v903_v1 = vmul.f32 %v4859_v0, %v862_v63 }
  0x99   :  { %913 = vrot.lane.b32.xlu0 %v903_v1, %s4578_s4  ;;  %v1314_v1 = vld [vmem:[#allocation2 + $0xe8] sm:$0xf] }
  0x9a   :  { %v4866_v2 = vpop.permute.xlu0 %890  ;;  %v4937_v36 = vpop.permute.xlu1 %968 }
  0x9e   :  { %v4868_v4 = vpop.permute.xlu0 %962  ;;  %v4950_v46 = vpop.permute.xlu1 %1099 }
  0xa2   :  { %v4870_v5 = vpop.permute.xlu0 %966  ;;  %v4968_v49 = vpop.permute.xlu1 %1103 }
  0xa6   :  { %v4872_v6 = vpop.permute.xlu0 %1097 }
  0xaa   :  { %v4874_v7 = vpop.permute.xlu0 %1101 }
  0xae   :  { %v4876_v8 = vpop.permute.xlu0 %1178 }
  0xb2   :  { %v4878_v9 = vpop.permute.xlu0 %1182 }
  0xb6   :  { %v4880_v10 = vpop.permute.xlu0 %1256 }
  0xba   :  { %v4882_v12 = vpop.permute.xlu0 %1184 }
  0xbb   :  { %v1199_v13 = vmul.f32 %v4882_v12, %v1158_v11 }
  0xbd   :  { %1213 = vrot.lane.b32.xlu0 %v1199_v13, %s4579_s27  ;;  %v938_v13 = vld [vmem:[#allocation2 + $0x30] sm:$0xf0] }
  0xbe   :  { %v978_v16 = vmul.f32 %v4868_v4, %v938_v13  ;;  %v816_v13 = vsel %vm813_vm4, %v4845_v59, %v4926_v30 }
  0xc0   :  { %v988_v19 = vrot.slane %v978_v16, 4 }
  0xe3   :  { %v258_v53 = vpop.f32.mrb[0].mxu0 }
  0xe4   :  { %v329_v54 = vpop.f32.mrb[0].mxu1  ;;  %v260_v55 = vpop.f32.mrb[1].mxu0  ;;  %v4847_v60 = vadd.f32 %v258_v53, %v186_v51 }
  0xe5   :  { %v4841_v56 = vadd.f32 %v329_v54, %v186_v51  ;;  %v4843_v57 = vadd.f32 %v260_v55, %v186_v51  ;;  %v331_v58 = vpop.f32.mrb[1].mxu1  ;;  %v491_v54 = vld [vmem:[%s6752_s6 + $0x20] sm:$0xf] }
  0xe6   :  { %v4849_v61 = vadd.f32 %v331_v58, %v186_v51  ;;  %v4977_v51 = vpop.permute.xlu1 %1180 }
  0xe7   :  { %345 = vmatprep.subr.mxu0 %v4843_v57 }
  0xe8   :  { %416 = vmatprep.subr.mxu1 %v4849_v61  ;;  %346 = vmatpush1.msra.mxu0 %v4847_v60 }
  0xe9   :  { %417 = vmatpush1.msra.mxu1 %v4841_v56  ;;  %4414 = vmatmul.mubr.msk.f32.vlgmr.msra.gmra.mrb[2].mxu0 %vm341_vm1, %v334_v62 }
  0xea   :  { %4415 = vmatmul.mubr.msk.f32.vlgmr.msra.gmra.mrb[2].mxu1 %vm341_vm1, %v334_v62  ;;  %585 = vmatprep.mubr.f32.mxu0 %v4568_v3  ;;  %v4986_v53 = vpop.permute.xlu1 %1254  ;;  %v781_v62 = vld [vmem:[#allocation2] sm:$0xf0] }
  0xeb   :  { %680 = vmatprep.mubr.f32.mxu1 %v4568_v3  ;;  %v822_v11 = vmul.f32 %v4922_v28, %v781_v62 }
  0xed   :  { %v832_v17 = vrot.slane %v822_v11, 4 }
  0xee   :  { %v4995_v55 = vpop.permute.xlu1 %1258 }
  0xf2   :  { %v5000_v58 = vpop.permute.xlu1 %1260 }
  0xf3   :  { %v1274_v23 = vmul.f32 %v5000_v58, %v1234_v22 }
  0xf5   :  { %v1284_v25 = vrot.slane %v1274_v23, 4 }
  0xf6   :  { %v5004_v63 = vpop.permute.xlu1 %1336 }
  0xfa   :  { %v5007_v14 = vpop.permute.xlu1 %1340 }
  0xfb   :  { %v1355_v15 = vmul.f32 %v5007_v14, %v1314_v1 }
 0x1bc   :  { %v411_v38 = vpop.f32.mrb[2].mxu0 }
 0x1bd   :  { %v412_v39 = vadd.f32 %v411_v38, %v4839_v52  ;;  %v482_v40 = vpop.f32.mrb[2].mxu1  ;;  %v413_v41 = vpop.f32.mrb[3].mxu0 }
 0x1be   :  { %v4941_v42 = vadd.f32 %v413_v41, %v4839_v52  ;;  %v484_v43 = vpop.f32.mrb[3].mxu1  ;;  %v4953_v47 = vadd.f32 %v482_v40, %v4839_v52 }
 0x1bf   :  { %v4944_v44 = vadd.f32 %v484_v43, %v4839_v52  ;;  %1397 = vrot.lane.b32.xlu0 %v412_v39, %s4577_s3  ;;  %v490_v52 = vld [vmem:[%s6752_s6 + $0x18] sm:$0xff]  ;;  %s6768_s6 = smov 94  }
 0x1c0   :  { %4416 = vmatprep.subr.msk.mxu0 %vm508_vm2, %v4941_v42  ;;  %1369 = vrot.lane.b32.xlu1 %v1355_v15, %s6768_s6 }
 0x1c1   :  { %4423 = vmatprep.subr.msk.mxu1 %vm508_vm2, %v4944_v44  ;;  %4417 = vmatpush1.msk.msra.mxu0 %vm508_vm2, %v412_v39 }
 0x1c2   :  { %4424 = vmatpush1.msk.msra.mxu1 %vm508_vm2, %v4953_v47  ;;  %4418 = vmatmul.mubr.msk.f32.vlgmr.msra.gmra.mrb[4].mxu0 %vm492_vm3, %v487_v45 }
 0x1c3   :  { %4425 = vmatmul.mubr.msk.f32.vlgmr.msra.gmra.mrb[4].mxu1 %vm492_vm3, %v487_v45  ;;  %591 = vmatprep.mubr.f32.mxu0 %v4568_v3  ;;  %v814_v45 = vsel %vm813_vm4, %v4922_v28, %v4924_v29 }
 0x1c4   :  { %686 = vmatprep.mubr.f32.mxu1 %v4568_v3  ;;  %837 = vrot.lane.b32.xlu1 %v832_v17, %s4572_s26 }
 0x1c6   :  { %4419 = vmatmul.mubr.msk.f32.gmra.mrb[6].mxu0 %vm492_vm3, %v488_v48 }
 0x1c7   :  { %4426 = vmatmul.mubr.msk.f32.gmra.mrb[6].mxu1 %vm492_vm3, %v488_v48  ;;  %597 = vmatprep.mubr.f32.mxu0 %v4568_v3 }
 0x1c8   :  { %692 = vmatprep.mubr.f32.mxu1 %v4568_v3  ;;  %993 = vrot.lane.b32.xlu1 %v988_v19, %s4570_s24 }
 0x1ca   :  { %4420 = vmatmul.mubr.msk.f32.gmra.mrb[8].mxu0 %vm492_vm3, %v489_v50 }
 0x1cb   :  { %4427 = vmatmul.mubr.msk.f32.gmra.mrb[8].mxu1 %vm492_vm3, %v489_v50  ;;  %603 = vmatprep.mubr.f32.mxu0 %v4568_v3 }
 0x1cc   :  { %698 = vmatprep.mubr.f32.mxu1 %v4568_v3 }
 0x1ce   :  { %4421 = vmatmul.mubr.msk.f32.gmra.mrb[10].mxu0 %vm492_vm3, %v490_v52 }
 0x1cf   :  { %4428 = vmatmul.mubr.msk.f32.gmra.mrb[10].mxu1 %vm492_vm3, %v490_v52  ;;  %609 = vmatprep.mubr.f32.mxu0 %v4568_v3  ;;  %v815_v52 = vsel %vm813_vm4, %v4924_v29, %v4845_v59 }
 0x1d0   :  { %704 = vmatprep.mubr.f32.mxu1 %v4568_v3 }
 0x1d2   :  { %4422 = vmatmul.mubr.msk.f32.gmra.mrb[12].mxu0 %vm492_vm3, %v491_v54 }
 0x1d3   :  { %4429 = vmatmul.mubr.msk.f32.gmra.mrb[12].mxu1 %vm492_vm3, %v491_v54  ;;  %1519 = vmatprep.mubr.f32.mxu0 %v4568_v3 }
 0x1d4   :  { %1590 = vmatprep.mubr.f32.mxu1 %v4568_v3  ;;  %v1118_v3 = vmul.f32 %v4968_v49, %v1077_v18 }
 0x1d6   :  { %v1128_v24 = vrot.slane %v1118_v3, 4 }
 0x1d8   :  { %1137 = vrot.lane.b32.xlu1 %v1128_v24, %s4581_s7 }
 0x1dc   :  { %1293 = vrot.lane.b32.xlu1 %v1284_v25, %s4582_s22  ;;  %v895_v25 = vsel %vm894_vm5, %v4859_v0, %v4928_v31  ;;  %v897_v0 = vsel %vm894_vm5, %v4866_v2, %v4933_v33 }
 0x295   :  { %v587_v26 = vpop.f32.mrb[4].mxu0 }
 0x296   :  { %711 = vst [vmem:[#allocation2 + $0x8] sm:$0xff] %v587_v26  ;;  %v682_v27 = vpop.f32.mrb[4].mxu1  ;;  %v589_v32 = vpop.f32.mrb[5].mxu0 }
 0x297   :  { %713 = vst [vmem:[#allocation2 + $0x18] sm:$0xff] %v682_v27  ;;  %712 = vst [vmem:[#allocation2 + $0x10] sm:$0xff] %v589_v32  ;;  %v684_v38 = vpop.f32.mrb[5].mxu1 }
 0x298   :  { %714 = vst [vmem:[#allocation2 + $0x20] sm:$0xff] %v684_v38 }
 0x299   :  { %v593_v39 = vpop.f32.mrb[6].mxu0 }
 0x29a   :  { %715 = vst [vmem:[#allocation2 + $0x38] sm:$0xff] %v593_v39  ;;  %v688_v40 = vpop.f32.mrb[6].mxu1  ;;  %v595_v41 = vpop.f32.mrb[7].mxu0 }
 0x29b   :  { %717 = vst [vmem:[#allocation2 + $0x48] sm:$0xff] %v688_v40  ;;  %716 = vst [vmem:[#allocation2 + $0x40] sm:$0xff] %v595_v41  ;;  %v690_v43 = vpop.f32.mrb[7].mxu1 }
 0x29c   :  { %718 = vst [vmem:[#allocation2 + $0x50] sm:$0xff] %v690_v43 }
 0x29d   :  { %v599_v48 = vpop.f32.mrb[8].mxu0  ;;  %v782_v50 = vld [vmem:[#allocation2 + $0x8] sm:$0xf0] }
 0x29e   :  { %719 = vst [vmem:[#allocation2 + $0x68] sm:$0xff] %v599_v48  ;;  %v694_v54 = vpop.f32.mrb[8].mxu1  ;;  %v601_v62 = vpop.f32.mrb[9].mxu0  ;;  %v823_v1 = vmul.f32 %v814_v45, %v782_v50  ;;  %v783_v11 = vld [vmem:[#allocation2 + $0x10] sm:$0xf0] }
 0x29f   :  { %721 = vst [vmem:[#allocation2 + $0x78] sm:$0xff] %v694_v54  ;;  %720 = vst [vmem:[#allocation2 + $0x70] sm:$0xff] %v601_v62  ;;  %v696_v15 = vpop.f32.mrb[9].mxu1  ;;  %v824_v16 = vmul.f32 %v815_v52, %v783_v11  ;;  %v784_v28 = vld [vmem:[#allocation2 + $0x18] sm:$0xf0]  ;;  %v896_v62 = vsel %vm894_vm5, %v4928_v31, %v4866_v2  ;;  %v971_v11 = vsel %vm847_vm6, %v4935_v35, %v4870_v5 }
 0x2a0   :  { %722 = vst [vmem:[#allocation2 + $0x80] sm:$0xff] %v696_v15  ;;  %v833_v17 = vrot.slane %v823_v1, 4  ;;  %v825_v18 = vmul.f32 %v816_v13, %v784_v28  ;;  %v785_v19 = vld [vmem:[#allocation2 + $0x20] sm:$0xf0]  ;;  %v970_v1 = vsel %vm847_vm6, %v4868_v4, %v4935_v35  ;;  %v972_v4 = vsel %vm847_vm6, %v4870_v5, %v4937_v36 }
 0x2a1   :  { %v605_v3 = vpop.f32.mrb[10].mxu0  ;;  %v834_v29 = vrot.slane %v824_v16, 4  ;;  %v863_v24 = vld [vmem:[#allocation2 + $0x38] sm:$0xf]  ;;  %v826_v27 = vmul.f32 %v4926_v30, %v785_v19  ;;  %v939_v50 = vld [vmem:[#allocation2 + $0x38] sm:$0xf0] }
 0x2a2   :  { %723 = vst [vmem:[#allocation2 + $0x98] sm:$0xff] %v605_v3  ;;  %v700_v22 = vpop.f32.mrb[10].mxu1  ;;  %839 = vrot.lane.b32.xlu1 %v833_v17, %s4572_s26  ;;  %v607_v23 = vpop.f32.mrb[11].mxu0  ;;  %v835_v26 = vrot.slane %v825_v18, 4  ;;  %v904_v38 = vmul.f32 %v895_v25, %v863_v24  ;;  %v865_v41 = vld [vmem:[#allocation2 + $0x48] sm:$0xf]  ;;  %v979_v15 = vmul.f32 %v970_v1, %v939_v50  ;;  %v1106_v50 = vsel %vm1105_vm7, %v4872_v6, %v4950_v46 }
 0x2a3   :  { %725 = vst [vmem:[#allocation2 + $0xa8] sm:$0xff] %v700_v22  ;;  %v702_v59 = vpop.f32.mrb[11].mxu1  ;;  %724 = vst [vmem:[#allocation2 + $0xa0] sm:$0xff] %v607_v23  ;;  %841 = vrot.lane.b32.xlu0 %v834_v29, %s4572_s26  ;;  %v836_v30 = vrot.slane %v826_v27, 4  ;;  %v906_v45 = vmul.f32 %v897_v0, %v865_v41  ;;  %v864_v48 = vld [vmem:[#allocation2 + $0x40] sm:$0xf] }
 0x2a4   :  { %726 = vst [vmem:[#allocation2 + $0xb0] sm:$0xff] %v702_v59  ;;  %v866_v52 = vld [vmem:[#allocation2 + $0x50] sm:$0xf]  ;;  %v940_v54 = vld [vmem:[#allocation2 + $0x40] sm:$0xf0]  ;;  %v905_v13 = vmul.f32 %v896_v62, %v864_v48  ;;  %v989_v35 = vrot.slane %v979_v15, 4 }
 0x2a5   :  { %v611_v32 = vpop.f32.mrb[12].mxu0  ;;  %v4433_v16 = vld [vmem:[%s6798_s21 + $0x4] ss:$8 sm:$0xf]  ;;  %v907_v28 = vmul.f32 %v4933_v33, %v866_v52  ;;  %v980_v17 = vmul.f32 %v971_v11, %v940_v54  ;;  %v1017_v3 = vld [vmem:[#allocation2 + $0x68] sm:$0xf]  ;;  %v1108_v52 = vsel %vm1105_vm7, %v4874_v7, %v4968_v49 }
 0x2a6   :  { %727 = vst [vmem:[#allocation2 + $0xc8] sm:$0xf] %v611_v32  ;;  %v706_v39 = vpop.f32.mrb[12].mxu1  ;;  %843 = vrot.lane.b32.xlu1 %v835_v26, %s4572_s26  ;;  %v613_v40 = vpop.f32.mrb[13].mxu0  ;;  %v941_v2 = vld [vmem:[#allocation2 + $0x48] sm:$0xf0]  ;;  %v1027_v31 = vrot.slane %v4433_v16, %v4742_v21  ;;  %v1035_v22 = vrot.slane %v4433_v16, %v4740_v20  ;;  %v1031_v27 = vrot.slane %v4433_v16, %v4784_v34 }
 0x2a7   :  { %729 = vst [vmem:[#allocation2 + $0xd8] sm:$0xf] %v706_v39  ;;  %v708_v43 = vpop.f32.mrb[13].mxu1  ;;  %728 = vst [vmem:[#allocation2 + $0xd0] sm:$0xf] %v613_v40  ;;  %915 = vrot.lane.b32.xlu0 %v904_v38, %s4578_s4  ;;  %v981_v18 = vmul.f32 %v972_v4, %v941_v2  ;;  %v990_v29 = vrot.slane %v980_v17, 4  ;;  %v1039_v41 = vrot.slane %v4433_v16, %v4792_v37 }
 0x2a8   :  { %730 = vst [vmem:[#allocation2 + $0xe0] sm:$0xf] %v708_v43  ;;  %v942_v19 = vld [vmem:[#allocation2 + $0x50] sm:$0xf0]  ;;  %v1044_v33 = vmul.f32 %v1027_v31, %v1017_v3  ;;  %v1019_v5 = vld [vmem:[#allocation2 + $0x78] sm:$0xf]  ;;  %v1189_v31 = vsel %vm1186_vm8, %v4878_v9, %v4882_v12 }
 0x2a9   :  { %v991_v23 = vrot.slane %v981_v18, 4  ;;  %v982_v24 = vmul.f32 %v4937_v36, %v942_v19  ;;  %v1073_v59 = vld [vmem:[#allocation2 + $0x68] sm:$0xf0]  ;;  %v1046_v25 = vmul.f32 %v1035_v22, %v1019_v5  ;;  %v1018_v32 = vld [vmem:[#allocation2 + $0x70] sm:$0xf]  ;;  %v1107_v36 = vsel %vm1105_vm7, %v4950_v46, %v4874_v7  ;;  %v1335_v22 = vpop.permute.xlu0 %1334 }
 0x2aa   :  { %845 = vrot.lane.b32.xlu1 %v836_v30, %s4572_s26  ;;  %v1114_v38 = vmul.f32 %v4872_v6, %v1073_v59  ;;  %v1075_v39 = vld [vmem:[#allocation2 + $0x78] sm:$0xf0]  ;;  %v1045_v40 = vmul.f32 %v1031_v27, %v1018_v32  ;;  %v1020_v0 = vld [vmem:[#allocation2 + $0x80] sm:$0xf]  ;;  %v1076_v48 = vld [vmem:[#allocation2 + $0x80] sm:$0xf0]  ;;  %v1187_v46 = vsel %vm1186_vm8, %v4876_v8, %v4977_v51 }
 0x2ab   :  { %919 = vrot.lane.b32.xlu0 %v906_v45, %s4578_s4  ;;  %v992_v26 = vrot.slane %v982_v24, 4  ;;  %v1116_v30 = vmul.f32 %v1107_v36, %v1075_v39  ;;  %v1074_v45 = vld [vmem:[#allocation2 + $0x70] sm:$0xf0]  ;;  %v1047_v54 = vmul.f32 %v1039_v41, %v1020_v0  ;;  %v1117_v11 = vmul.f32 %v1108_v52, %v1076_v48  ;;  %v1155_v16 = vld [vmem:[#allocation2 + $0xa0] sm:$0xf] }
 0x2ac   :  { %v1124_v43 = vrot.slane %v1114_v38, 4  ;;  %v1115_v62 = vmul.f32 %v1106_v50, %v1074_v45  ;;  %v1154_v6 = vld [vmem:[#allocation2 + $0x98] sm:$0xf]  ;;  %v1196_v7 = vmul.f32 %v1187_v46, %v1155_v16  ;;  %v1231_v17 = vld [vmem:[#allocation2 + $0xa0] sm:$0xf0] }
 0x2ad   :  { %v1126_v1 = vrot.slane %v1116_v30, 4  ;;  %v1127_v15 = vrot.slane %v1117_v11, 4  ;;  %v1195_v49 = vmul.f32 %v4876_v8, %v1154_v6  ;;  %v1156_v2 = vld [vmem:[#allocation2 + $0xa8] sm:$0xf]  ;;  %v1230_v4 = vld [vmem:[#allocation2 + $0x98] sm:$0xf0]  ;;  %v1188_v8 = vsel %vm1186_vm8, %v4977_v51, %v4878_v9  ;;  %v1339_v32 = vpop.permute.xlu0 %1338 }
 0x2ae   :  { %917 = vrot.lane.b32.xlu1 %v905_v13, %s4578_s4  ;;  %v1125_v13 = vrot.slane %v1115_v62, 4  ;;  %v1270_v19 = vmul.f32 %v4986_v53, %v1230_v4  ;;  %v1310_v12 = vld [vmem:[#allocation2 + $0xc8] sm:$0xf]  ;;  %v1233_v51 = vld [vmem:[#allocation2 + $0xb0] sm:$0xf0]  ;;  %v1345_v41 = vsel %vm1342_vm9, %v1339_v32, %v5007_v14 }
 0x2af   :  { %921 = vrot.lane.b32.xlu0 %v907_v28, %s4578_s4  ;;  %v1157_v28 = vld [vmem:[#allocation2 + $0xb0] sm:$0xf]  ;;  %v1351_v9 = vmul.f32 %v1335_v22, %v1310_v12 }
 0x2b0   :  { %v1198_v18 = vmul.f32 %v1189_v31, %v1157_v28  ;;  %v1280_v5 = vrot.slane %v1270_v19, 4  ;;  %v1311_v36 = vld [vmem:[#allocation2 + $0xd0] sm:$0xf] }
 0x2b1   :  { %v755_v0 = vpop.permute.xlu0 %754 }
 0x2b2   :  { %995 = vrot.lane.b32.xlu1 %v989_v35, %s4570_s24  ;;  %v1262_v35 = vsel %vm188_vm0, %v4986_v53, %v4880_v10  ;;  %v1264_v53 = vsel %vm188_vm0, %v4995_v55, %v5000_v58 }
 0x2b3   :  { %997 = vrot.lane.b32.xlu0 %v990_v29, %s4570_s24  ;;  %v1271_v3 = vmul.f32 %v1262_v35, %v1231_v17  ;;  %v1197_v29 = vmul.f32 %v1188_v8, %v1156_v2  ;;  %v1273_v27 = vmul.f32 %v1264_v53, %v1233_v51 }
 0x2b5   :  { %v1281_v24 = vrot.slane %v1271_v3, 4  ;;  %v1283_v39 = vrot.slane %v1273_v27, 4  ;;  %v731_v3 = vld [vmem:[#allocation2] sm:$0xf] }
 0x2b6   :  { %999 = vrot.lane.b32.xlu1 %v991_v23, %s4570_s24  ;;  %v1263_v23 = vsel %vm188_vm0, %v4880_v10, %v4995_v55  ;;  %v1344_v10 = vsel %vm1342_vm9, %v5004_v63, %v1339_v32  ;;  %v1343_v55 = vsel %vm1342_vm9, %v1335_v22, %v5004_v63  ;;  %v757_v63 = vpop.permute.xlu1 %756 }
 0x2b7   :  { %1052 = vrot.lane.b32.xlu0 %v1044_v33, %s4577_s3  ;;  %v1232_v33 = vld [vmem:[#allocation2 + $0xa8] sm:$0xf0]  ;;  %v1352_v58 = vmul.f32 %v1343_v55, %v1311_v36  ;;  %v763_v27 = vsel %vm762_vm11, %v755_v0, %v757_v63  ;;  %v734_v36 = vld [vmem:[#allocation2 + $0x18] sm:$0xf] }
 0x2b8   :  { %v1272_v59 = vmul.f32 %v1263_v23, %v1232_v33  ;;  %v771_v33 = vmul.f32 %v755_v0, %v731_v3 }
 0x2ba   :  { %1001 = vrot.lane.b32.xlu1 %v992_v26, %s4570_s24  ;;  %v1312_v26 = vld [vmem:[#allocation2 + $0xd8] sm:$0xf]  ;;  %v5129_v30 = vpop.permute.xlu1 %1389 }
 0x2bb   :  { %1056 = vrot.lane.b32.xlu0 %v1046_v25, %s4577_s3  ;;  %v1282_v25 = vrot.slane %v1272_v59, 4  ;;  %v1353_v38 = vmul.f32 %v1344_v10, %v1312_v26  ;;  %v733_v26 = vld [vmem:[#allocation2 + $0x10] sm:$0xf] }
 0x2be   :  { %1054 = vrot.lane.b32.xlu1 %v1045_v40, %s4577_s3  ;;  %v1313_v40 = vld [vmem:[#allocation2 + $0xe0] sm:$0xf]  ;;  %v5131_v45 = vpop.permute.xlu1 %1369 }
 0x2bf   :  { %1129 = vrot.lane.b32.xlu0 %v1124_v43, %s4581_s7  ;;  %v1354_v43 = vmul.f32 %v1345_v41, %v1313_v40  ;;  %v735_v40 = vld [vmem:[#allocation2 + $0x20] sm:$0xf] }
 0x2c2   :  { %1058 = vrot.lane.b32.xlu1 %v1047_v54, %s4577_s3  ;;  %v838_v50 = vpop.permute.xlu1 %837 }
 0x2c3   :  { %1133 = vrot.lane.b32.xlu0 %v1126_v1, %s4581_s7 }
 0x2c6   :  { %1131 = vrot.lane.b32.xlu1 %v1125_v13, %s4581_s7  ;;  %v994_v14 = vpop.permute.xlu1 %993 }
 0x2c7   :  { %1135 = vrot.lane.b32.xlu0 %v1127_v15, %s4581_s7 }
 0x2ca   :  { %1207 = vrot.lane.b32.xlu1 %v1196_v7, %s4579_s27  ;;  %v5135_v62 = vpop.permute.xlu1 %1137 }
 0x2cb   :  { %1205 = vrot.lane.b32.xlu0 %v1195_v49, %s4579_s27 }
 0x2ce   :  { %1211 = vrot.lane.b32.xlu1 %v1198_v18, %s4579_s27 }
 0x2cf   :  { %1209 = vrot.lane.b32.xlu0 %v1197_v29, %s4579_s27 }
 0x2d2   :  { %1287 = vrot.lane.b32.xlu1 %v1281_v24, %s4582_s22 }
 0x2d3   :  { %1285 = vrot.lane.b32.xlu0 %v1280_v5, %s4582_s22 }
 0x2d6   :  { %1361 = vrot.lane.b32.xlu1 %v1351_v9, %s6768_s6 }
 0x2d7   :  { %1289 = vrot.lane.b32.xlu0 %v1282_v25, %s4582_s22  ;;  %v732_v25 = vld [vmem:[#allocation2 + $0x8] sm:$0xf] }
 0x2da   :  { %1365 = vrot.lane.b32.xlu1 %v1353_v38, %s6768_s6 }
 0x2db   :  { %1291 = vrot.lane.b32.xlu0 %v1283_v39, %s4582_s22 }
 0x2de   :  { %1399 = vrot.lane.b32.xlu1 %v4941_v42, %s4577_s3  ;;  %v759_v42 = vpop.permute.xlu0 %758 }
 0x2df   :  { %1363 = vrot.lane.b32.xlu0 %v1352_v58, %s6768_s6  ;;  %v764_v32 = vsel %vm762_vm11, %v757_v63, %v759_v42 }
 0x2e2   :  { %1403 = vrot.lane.b32.xlu1 %v4944_v44, %s4577_s3  ;;  %v761_v48 = vpop.permute.xlu0 %760  ;;  %v5137_v44 = vpop.permute.xlu1 %1293 }
 0x2e3   :  { %1367 = vrot.lane.b32.xlu0 %v1354_v43, %s6768_s6  ;;  %v765_v39 = vsel %vm762_vm11, %v759_v42, %v761_v48  ;;  %v772_v43 = vmul.f32 %v763_v27, %v732_v25 }
 0x2e4   :  { %v774_v0 = vmul.f32 %v765_v39, %v734_v36 }
 0x2e6   :  { %v914_v52 = vpop.permute.xlu0 %913 }
 0x2e7   :  { %1401 = vrot.lane.b32.xlu0 %v4953_v47, %s4577_s3 }
 0x2ea   :  { %v5133_v54 = vpop.permute.xlu0 %1213 }
 0x2ee   :  { %v5139_v1 = vpop.permute.xlu0 %1397 }
 0x314   :  { %v840_v47 = vpop.permute.xlu1 %839 }
 0x315   :  { %v842_v11 = vpop.permute.xlu0 %841  ;;  %v848_v19 = vsel %vm847_vm6, %v838_v50, %v840_v47  ;;  %v773_v50 = vmul.f32 %v764_v32, %v733_v26 }
 0x316   :  { %v857_v24 = vadd.f32 %v848_v19, %v771_v33  ;;  %v849_v58 = vsel %vm847_vm6, %v840_v47, %v842_v11  ;;  %v775_v33 = vmul.f32 %v761_v48, %v735_v40 }
 0x317   :  { %v858_v19 = vadd.f32 %v849_v58, %v772_v43 }
 0x318   :  { %v844_v13 = vpop.permute.xlu1 %843 }
 0x319   :  { %v916_v15 = vpop.permute.xlu0 %915 }
 0x31a   :  { %v924_v22 = vsel %vm923_vm10, %v914_v52, %v916_v15  ;;  %v850_v52 = vsel %vm847_vm6, %v842_v11, %v844_v13 }
 0x31b   :  { %v933_v59 = vadd.f32 %v924_v22, %v857_v24 }
 0x31c   :  { %v846_v16 = vpop.permute.xlu1 %845 }
 0x31d   :  { %v920_v6 = vpop.permute.xlu0 %919  ;;  %v851_v22 = vsel %vm847_vm6, %v844_v13, %v846_v16  ;;  %v861_v11 = vadd.f32 %v846_v16, %v775_v33 }
 0x31e   :  { %v860_v26 = vadd.f32 %v851_v22, %v774_v0 }
 0x320   :  { %v918_v46 = vpop.permute.xlu1 %917 }
 0x321   :  { %v5141_v7 = vpop.permute.xlu0 %921  ;;  %v925_v63 = vsel %vm923_vm10, %v916_v15, %v918_v46  ;;  %v926_v47 = vsel %vm923_vm10, %v918_v46, %v920_v6 }
 0x322   :  { %v927_v15 = vsel %vm923_vm10, %v920_v6, %v5141_v7 }
 0x324   :  { %v996_v49 = vpop.permute.xlu1 %995 }
 0x325   :  { %v998_v28 = vpop.permute.xlu0 %997  ;;  %v1003_v5 = vsel %vm813_vm4, %v994_v14, %v996_v49 }
 0x326   :  { %v1012_v53 = vadd.f32 %v1003_v5, %v933_v59  ;;  %v1004_v24 = vsel %vm813_vm4, %v996_v49, %v998_v28  ;;  %v859_v59 = vadd.f32 %v850_v52, %v773_v50 }
 0x328   :  { %v5143_v17 = vpop.permute.xlu1 %999  ;;  %v935_v46 = vadd.f32 %v926_v47, %v859_v59 }
 0x329   :  { %v1053_v2 = vpop.permute.xlu0 %1052  ;;  %v1005_v48 = vsel %vm813_vm4, %v998_v28, %v5143_v17 }
 0x32a   :  { %v1068_v10 = vadd.f32 %v1053_v2, %v1012_v53  ;;  %v934_v53 = vadd.f32 %v925_v63, %v858_v19  ;;  %v1014_v39 = vadd.f32 %v1005_v48, %v935_v46 }
 0x32c   :  { %v5145_v4 = vpop.permute.xlu1 %1001  ;;  %v1013_v27 = vadd.f32 %v1004_v24, %v934_v53 }
 0x32d   :  { %v5147_v31 = vpop.permute.xlu0 %1056  ;;  %v1006_v16 = vsel %vm813_vm4, %v5143_v17, %v5145_v4 }
 0x330   :  { %v5149_v35 = vpop.permute.xlu1 %1054 }
 0x331   :  { %v5151_v8 = vpop.permute.xlu0 %1129  ;;  %v1060_v25 = vsel %vm762_vm11, %v1053_v2, %v5149_v35  ;;  %v1061_v6 = vsel %vm762_vm11, %v5149_v35, %v5147_v31  ;;  %v936_v2 = vadd.f32 %v927_v15, %v860_v26 }
 0x332   :  { %v1149_v41 = vadd.f32 %v5151_v8, %v1068_v10  ;;  %v937_v10 = vadd.f32 %v5141_v7, %v861_v11  ;;  %v1069_v36 = vadd.f32 %v1060_v25, %v1013_v27 }
 0x334   :  { %v5153_v18 = vpop.permute.xlu1 %1058  ;;  %v1016_v40 = vadd.f32 %v5145_v4, %v937_v10 }
 0x335   :  { %v5155_v29 = vpop.permute.xlu0 %1133  ;;  %v1062_v7 = vsel %vm762_vm11, %v5147_v31, %v5153_v18 }
 0x338   :  { %v5158_v12 = vpop.permute.xlu1 %1131 }
 0x339   :  { %v5161_v23 = vpop.permute.xlu0 %1135  ;;  %v1140_v28 = vsel %vm1139_vm12, %v5151_v8, %v5158_v12  ;;  %v1141_v17 = vsel %vm1139_vm12, %v5158_v12, %v5155_v29  ;;  %v1070_v8 = vadd.f32 %v1061_v6, %v1014_v39 }
 0x33a   :  { %v1150_v43 = vadd.f32 %v1140_v28, %v1069_v36  ;;  %v1142_v4 = vsel %vm1139_vm12, %v5155_v29, %v5161_v23  ;;  %v1143_v31 = vsel %vm1139_vm12, %v5161_v23, %v5135_v62 }
 0x33b   :  { %v1151_v19 = vadd.f32 %v1141_v17, %v1070_v8 }
 0x33c   :  { %v5164_v9 = vpop.permute.xlu1 %1207 }
 0x33d   :  { %v1206_v51 = vpop.permute.xlu0 %1205 }
 0x33e   :  { %v1225_v14 = vadd.f32 %v1206_v51, %v1149_v41  ;;  %v1216_v35 = vsel %vm1215_vm13, %v1206_v51, %v5164_v9  ;;  %v1015_v41 = vadd.f32 %v1006_v16, %v936_v2 }
 0x33f   :  { %v1226_v33 = vadd.f32 %v1216_v35, %v1150_v43 }
 0x340   :  { %v5168_v38 = vpop.permute.xlu1 %1211  ;;  %v1071_v63 = vadd.f32 %v1062_v7, %v1015_v41  ;;  %v1419_v7 = vld [vmem:[%s6753_s9] sm:$0xff] }
 0x341   :  { %v5171_v55 = vpop.permute.xlu0 %1209  ;;  %v1219_v29 = vsel %vm1215_vm13, %v5168_v38, %v5133_v54 }
 0x342   :  { %v1217_v12 = vsel %vm1215_vm13, %v5164_v9, %v5171_v55  ;;  %v1218_v62 = vsel %vm1215_vm13, %v5171_v55, %v5168_v38  ;;  %v1152_v9 = vadd.f32 %v1142_v4, %v1071_v63 }
 0x344   :  { %v1288_v3 = vpop.permute.xlu1 %1287  ;;  %v1228_v11 = vadd.f32 %v1218_v62, %v1152_v9 }
 0x345   :  { %v1286_v42 = vpop.permute.xlu0 %1285 }
 0x346   :  { %v1305_v5 = vadd.f32 %v1286_v42, %v1225_v14  ;;  %v1296_v51 = vsel %vm1295_vm14, %v1286_v42, %v1288_v3  ;;  %v1072_v14 = vadd.f32 %v5153_v18, %v1016_v40  ;;  %v1227_v42 = vadd.f32 %v1217_v12, %v1151_v19 }
 0x347   :  { %v1306_v47 = vadd.f32 %v1296_v51, %v1226_v33 }
 0x348   :  { %v1362_v13 = vpop.permute.xlu1 %1361  ;;  %v1153_v22 = vadd.f32 %v1143_v31, %v1072_v14  ;;  %v5259_v31 = vld [vmem:[#allocation2 + $0x28] sm:$0xff] }
 0x349   :  { %v1381_v49 = vadd.f32 %v1362_v13, %v1305_v5  ;;  %v1290_v32 = vpop.permute.xlu0 %1289 }
 0x34a   :  { %v1297_v23 = vsel %vm1295_vm14, %v1288_v3, %v1290_v32  ;;  %v1229_v53 = vadd.f32 %v1219_v29, %v1153_v22 }
 0x34b   :  { %v1392_v58 = vadd.f32 %v5129_v30, %v1381_v49  ;;  %v1307_v15 = vadd.f32 %v1297_v23, %v1227_v42 }
 0x34c   :  { %v1366_v50 = vpop.permute.xlu1 %1365 }
 0x34d   :  { %v1292_v52 = vpop.permute.xlu0 %1291  ;;  %v1413_v0 = vsub.f32 %v1392_v58, %v5139_v1 }
 0x34e   :  { %v1298_v18 = vsel %vm1295_vm14, %v1290_v32, %v1292_v52  ;;  %v1299_v5 = vsel %vm1295_vm14, %v1292_v52, %v5137_v44 }
 0x34f   :  { %1430 = vrot.lane.b32.xlu0 %v1413_v0, %s4576_s28  ;;  %v1308_v3 = vadd.f32 %v1298_v18, %v1228_v11  ;;  %v1309_v48 = vadd.f32 %v1299_v5, %v1229_v53  ;;  %v5293_v11 = vld [vmem:[%s6798_s21 + $0x3] ss:$8 sm:$0xf] }
 0x350   :  { %v1400_v38 = vpop.permute.xlu1 %1399 }
 0x351   :  { %v1364_v24 = vpop.permute.xlu0 %1363  ;;  %v1405_v27 = vsel %vm762_vm11, %v5139_v1, %v1400_v38 }
 0x352   :  { %v1372_v59 = vsel %vm1371_vm15, %v1362_v13, %v1364_v24  ;;  %v1373_v54 = vsel %vm1371_vm15, %v1364_v24, %v1366_v50  ;;  %v5272_v24 = vld [vmem:[%s6798_s21 + $0x1] ss:$8 sm:$0xf] }
 0x353   :  { %v1382_v55 = vadd.f32 %v1372_v59, %v1306_v47  ;;  %v1383_v25 = vadd.f32 %v1373_v54, %v1307_v15  ;;  %v1624_v47 = vld [vmem:[%s6755_s10] sm:$0xff]  ;;  %v2017_v18 = vrot.slane %v5272_v24, %v4742_v21  ;;  %v2025_v5 = vrot.slane %v5272_v24, %v4740_v20 }
 0x354   :  { %v1404_v2 = vpop.permute.xlu1 %1403  ;;  %v5282_v59 = vld [vmem:[%s6798_s21 + $0x2] ss:$8 sm:$0xf]  ;;  %v2163_v15 = vrot.slane %v5293_v11, %v4742_v21 }
 0x355   :  { %v1368_v26 = vpop.permute.xlu0 %1367  ;;  %v1393_v46 = vadd.f32 %v5129_v30, %v1382_v55  ;;  %v1394_v28 = vadd.f32 %v5129_v30, %v1383_v25  ;;  %v2090_v54 = vrot.slane %v5282_v59, %v4742_v21  ;;  %v2098_v53 = vrot.slane %v5282_v59, %v4740_v20  ;;  %v5304_v55 = vld [vmem:[%s6798_s21 + $0x5] ss:$8 sm:$0xf]  ;;  %v5315_v25 = vld [vmem:[%s6798_s21 + $0x6] ss:$8 sm:$0xf] }
 0x356   :  { %v1374_v44 = vsel %vm1371_vm15, %v1366_v50, %v1368_v26  ;;  %v1375_v13 = vsel %vm1371_vm15, %v1368_v26, %v5131_v45  ;;  %v2368_v26 = vrot.slane %v5315_v25, %v4784_v34 }
 0x357   :  { %v1384_v49 = vadd.f32 %v1374_v44, %v1308_v3  ;;  %v1385_v32 = vadd.f32 %v1375_v13, %v1309_v48  ;;  %v1414_v10 = vsub.f32 %v1393_v46, %v1405_v27  ;;  %v2291_v3 = vrot.slane %v5304_v55, %v4742_v21  ;;  %v5326_v27 = vld [vmem:[%s6798_s21 + $0x7] ss:$8 sm:$0xf] }
 0x358   :  { %v2299_v48 = vrot.slane %v5304_v55, %v4740_v20  ;;  %v2303_v46 = vrot.slane %v5304_v55, %v4792_v37  ;;  %v2441_v44 = vrot.slane %v5326_v27, %v4784_v34  ;;  %v2376_v13 = vrot.slane %v5315_v25, %v4792_v37 }
 0x359   :  { %1432 = vrot.lane.b32.xlu0 %v1414_v10, %s4576_s28  ;;  %v1402_v16 = vpop.permute.xlu0 %1401  ;;  %v1396_v6 = vadd.f32 %v5129_v30, %v1385_v32  ;;  %v1395_v58 = vadd.f32 %v5129_v30, %v1384_v49  ;;  %v1418_v30 = vld [vmem:[%s6754_s8] sm:$0xff]  ;;  %v2449_v10 = vrot.slane %v5326_v27, %v4792_v37 }
 0x35a   :  { %v1406_v39 = vsel %vm762_vm11, %v1400_v38, %v1402_v16  ;;  %v1407_v40 = vsel %vm762_vm11, %v1402_v16, %v1404_v2  ;;  %v2171_v38 = vrot.slane %v5293_v11, %v4740_v20  ;;  %v5337_v49 = vld [vmem:[%s6798_s21 + $0x20] ss:$8 sm:$0xf] }
 0x35b   :  { %v1417_v36 = vsub.f32 %v1396_v6, %v1404_v2  ;;  %v1415_v1 = vsub.f32 %v1394_v28, %v1406_v39  ;;  %v1416_v45 = vsub.f32 %v1395_v58, %v1407_v40  ;;  %v2514_v32 = vrot.slane %v5337_v49, %v4784_v34  ;;  %v5348_v16 = vld [vmem:[%s6798_s21] ss:$8 sm:$0xf] }
 0x35c   :  { %v1968_v6 = vrot.slane %v5348_v16, %v4742_v21  ;;  %v1976_v28 = vrot.slane %v5348_v16, %v4740_v20  ;;  %v1980_v2 = vrot.slane %v5348_v16, %v4792_v37 }
 0x35d   :  { %1438 = vrot.lane.b32.xlu0 %v1417_v36, %s4576_s28  ;;  %1434 = vrot.lane.b32.xlu1 %v1415_v1, %s4576_s28 }
 0x361   :  { %1436 = vrot.lane.b32.xlu1 %v1416_v45, %s4576_s28 }
 0x365   :  { %1422 = vperm.xlu1 %4550, %v1419_v7  }
 0x3c1   :  { %v1431_v17 = vpop.permute.xlu0 %1430 }
 0x3cb   :  { %v1433_v35 = vpop.permute.xlu0 %1432 }
 0x3cc   :  { %v1440_v43 = vsel %vm1342_vm9, %v1431_v17, %v1433_v35 }
 0x3cf   :  { %v1435_v41 = vpop.permute.xlu1 %1434  ;;  %v1439_v50 = vpop.permute.xlu0 %1438 }
 0x3d0   :  { %v1441_v8 = vsel %vm1342_vm9, %v1433_v35, %v1435_v41 }
 0x3d1   :  { %4438 = vmatprep.subr.msk.mxu0 %vm508_vm2, %v1441_v8 }
 0x3d2   :  { %4439 = vmatpush1.msk.msra.mxu0 %vm508_vm2, %v1440_v43 }
 0x3d3   :  { %v1437_v52 = vpop.permute.xlu1 %1436  ;;  %4440 = vmatmul.mubr.msk.f32.vlgmr.msra.gmra.mrb[14].mxu0 %vm492_vm3, %v1418_v30 }
 0x3d4   :  { %v1442_v0 = vsel %vm1342_vm9, %v1435_v41, %v1437_v52  ;;  %v1443_v4 = vsel %vm1342_vm9, %v1437_v52, %v1439_v50  ;;  %1748 = vmatprep.mubr.f32.mxu0 %v5259_v31 }
 0x3d5   :  { %4441 = vmatprep.subr.msk.mxu1 %vm508_vm2, %v1443_v4 }
 0x3d6   :  { %4442 = vmatpush1.msk.msra.mxu1 %vm508_vm2, %v1442_v0 }
 0x3d7   :  { %4443 = vmatmul.mubr.msk.f32.vlgmr.msra.gmra.mrb[14].mxu1 %vm492_vm3, %v1418_v30 }
 0x3d8   :  { %1867 = vmatprep.mubr.f32.mxu1 %v5259_v31 }
 0x3e4   :  { %v1423_v12 = vpop.permute.xlu1 %1422 }
 0x4a6   :  { %v1521_v51 = vpop.f32.mrb[14].mxu0 }
 0x4a7   :  { %v1522_v63 = vadd.f32 %v1521_v51, %v1423_v12  ;;  %v1523_v14 = vpop.f32.mrb[15].mxu0 }
 0x4a8   :  { %v1524_v19 = vadd.f32 %v1523_v14, %v1423_v12 }
 0x4aa   :  { %v1597_v33 = vadd.f32 %v1524_v19, %v1522_v63  ;;  %v1592_v29 = vpop.f32.mrb[14].mxu1 }
 0x4ab   :  { %v1593_v62 = vadd.f32 %v1592_v29, %v1423_v12  ;;  %v1594_v23 = vpop.f32.mrb[15].mxu1  ;;  %v2029_v29 = vrot.slane %v5272_v24, %v4792_v37 }
 0x4ac   :  { %v1595_v9 = vadd.f32 %v1594_v23, %v1423_v12  ;;  %v2094_v23 = vrot.slane %v5282_v59, %v4784_v34 }
 0x4ad   :  { %v1598_v22 = vadd.f32 %v1597_v33, %v1593_v62 }
 0x4af   :  { %v1599_v42 = vadd.f32 %v1598_v22, %v1595_v9  ;;  %v2102_v22 = vrot.slane %v5282_v59, %v4792_v37  ;;  %v2295_v59 = vrot.slane %v5304_v55, %v4784_v34  ;;  %v2445_v55 = vrot.slane %v5326_v27, %v4740_v20 }
 0x4b1   :  { %1600 = vadd.xlane.f32.xlu0 %v1599_v42 }
 0x4c7   :  { %1627 = vperm.xlu0 %4549, %v1624_v47   ;;  %v2167_v47 = vrot.slane %v5293_v11, %v4784_v34 }
 0x4cb   :  { %2030 = vrot.lane.b32.xlu0 %v2017_v18, %s4570_s24  ;;  %v2175_v18 = vrot.slane %v5293_v11, %v4792_v37  ;;  %v2372_v11 = vrot.slane %v5315_v25, %v4740_v20 }
 0x4cf   :  { %2034 = vrot.lane.b32.xlu0 %v2025_v5, %s4570_s24 }
 0x4d3   :  { %2103 = vrot.lane.b32.xlu0 %v2090_v54, %s4571_s2 }
 0x4d7   :  { %2107 = vrot.lane.b32.xlu0 %v2098_v53, %s4571_s2 }
 0x4db   :  { %2176 = vrot.lane.b32.xlu0 %v2163_v15, %s4572_s26  ;;  %v2364_v15 = vrot.slane %v5315_v25, %v4742_v21  ;;  %v2522_v25 = vrot.slane %v5337_v49, %v4792_v37 }
 0x4df   :  { %2180 = vrot.lane.b32.xlu0 %v2171_v38, %s4572_s26  ;;  %v2437_v38 = vrot.slane %v5326_v27, %v4742_v21 }
 0x4e3   :  { %2304 = vrot.lane.b32.xlu0 %v2291_v3, %s4573_s1  ;;  %v2510_v3 = vrot.slane %v5337_v49, %v4742_v21 }
 0x4e7   :  { %2308 = vrot.lane.b32.xlu0 %v2299_v48, %s4573_s1  ;;  %v2518_v48 = vrot.slane %v5337_v49, %v4740_v20 }
 0x4eb   :  { %2379 = vrot.lane.b32.xlu0 %v2368_v26, %s4574_s0  ;;  %v1972_v26 = vrot.slane %v5348_v16, %v4784_v34 }
 0x4ef   :  { %2310 = vrot.lane.b32.xlu0 %v2303_v46, %s4573_s1 }
 0x4f3   :  { %2452 = vrot.lane.b32.xlu0 %v2441_v44, %s4575_s25  ;;  %v2573_v44 = vld [vmem:[%s6757_s13] sm:$0xff]  ;;  %s6800_s13 = smov 94  }
 0x4f7   :  { %2383 = vrot.lane.b32.xlu0 %v2376_v13, %s4574_s0 }
 0x4fb   :  { %2525 = vrot.lane.b32.xlu0 %v2514_v32, %s4576_s28 }
 0x4ff   :  { %2456 = vrot.lane.b32.xlu0 %v2449_v10, %s4575_s25 }
 0x503   :  { %1981 = vrot.lane.b32.xlu0 %v1968_v6, %s4577_s3 }
 0x507   :  { %1985 = vrot.lane.b32.xlu0 %v1976_v28, %s4577_s3 }
 0x50b   :  { %1987 = vrot.lane.b32.xlu0 %v1980_v2, %s4577_s3 }
 0x53e   :  { %v1601_v39 = vpop.xlane.xlu0 %1600 }
 0x53f   :  { %v1603_v36 = vmul.f32 0.001953125, %v1601_v39 }
 0x541   :  { %v5360_v1 = vsub.f32 %v1522_v63, %v1603_v36  ;;  %v5362_v58 = vsub.f32 %v1524_v19, %v1603_v36  ;;  %v5364_v40 = vsub.f32 %v1593_v62, %v1603_v36  ;;  %v5366_v45 = vsub.f32 %v1595_v9, %v1603_v36  ;;  %v1634_v63 = vld [vmem:[%s6756_s11] sm:$0xff] }
 0x542   :  { %v2021_v19 = vrot.slane %v5272_v24, %v4784_v34 }
 0x543   :  { %v1608_v7 = vmul.f32 %v5360_v1, %v5360_v1  ;;  %v1609_v17 = vmul.f32 %v5362_v58, %v5362_v58  ;;  %v1610_v35 = vmul.f32 %v5364_v40, %v5364_v40  ;;  %v1611_v30 = vmul.f32 %v5366_v45, %v5366_v45 }
 0x545   :  { %v1612_v41 = vadd.f32 %v1609_v17, %v1608_v7 }
 0x546   :  { %v5374_v8 = vpop.permute.xlu0 %1627 }
 0x547   :  { %v1613_v43 = vadd.f32 %v1612_v41, %v1610_v35 }
 0x549   :  { %v1614_v50 = vadd.f32 %v1613_v43, %v1611_v30 }
 0x54a   :  { %v5378_v52 = vpop.permute.xlu0 %2030 }
 0x54b   :  { %1615 = vadd.xlane.f32.xlu1 %v1614_v50  ;;  %v2046_v46 = vmul.f32 %v5259_v31, %v5378_v52 }
 0x54e   :  { %v5380_v0 = vpop.permute.xlu0 %2034 }
 0x552   :  { %v5382_v4 = vpop.permute.xlu0 %2103 }
 0x553   :  { %v2119_v12 = vmul.f32 %v5259_v31, %v5382_v4 }
 0x555   :  { %2129 = vrot.lane.b32.xlu0 %v2119_v12, %s4578_s4 }
 0x556   :  { %v5387_v51 = vpop.permute.xlu0 %2107 }
 0x55a   :  { %v5392_v14 = vpop.permute.xlu0 %2176 }
 0x55b   :  { %v2192_v27 = vmul.f32 %v5259_v31, %v5392_v14 }
 0x55c   :  { %1637 = vperm.xlu1 %4550, %v1634_v63  }
 0x55e   :  { %v5396_v33 = vpop.permute.xlu0 %2180 }
 0x560   :  { %2032 = vrot.lane.b32.xlu1 %v2021_v19, %s4570_s24 }
 0x562   :  { %v5401_v62 = vpop.permute.xlu0 %2304 }
 0x564   :  { %2036 = vrot.lane.b32.xlu1 %v2029_v29, %s4570_s24 }
 0x566   :  { %v5406_v9 = vpop.permute.xlu0 %2308 }
 0x568   :  { %2105 = vrot.lane.b32.xlu1 %v2094_v23, %s4571_s2 }
 0x56a   :  { %v5411_v42 = vpop.permute.xlu0 %2379 }
 0x56c   :  { %2109 = vrot.lane.b32.xlu1 %v2102_v22, %s4571_s2 }
 0x56e   :  { %v5416_v24 = vpop.permute.xlu0 %2310 }
 0x56f   :  { %v2324_v49 = vmul.f32 %v5259_v31, %v5416_v24 }
 0x570   :  { %2178 = vrot.lane.b32.xlu1 %v2167_v47, %s4572_s26 }
 0x572   :  { %v5421_v5 = vpop.permute.xlu0 %2452 }
 0x574   :  { %2182 = vrot.lane.b32.xlu1 %v2175_v18, %s4572_s26 }
 0x576   :  { %v5426_v54 = vpop.permute.xlu0 %2383 }
 0x577   :  { %v2397_v53 = vmul.f32 %v5259_v31, %v5426_v54 }
 0x578   :  { %2306 = vrot.lane.b32.xlu1 %v2295_v59, %s4573_s1  ;;  %v1648_v59 = vld [vmem:[%s6758_s12] sm:$0xff] }
 0x579   :  { %2411 = vrot.lane.b32.xlu0 %v2397_v53, %s4579_s27 }
 0x57a   :  { %v5467_v13 = vpop.permute.xlu0 %2525 }
 0x57c   :  { %2377 = vrot.lane.b32.xlu1 %v2364_v15, %s4574_s0  ;;  %v1650_v15 = vld [vmem:[%s6758_s12 + $0x10] sm:$0xff] }
 0x57d   :  { %2588 = vrot.lane.b32.xlu0 %v4847_v60, %s4577_s3 }
 0x57e   :  { %v5471_v32 = vpop.permute.xlu0 %2456 }
 0x57f   :  { %v2470_v10 = vmul.f32 %v5259_v31, %v5471_v32 }
 0x580   :  { %2381 = vrot.lane.b32.xlu1 %v2372_v11, %s4574_s0 }
 0x584   :  { %2450 = vrot.lane.b32.xlu1 %v2437_v38, %s4575_s25  ;;  %v1651_v38 = vld [vmem:[%s6758_s12 + $0x18] sm:$0xff] }
 0x588   :  { %2454 = vrot.lane.b32.xlu1 %v2445_v55, %s4575_s25 }
 0x58c   :  { %2523 = vrot.lane.b32.xlu1 %v2510_v3, %s4576_s28  ;;  %v1652_v3 = vld [vmem:[%s6758_s12 + $0x20] sm:$0xff] }
 0x590   :  { %2527 = vrot.lane.b32.xlu1 %v2518_v48, %s4576_s28 }
 0x594   :  { %2529 = vrot.lane.b32.xlu1 %v2522_v25, %s4576_s28  ;;  %v1653_v25 = vld [vmem:[%s6758_s12 + $0x28] sm:$0xff] }
 0x598   :  { %1983 = vrot.lane.b32.xlu1 %v1972_v26, %s4577_s3 }
 0x59c   :  { %2056 = vrot.lane.b32.xlu1 %v2046_v46, %s4572_s26  ;;  %v1654_v46 = vld [vmem:[%s6758_s12 + $0x30] sm:$0xff] }
 0x5a0   :  { %2202 = vrot.lane.b32.xlu1 %v2192_v27, %s4570_s24 }
 0x5a4   :  { %2576 = vperm.xlu1 %4550, %v2573_v44   ;;  %v1655_v44 = vld [vmem:[%s6758_s12 + $0x38] sm:$0xff] }
 0x5a8   :  { %2338 = vrot.lane.b32.xlu1 %v2324_v49, %s4581_s7 }
 0x5ac   :  { %2484 = vrot.lane.b32.xlu1 %v2470_v10, %s4582_s22  ;;  %v1656_v10 = vld [vmem:[%s6758_s12 + $0x40] sm:$0xff] }
 0x5d8   :  { %v1616_v16 = vpop.xlane.xlu1 %1615 }
 0x5d9   :  { %v1617_v6 = vmul.f32 0.001953125, %v1616_v16 }
 0x5db   :  { %v1618_v28 = vadd.f32 1e-05, %v1617_v6 }
 0x5dc   :  { %v1638_v2 = vpop.permute.xlu1 %1637 }
 0x5dd   :  { %4551 = vrsqrt.f32 %v1618_v28 }
 0x5e0   :  { %v5477_v39 = vpop.permute.xlu1 %2032 }
 0x5e4   :  { %v5479_v36 = vpop.permute.xlu1 %2036 }
 0x5e7   :  { %v4552_v7 = vpop.eup %4551 }
 0x5e8   :  { %v1620_v17 = vmul.f32 %v4552_v7, %v5360_v1  ;;  %v1622_v35 = vmul.f32 %v4552_v7, %v5364_v40  ;;  %v5483_v41 = vpop.permute.xlu1 %2105  ;;  %v1621_v30 = vmul.f32 %v4552_v7, %v5362_v58  ;;  %v1623_v43 = vmul.f32 %v4552_v7, %v5366_v45 }
 0x5ea   :  { %v1630_v50 = vmul.f32 %v5374_v8, %v1620_v17  ;;  %v1632_v12 = vmul.f32 %v5374_v8, %v1622_v35  ;;  %v1631_v63 = vmul.f32 %v5374_v8, %v1621_v30  ;;  %v1633_v19 = vmul.f32 %v5374_v8, %v1623_v43 }
 0x5eb   :  { %v2038_v30 = vsel %vm813_vm4, %v5378_v52, %v5477_v39  ;;  %v2111_v52 = vsel %vm894_vm5, %v5382_v4, %v5483_v41 }
 0x5ec   :  { %v1640_v29 = vadd.f32 %v1638_v2, %v1630_v50  ;;  %v1642_v23 = vadd.f32 %v1638_v2, %v1632_v12  ;;  %v5491_v22 = vpop.permute.xlu1 %2109  ;;  %v1641_v1 = vadd.f32 %v1638_v2, %v1631_v63  ;;  %v1643_v40 = vadd.f32 %v1638_v2, %v1633_v19 }
 0x5ed   :  { %v2039_v12 = vsel %vm813_vm4, %v5477_v39, %v5380_v0 }
 0x5ee   :  { %v1645_v47 = vadd.f32 %v1641_v1, %v4843_v57  ;;  %v1647_v58 = vadd.f32 %v1643_v40, %v4849_v61  ;;  %v1644_v45 = vadd.f32 %v1640_v29, %v4847_v60  ;;  %v1646_v18 = vadd.f32 %v1642_v23, %v4841_v56  ;;  %v1649_v60 = vld [vmem:[%s6758_s12 + $0x8] sm:$0xff] }
 0x5ef   :  { %v2040_v1 = vsel %vm813_vm4, %v5380_v0, %v5479_v36  ;;  %v2113_v0 = vsel %vm894_vm5, %v5387_v51, %v5491_v22 }
 0x5f0   :  { %v5500_v53 = vpop.permute.xlu1 %2178  ;;  %1684 = vmatprep.subr.mxu0 %v1645_v47  ;;  %1803 = vmatprep.subr.mxu1 %v1647_v58 }
 0x5f1   :  { %1685 = vmatpush1.msra.mxu0 %v1644_v45  ;;  %1804 = vmatpush1.msra.mxu1 %v1646_v18 }
 0x5f2   :  { %4444 = vmatmul.mubr.msk.f32.vlgmr.msra.gmra.mrb[16].mxu0 %vm341_vm1, %v1648_v59  ;;  %4453 = vmatmul.mubr.msk.f32.vlgmr.msra.gmra.mrb[16].mxu1 %vm341_vm1, %v1648_v59 }
 0x5f3   :  { %1754 = vmatprep.mubr.f32.mxu0 %v5259_v31  ;;  %1873 = vmatprep.mubr.f32.mxu1 %v5259_v31 }
 0x5f4   :  { %v5509_v8 = vpop.permute.xlu1 %2182 }
 0x5f6   :  { %4445 = vmatmul.mubr.msk.f32.gmra.mrb[18].mxu0 %vm341_vm1, %v1649_v60  ;;  %4454 = vmatmul.mubr.msk.f32.gmra.mrb[18].mxu1 %vm341_vm1, %v1649_v60 }
 0x5f7   :  { %1760 = vmatprep.mubr.f32.mxu0 %v5259_v31  ;;  %1879 = vmatprep.mubr.f32.mxu1 %v5259_v31 }
 0x5f8   :  { %v5518_v11 = vpop.permute.xlu1 %2306 }
 0x5fa   :  { %4446 = vmatmul.mubr.msk.f32.gmra.mrb[20].mxu0 %vm341_vm1, %v1650_v15  ;;  %4455 = vmatmul.mubr.msk.f32.gmra.mrb[20].mxu1 %vm341_vm1, %v1650_v15 }
 0x5fb   :  { %1766 = vmatprep.mubr.f32.mxu0 %v5259_v31  ;;  %1885 = vmatprep.mubr.f32.mxu1 %v5259_v31 }
 0x5fc   :  { %v5527_v55 = vpop.permute.xlu1 %2377 }
 0x5fe   :  { %4447 = vmatmul.mubr.msk.f32.gmra.mrb[22].mxu0 %vm341_vm1, %v1651_v38  ;;  %4456 = vmatmul.mubr.msk.f32.gmra.mrb[22].mxu1 %vm341_vm1, %v1651_v38 }
 0x5ff   :  { %1772 = vmatprep.mubr.f32.mxu0 %v5259_v31  ;;  %1891 = vmatprep.mubr.f32.mxu1 %v5259_v31 }
 0x600   :  { %v5536_v48 = vpop.permute.xlu1 %2381 }
 0x602   :  { %4448 = vmatmul.mubr.msk.f32.gmra.mrb[24].mxu0 %vm341_vm1, %v1652_v3  ;;  %4457 = vmatmul.mubr.msk.f32.gmra.mrb[24].mxu1 %vm341_vm1, %v1652_v3 }
 0x603   :  { %1778 = vmatprep.mubr.f32.mxu0 %v5259_v31  ;;  %1897 = vmatprep.mubr.f32.mxu1 %v5259_v31 }
 0x604   :  { %v5545_v26 = vpop.permute.xlu1 %2450 }
 0x606   :  { %4449 = vmatmul.mubr.msk.f32.gmra.mrb[26].mxu0 %vm341_vm1, %v1653_v25  ;;  %4458 = vmatmul.mubr.msk.f32.gmra.mrb[26].mxu1 %vm341_vm1, %v1653_v25  ;;  %v2112_v25 = vsel %vm894_vm5, %v5483_v41, %v5387_v51 }
 0x607   :  { %1784 = vmatprep.mubr.f32.mxu0 %v5259_v31  ;;  %1903 = vmatprep.mubr.f32.mxu1 %v5259_v31 }
 0x608   :  { %v5554_v27 = vpop.permute.xlu1 %2454 }
 0x60a   :  { %4450 = vmatmul.mubr.msk.f32.gmra.mrb[28].mxu0 %vm341_vm1, %v1654_v46  ;;  %4459 = vmatmul.mubr.msk.f32.gmra.mrb[28].mxu1 %vm341_vm1, %v1654_v46 }
 0x60b   :  { %1790 = vmatprep.mubr.f32.mxu0 %v5259_v31  ;;  %1909 = vmatprep.mubr.f32.mxu1 %v5259_v31 }
 0x60c   :  { %v5563_v49 = vpop.permute.xlu1 %2523 }
 0x60e   :  { %4451 = vmatmul.mubr.msk.f32.gmra.mrb[30].mxu0 %vm341_vm1, %v1655_v44  ;;  %4460 = vmatmul.mubr.msk.f32.gmra.mrb[30].mxu1 %vm341_vm1, %v1655_v44 }
 0x60f   :  { %1796 = vmatprep.mubr.f32.mxu0 %v5259_v31  ;;  %1915 = vmatprep.mubr.f32.mxu1 %v5259_v31 }
 0x610   :  { %v5572_v16 = vpop.permute.xlu1 %2527 }
 0x612   :  { %4452 = vmatmul.mubr.msk.f32.gmra.mrb[32].mxu0 %vm341_vm1, %v1656_v10  ;;  %4461 = vmatmul.mubr.msk.f32.gmra.mrb[32].mxu1 %vm341_vm1, %v1656_v10 }
 0x613   :  { %2716 = vmatprep.mubr.f32.mxu0 %v5259_v31  ;;  %2793 = vmatprep.mubr.f32.mxu1 %v5259_v31 }
 0x614   :  { %v5578_v6 = vpop.permute.xlu1 %2529 }
 0x615   :  { %v2543_v28 = vmul.f32 %v5259_v31, %v5578_v6 }
 0x617   :  { %2557 = vrot.lane.b32.xlu1 %v2543_v28, %s6800_s13 }
 0x6c5   :  { %v5583_v2 = vpop.f32.mrb[16].mxu0  ;;  %v5585_v7 = vpop.f32.mrb[16].mxu1 }
 0x6c6   :  { %v5587_v17 = vpop.f32.mrb[17].mxu0  ;;  %v5589_v35 = vpop.f32.mrb[17].mxu1 }
 0x6c9   :  { %v1756_v43 = vpop.f32.mrb[18].mxu0  ;;  %v1875_v50 = vpop.f32.mrb[18].mxu1 }
 0x6ca   :  { %v1758_v63 = vpop.f32.mrb[19].mxu0  ;;  %v1877_v19 = vpop.f32.mrb[19].mxu1  ;;  %v2047_v29 = vmul.f32 %v2038_v30, %v1756_v43  ;;  %v2049_v45 = vmul.f32 %v2040_v1, %v1875_v50  ;;  %v4465_v43 = vld [vmem:[%s6798_s21 + $0x4] ss:$8 sm:$0xf]  ;;  %v2184_v50 = vsel %vm847_vm6, %v5392_v14, %v5500_v53  ;;  %v2186_v14 = vsel %vm847_vm6, %v5396_v33, %v5509_v8 }
 0x6cb   :  { %v2048_v23 = vmul.f32 %v2039_v12, %v1758_v63  ;;  %v2050_v38 = vmul.f32 %v5479_v36, %v1877_v19  ;;  %v2235_v12 = vrot.slane %v4465_v43, %v4742_v21  ;;  %v2185_v63 = vsel %vm847_vm6, %v5500_v53, %v5396_v33 }
 0x6cc   :  { %2058 = vrot.lane.b32.xlu1 %v2047_v29, %s4572_s26 }
 0x6cd   :  { %v1762_v40 = vpop.f32.mrb[20].mxu0  ;;  %v1881_v47 = vpop.f32.mrb[20].mxu1  ;;  %2060 = vrot.lane.b32.xlu0 %v2048_v23, %s4572_s26 }
 0x6ce   :  { %v1764_v58 = vpop.f32.mrb[21].mxu0  ;;  %v1883_v39 = vpop.f32.mrb[21].mxu1  ;;  %v2120_v18 = vmul.f32 %v2111_v52, %v1762_v40  ;;  %v2122_v3 = vmul.f32 %v2113_v0, %v1881_v47  ;;  %v2243_v47 = vrot.slane %v4465_v43, %v4740_v20 }
 0x6cf   :  { %v2121_v30 = vmul.f32 %v2112_v25, %v1764_v58  ;;  %v2123_v36 = vmul.f32 %v5491_v22, %v1883_v39 }
 0x6d0   :  { %2062 = vrot.lane.b32.xlu1 %v2049_v45, %s4572_s26 }
 0x6d1   :  { %v1768_v59 = vpop.f32.mrb[22].mxu0  ;;  %v1887_v60 = vpop.f32.mrb[22].mxu1  ;;  %2131 = vrot.lane.b32.xlu0 %v2120_v18, %s4578_s4 }
 0x6d2   :  { %v1770_v15 = vpop.f32.mrb[23].mxu0  ;;  %v1889_v4 = vpop.f32.mrb[23].mxu1  ;;  %v2193_v23 = vmul.f32 %v2184_v50, %v1768_v59  ;;  %v2195_v53 = vmul.f32 %v2186_v14, %v1887_v60 }
 0x6d3   :  { %v2194_v22 = vmul.f32 %v2185_v63, %v1770_v15  ;;  %v2196_v33 = vmul.f32 %v5509_v8, %v1889_v4  ;;  %v2313_v8 = vsel %vm1105_vm7, %v5518_v11, %v5406_v9 }
 0x6d4   :  { %2064 = vrot.lane.b32.xlu1 %v2050_v38, %s4572_s26  ;;  %v2239_v38 = vrot.slane %v4465_v43, %v4784_v34 }
 0x6d5   :  { %v1774_v46 = vpop.f32.mrb[24].mxu0  ;;  %v1893_v44 = vpop.f32.mrb[24].mxu1  ;;  %2135 = vrot.lane.b32.xlu0 %v2122_v3, %s4578_s4 }
 0x6d6   :  { %v1776_v10 = vpop.f32.mrb[25].mxu0  ;;  %v1895_v28 = vpop.f32.mrb[25].mxu1  ;;  %v2252_v40 = vmul.f32 %v2235_v12, %v1774_v46  ;;  %v2254_v59 = vmul.f32 %v2243_v47, %v1893_v44 }
 0x6d8   :  { %2133 = vrot.lane.b32.xlu1 %v2121_v30, %s4578_s4  ;;  %v2253_v30 = vmul.f32 %v2239_v38, %v1776_v10  ;;  %v2312_v10 = vsel %vm1105_vm7, %v5401_v62, %v5518_v11 }
 0x6d9   :  { %v1780_v51 = vpop.f32.mrb[26].mxu0  ;;  %v1899_v41 = vpop.f32.mrb[26].mxu1  ;;  %2137 = vrot.lane.b32.xlu0 %v2123_v36, %s4578_s4  ;;  %v2247_v36 = vrot.slane %v4465_v43, %v4792_v37  ;;  %v2314_v43 = vsel %vm1105_vm7, %v5406_v9, %v5416_v24  ;;  %v2386_v9 = vsel %vm1186_vm8, %v5411_v42, %v5536_v48 }
 0x6da   :  { %v1782_v19 = vpop.f32.mrb[27].mxu0  ;;  %v1901_v29 = vpop.f32.mrb[27].mxu1  ;;  %v2320_v50 = vmul.f32 %v5401_v62, %v1780_v51  ;;  %v2322_v44 = vmul.f32 %v2313_v8, %v1899_v41  ;;  %v2387_v62 = vsel %vm1186_vm8, %v5536_v48, %v5426_v54 }
 0x6db   :  { %v2255_v4 = vmul.f32 %v2247_v36, %v1895_v28  ;;  %v2321_v51 = vmul.f32 %v2312_v10, %v1782_v19  ;;  %v2323_v12 = vmul.f32 %v2314_v43, %v1901_v29  ;;  %v2385_v28 = vsel %vm1186_vm8, %v5527_v55, %v5411_v42 }
 0x6dc   :  { %2204 = vrot.lane.b32.xlu1 %v2193_v23, %s4570_s24  ;;  %v2459_v42 = vsel %vm188_vm0, %v5421_v5, %v5554_v27  ;;  %v2532_v23 = vsel %vm1342_vm9, %v5467_v13, %v5572_v16 }
 0x6dd   :  { %v1786_v1 = vpop.f32.mrb[28].mxu0  ;;  %v1905_v52 = vpop.f32.mrb[28].mxu1  ;;  %2206 = vrot.lane.b32.xlu0 %v2194_v22, %s4570_s24 }
 0x6de   :  { %v1788_v58 = vpop.f32.mrb[29].mxu0  ;;  %v1907_v39 = vpop.f32.mrb[29].mxu1  ;;  %v2393_v63 = vmul.f32 %v5527_v55, %v1786_v1  ;;  %v2395_v11 = vmul.f32 %v2386_v9, %v1905_v52  ;;  %v2458_v55 = vsel %vm188_vm0, %v5545_v26, %v5421_v5  ;;  %v2531_v5 = vsel %vm1342_vm9, %v5563_v49, %v5467_v13 }
 0x6df   :  { %v2394_v41 = vmul.f32 %v2385_v28, %v1788_v58  ;;  %v2396_v24 = vmul.f32 %v2387_v62, %v1907_v39  ;;  %v1984_v13 = vpop.permute.xlu1 %1983 }
 0x6e0   :  { %2208 = vrot.lane.b32.xlu1 %v2195_v53, %s4570_s24 }
 0x6e1   :  { %v1792_v45 = vpop.f32.mrb[30].mxu0  ;;  %v1911_v18 = vpop.f32.mrb[30].mxu1  ;;  %2260 = vrot.lane.b32.xlu0 %v2252_v40, %s4577_s3 }
 0x6e2   :  { %v1794_v0 = vpop.f32.mrb[31].mxu0  ;;  %v1913_v15 = vpop.f32.mrb[31].mxu1  ;;  %v2466_v29 = vmul.f32 %v5545_v26, %v1792_v45  ;;  %v2468_v48 = vmul.f32 %v2459_v42, %v1911_v18  ;;  %v2460_v26 = vsel %vm188_vm0, %v5554_v27, %v5471_v32  ;;  %v2533_v32 = vsel %vm1342_vm9, %v5572_v16, %v5578_v6 }
 0x6e3   :  { %v2467_v19 = vmul.f32 %v2458_v55, %v1794_v0  ;;  %v2469_v14 = vmul.f32 %v2460_v26, %v1913_v15  ;;  %v2057_v52 = vpop.permute.xlu1 %2056 }
 0x6e4   :  { %2210 = vrot.lane.b32.xlu1 %v2196_v33, %s4570_s24 }
 0x6e5   :  { %v1798_v3 = vpop.f32.mrb[32].mxu0  ;;  %v1917_v25 = vpop.f32.mrb[32].mxu1  ;;  %2264 = vrot.lane.b32.xlu0 %v2254_v59, %s4577_s3 }
 0x6e6   :  { %v1800_v60 = vpop.f32.mrb[33].mxu0  ;;  %v1919_v46 = vpop.f32.mrb[33].mxu1  ;;  %v2539_v54 = vmul.f32 %v5563_v49, %v1798_v3  ;;  %v2541_v22 = vmul.f32 %v2532_v23, %v1917_v25 }
 0x6e7   :  { %v2540_v1 = vmul.f32 %v2531_v5, %v1800_v60  ;;  %v2542_v27 = vmul.f32 %v2533_v32, %v1919_v46  ;;  %v1982_v49 = vpop.permute.xlu0 %1981 }
 0x6e8   :  { %2262 = vrot.lane.b32.xlu1 %v2253_v30, %s4577_s3 }
 0x6e9   :  { %2330 = vrot.lane.b32.xlu0 %v2320_v50, %s4581_s7 }
 0x6eb   :  { %v1986_v40 = vpop.permute.xlu0 %1985 }
 0x6ec   :  { %2266 = vrot.lane.b32.xlu1 %v2255_v4, %s4577_s3 }
 0x6ed   :  { %2334 = vrot.lane.b32.xlu0 %v2322_v44, %s4581_s7 }
 0x6ef   :  { %v1988_v47 = vpop.permute.xlu0 %1987 }
 0x6f0   :  { %2332 = vrot.lane.b32.xlu1 %v2321_v51, %s4581_s7  ;;  %v1997_v51 = vmul.f32 %v5259_v31, %v1982_v49 }
 0x6f1   :  { %2336 = vrot.lane.b32.xlu0 %v2323_v12, %s4581_s7 }
 0x6f3   :  { %v2130_v16 = vpop.permute.xlu0 %2129 }
 0x6f4   :  { %2405 = vrot.lane.b32.xlu1 %v2394_v41, %s4579_s27 }
 0x6f5   :  { %2403 = vrot.lane.b32.xlu0 %v2393_v63, %s4579_s27 }
 0x6f7   :  { %v5712_v53 = vpop.permute.xlu0 %2411 }
 0x6f8   :  { %2409 = vrot.lane.b32.xlu1 %v2396_v24, %s4579_s27 }
 0x6f9   :  { %2407 = vrot.lane.b32.xlu0 %v2395_v11, %s4579_s27 }
 0x6fb   :  { %v5716_v45 = vpop.permute.xlu0 %2588 }
 0x6fc   :  { %2478 = vrot.lane.b32.xlu1 %v2467_v19, %s4582_s22  ;;  %v1989_v19 = vsel %vm762_vm11, %v1982_v49, %v1984_v13 }
 0x6fd   :  { %2476 = vrot.lane.b32.xlu0 %v2466_v29, %s4582_s22  ;;  %v1998_v26 = vmul.f32 %v1989_v19, %v5583_v2 }
 0x700   :  { %2549 = vrot.lane.b32.xlu1 %v2539_v54, %s6800_s13 }
 0x701   :  { %2480 = vrot.lane.b32.xlu0 %v2468_v48, %s4582_s22  ;;  %v1990_v48 = vsel %vm762_vm11, %v1984_v13, %v1986_v40 }
 0x702   :  { %v1999_v49 = vmul.f32 %v1990_v48, %v5587_v17 }
 0x704   :  { %2553 = vrot.lane.b32.xlu1 %v2541_v22, %s6800_s13  ;;  %v1991_v22 = vsel %vm762_vm11, %v1986_v40, %v1988_v47 }
 0x705   :  { %2482 = vrot.lane.b32.xlu0 %v2469_v14, %s4582_s22 }
 0x708   :  { %2590 = vrot.lane.b32.xlu1 %v4843_v57, %s4577_s3  ;;  %v2203_v57 = vpop.permute.xlu1 %2202 }
 0x709   :  { %2551 = vrot.lane.b32.xlu0 %v2540_v1, %s6800_s13 }
 0x70c   :  { %2594 = vrot.lane.b32.xlu1 %v4849_v61, %s4577_s3  ;;  %v5706_v58 = vpop.permute.xlu1 %2576 }
 0x70d   :  { %2555 = vrot.lane.b32.xlu0 %v2542_v27, %s6800_s13 }
 0x710   :  { %v5708_v39 = vpop.permute.xlu1 %2338 }
 0x711   :  { %2592 = vrot.lane.b32.xlu0 %v4841_v56, %s4577_s3 }
 0x714   :  { %v5710_v6 = vpop.permute.xlu1 %2484 }
 0x718   :  { %v5714_v61 = vpop.permute.xlu1 %2557 }
 0x73e   :  { %v2059_v56 = vpop.permute.xlu1 %2058 }
 0x73f   :  { %v2061_v18 = vpop.permute.xlu0 %2060  ;;  %v2066_v43 = vsel %vm847_vm6, %v2057_v52, %v2059_v56  ;;  %v2001_v52 = vmul.f32 %v1988_v47, %v5589_v35 }
 0x740   :  { %v2075_v63 = vadd.f32 %v2066_v43, %v1997_v51  ;;  %v2067_v31 = vsel %vm847_vm6, %v2059_v56, %v2061_v18 }
 0x741   :  { %v2076_v27 = vadd.f32 %v2067_v31, %v1998_v26 }
 0x742   :  { %v2063_v59 = vpop.permute.xlu1 %2062 }
 0x743   :  { %v2132_v0 = vpop.permute.xlu0 %2131  ;;  %v2068_v14 = vsel %vm847_vm6, %v2061_v18, %v2063_v59  ;;  %v2000_v18 = vmul.f32 %v1991_v22, %v5585_v7 }
 0x744   :  { %v2139_v28 = vsel %vm923_vm10, %v2130_v16, %v2132_v0  ;;  %v2077_v40 = vadd.f32 %v2068_v14, %v1999_v49 }
 0x745   :  { %v2148_v9 = vadd.f32 %v2139_v28, %v2075_v63 }
 0x746   :  { %v2065_v15 = vpop.permute.xlu1 %2064 }
 0x747   :  { %v2136_v33 = vpop.permute.xlu0 %2135  ;;  %v2069_v13 = vsel %vm847_vm6, %v2063_v59, %v2065_v15 }
 0x748   :  { %v2078_v47 = vadd.f32 %v2069_v13, %v2000_v18 }
 0x74a   :  { %v2134_v38 = vpop.permute.xlu1 %2133 }
 0x74b   :  { %v2138_v3 = vpop.permute.xlu0 %2137  ;;  %v2140_v5 = vsel %vm923_vm10, %v2132_v0, %v2134_v38  ;;  %v2141_v16 = vsel %vm923_vm10, %v2134_v38, %v2136_v33  ;;  %v2079_v0 = vadd.f32 %v2065_v15, %v2001_v52 }
 0x74c   :  { %v2149_v43 = vadd.f32 %v2140_v5, %v2076_v27  ;;  %v2142_v51 = vsel %vm923_vm10, %v2136_v33, %v2138_v3  ;;  %v2150_v63 = vadd.f32 %v2141_v16, %v2077_v40 }
 0x74d   :  { %v2151_v15 = vadd.f32 %v2142_v51, %v2078_v47 }
 0x74e   :  { %v2205_v25 = vpop.permute.xlu1 %2204 }
 0x74f   :  { %v2207_v60 = vpop.permute.xlu0 %2206  ;;  %v2212_v62 = vsel %vm813_vm4, %v2203_v57, %v2205_v25 }
 0x750   :  { %v2221_v55 = vadd.f32 %v2212_v62, %v2148_v9  ;;  %v2213_v2 = vsel %vm813_vm4, %v2205_v25, %v2207_v60  ;;  %v2152_v9 = vadd.f32 %v2138_v3, %v2079_v0 }
 0x751   :  { %v2222_v59 = vadd.f32 %v2213_v2, %v2149_v43 }
 0x752   :  { %v2209_v46 = vpop.permute.xlu1 %2208 }
 0x753   :  { %v2261_v30 = vpop.permute.xlu0 %2260  ;;  %v2214_v28 = vsel %vm813_vm4, %v2207_v60, %v2209_v46 }
 0x754   :  { %v2276_v29 = vadd.f32 %v2261_v30, %v2221_v55  ;;  %v2223_v19 = vadd.f32 %v2214_v28, %v2150_v63 }
 0x756   :  { %v2211_v36 = vpop.permute.xlu1 %2210 }
 0x757   :  { %v2265_v50 = vpop.permute.xlu0 %2264  ;;  %v2215_v25 = vsel %vm813_vm4, %v2209_v46, %v2211_v36 }
 0x758   :  { %v2224_v31 = vadd.f32 %v2215_v25, %v2151_v15 }
 0x75a   :  { %v2263_v8 = vpop.permute.xlu1 %2262 }
 0x75b   :  { %v2331_v4 = vpop.permute.xlu0 %2330  ;;  %v2268_v17 = vsel %vm762_vm11, %v2261_v30, %v2263_v8  ;;  %v2269_v55 = vsel %vm762_vm11, %v2263_v8, %v2265_v50 }
 0x75c   :  { %v2349_v23 = vadd.f32 %v2331_v4, %v2276_v29  ;;  %v2277_v33 = vadd.f32 %v2268_v17, %v2222_v59  ;;  %v2225_v29 = vadd.f32 %v2211_v36, %v2152_v9  ;;  %v2278_v46 = vadd.f32 %v2269_v55, %v2223_v19 }
 0x75e   :  { %v5718_v44 = vpop.permute.xlu1 %2266 }
 0x75f   :  { %v5720_v10 = vpop.permute.xlu0 %2334  ;;  %v2270_v30 = vsel %vm762_vm11, %v2265_v50, %v5718_v44 }
 0x762   :  { %v2333_v12 = vpop.permute.xlu1 %2332 }
 0x763   :  { %v2337_v41 = vpop.permute.xlu0 %2336  ;;  %v2340_v7 = vsel %vm1139_vm12, %v2331_v4, %v2333_v12  ;;  %v2341_v48 = vsel %vm1139_vm12, %v2333_v12, %v5720_v10  ;;  %v2279_v12 = vadd.f32 %v2270_v30, %v2224_v31 }
 0x764   :  { %v2342_v22 = vsel %vm1139_vm12, %v5720_v10, %v2337_v41  ;;  %v2343_v36 = vsel %vm1139_vm12, %v2337_v41, %v5708_v39  ;;  %v2351_v5 = vadd.f32 %v2341_v48, %v2278_v46  ;;  %v2609_v48 = vld [vmem:[%s6760_s14] sm:$0xff] }
 0x765   :  { %v2352_v52 = vadd.f32 %v2342_v22, %v2279_v12 }
 0x766   :  { %v2406_v24 = vpop.permute.xlu1 %2405 }
 0x767   :  { %v2404_v11 = vpop.permute.xlu0 %2403 }
 0x768   :  { %v2422_v1 = vadd.f32 %v2404_v11, %v2349_v23  ;;  %v2413_v3 = vsel %vm1215_vm13, %v2404_v11, %v2406_v24  ;;  %v2350_v23 = vadd.f32 %v2340_v7, %v2277_v33  ;;  %v2280_v11 = vadd.f32 %v5718_v44, %v2225_v29 }
 0x76a   :  { %v2410_v42 = vpop.permute.xlu1 %2409  ;;  %v2353_v39 = vadd.f32 %v2343_v36, %v2280_v11 }
 0x76b   :  { %v2408_v54 = vpop.permute.xlu0 %2407  ;;  %v2416_v27 = vsel %vm1215_vm13, %v2410_v42, %v5712_v53 }
 0x76c   :  { %v2414_v50 = vsel %vm1215_vm13, %v2406_v24, %v2408_v54  ;;  %v2415_v49 = vsel %vm1215_vm13, %v2408_v54, %v2410_v42 }
 0x76d   :  { %v2424_v41 = vadd.f32 %v2414_v50, %v2351_v5  ;;  %v2425_v53 = vadd.f32 %v2415_v49, %v2352_v52 }
 0x76e   :  { %v2479_v32 = vpop.permute.xlu1 %2478 }
 0x76f   :  { %v2477_v57 = vpop.permute.xlu0 %2476 }
 0x770   :  { %v2495_v56 = vadd.f32 %v2477_v57, %v2422_v1  ;;  %v2486_v14 = vsel %vm1295_vm14, %v2477_v57, %v2479_v32  ;;  %v2423_v1 = vadd.f32 %v2413_v3, %v2350_v23 }
 0x772   :  { %v2550_v35 = vpop.permute.xlu1 %2549  ;;  %v2496_v24 = vadd.f32 %v2486_v14, %v2423_v1 }
 0x773   :  { %v2568_v62 = vadd.f32 %v2550_v35, %v2495_v56  ;;  %v2481_v38 = vpop.permute.xlu0 %2480  ;;  %v2426_v56 = vadd.f32 %v2416_v27, %v2353_v39 }
 0x774   :  { %v2487_v10 = vsel %vm1295_vm14, %v2479_v32, %v2481_v38 }
 0x775   :  { %v2579_v60 = vadd.f32 %v5706_v58, %v2568_v62  ;;  %v2497_v40 = vadd.f32 %v2487_v10, %v2424_v41 }
 0x776   :  { %v2554_v8 = vpop.permute.xlu1 %2553 }
 0x777   :  { %v2483_v26 = vpop.permute.xlu0 %2482  ;;  %v2604_v4 = vsub.f32 %v2579_v60, %v5716_v45 }
 0x778   :  { %v2488_v57 = vsel %vm1295_vm14, %v2481_v38, %v2483_v26  ;;  %v2489_v44 = vsel %vm1295_vm14, %v2483_v26, %v5710_v6 }
 0x779   :  { %2628 = vrot.lane.b32.xlu0 %v2604_v4, %s4576_s28  ;;  %v2498_v32 = vadd.f32 %v2488_v57, %v2425_v53  ;;  %v2499_v18 = vadd.f32 %v2489_v44, %v2426_v56  ;;  %v2610_v4 = vld [vmem:[%s6760_s14 + $0x8] sm:$0xff] }
 0x77a   :  { %v2591_v42 = vpop.permute.xlu1 %2590 }
 0x77b   :  { %v2552_v13 = vpop.permute.xlu0 %2551  ;;  %v2596_v28 = vsel %vm762_vm11, %v5716_v45, %v2591_v42 }
 0x77c   :  { %v2559_v16 = vsel %vm1371_vm15, %v2550_v35, %v2552_v13  ;;  %v2560_v2 = vsel %vm1371_vm15, %v2552_v13, %v2554_v8 }
 0x77d   :  { %v2569_v54 = vadd.f32 %v2559_v16, %v2496_v24  ;;  %v2570_v43 = vadd.f32 %v2560_v2, %v2497_v40 }
 0x77e   :  { %v2595_v9 = vpop.permute.xlu1 %2594 }
 0x77f   :  { %v2580_v0 = vadd.f32 %v5706_v58, %v2569_v54  ;;  %v2556_v51 = vpop.permute.xlu0 %2555  ;;  %v2581_v62 = vadd.f32 %v5706_v58, %v2570_v43  ;;  %v2859_v54 = vld [vmem:[%s6761_s16 + $0x8] sm:$0xff] }
 0x780   :  { %v2561_v6 = vsel %vm1371_vm15, %v2554_v8, %v2556_v51  ;;  %v2562_v17 = vsel %vm1371_vm15, %v2556_v51, %v5714_v61  ;;  %v2612_v61 = vld [vmem:[%s6759_s15 + $0x8] sm:$0xff] }
 0x781   :  { %v2571_v35 = vadd.f32 %v2561_v6, %v2498_v32  ;;  %v2572_v47 = vadd.f32 %v2562_v17, %v2499_v18  ;;  %v2605_v63 = vsub.f32 %v2580_v0, %v2596_v28  ;;  %v5797_v8 = vld [vmem:[#allocation2 + $0x28] sm:$0xff]  ;;  %v2858_v32 = vld [vmem:[%s6761_s16] sm:$0xff] }
 0x783   :  { %v2583_v59 = vadd.f32 %v5706_v58, %v2572_v47  ;;  %2630 = vrot.lane.b32.xlu0 %v2605_v63, %s4576_s28  ;;  %v2593_v38 = vpop.permute.xlu0 %2592  ;;  %v2582_v45 = vadd.f32 %v5706_v58, %v2571_v35  ;;  %v2611_v58 = vld [vmem:[%s6759_s15] sm:$0xff] }
 0x784   :  { %v2597_v25 = vsel %vm762_vm11, %v2591_v42, %v2593_v38  ;;  %v2598_v15 = vsel %vm762_vm11, %v2593_v38, %v2595_v9 }
 0x785   :  { %v2606_v55 = vsub.f32 %v2581_v62, %v2597_v25  ;;  %v2608_v7 = vsub.f32 %v2583_v59, %v2595_v9  ;;  %v2607_v19 = vsub.f32 %v2582_v45, %v2598_v15 }
 0x787   :  { %2636 = vrot.lane.b32.xlu0 %v2608_v7, %s4576_s28  ;;  %2632 = vrot.lane.b32.xlu1 %v2606_v55, %s4576_s28 }
 0x78b   :  { %2620 = vperm.xlu0 %4549, %v2612_v61   ;;  %2634 = vrot.lane.b32.xlu1 %v2607_v19, %s4576_s28 }
 0x78f   :  { %2615 = vperm.xlu1 %4550, %v2611_v58  }
 0x7eb   :  { %v2629_v33 = vpop.permute.xlu0 %2628 }
 0x7f5   :  { %v2631_v60 = vpop.permute.xlu0 %2630 }
 0x7f6   :  { %v2638_v3 = vsel %vm1342_vm9, %v2629_v33, %v2631_v60 }
 0x7f9   :  { %v2633_v29 = vpop.permute.xlu1 %2632  ;;  %v2637_v31 = vpop.permute.xlu0 %2636 }
 0x7fa   :  { %v2639_v30 = vsel %vm1342_vm9, %v2631_v60, %v2633_v29 }
 0x7fb   :  { %2652 = vmatprep.subr.mxu0 %v2639_v30 }
 0x7fc   :  { %2653 = vmatpush1.msra.mxu0 %v2638_v3  ;;  %v3406_v3 = vld [vmem:[%s6798_s21] ss:$8 sm:$0xf] }
 0x7fd   :  { %v2635_v46 = vpop.permute.xlu1 %2634  ;;  %4470 = vmatmul.mubr.msk.f32.vlgmr.msra.gmra.mrb[34].mxu0 %vm341_vm1, %v2609_v48 }
 0x7fe   :  { %v2641_v23 = vsel %vm1342_vm9, %v2635_v46, %v2637_v31  ;;  %2722 = vmatprep.mubr.f32.mxu0 %v5797_v8  ;;  %v2640_v26 = vsel %vm1342_vm9, %v2633_v29, %v2635_v46  ;;  %v2879_v31 = vld [vmem:[%s6762_s17 + $0x8] sm:$0xff]  ;;  %v3411_v46 = vrot.slane %v3406_v3, %v4742_v21 }
 0x7ff   :  { %2729 = vmatprep.subr.mxu1 %v2641_v23  ;;  %v3415_v23 = vrot.slane %v3406_v3, %v4784_v34 }
 0x800   :  { %2730 = vmatpush1.msra.mxu1 %v2640_v26  ;;  %v3419_v26 = vrot.slane %v3406_v3, %v4740_v20 }
 0x801   :  { %4471 = vmatmul.mubr.msk.f32.gmra.mrb[36].mxu0 %vm341_vm1, %v2610_v4  ;;  %4472 = vmatmul.mubr.msk.f32.vlgmr.msra.gmra.mrb[34].mxu1 %vm341_vm1, %v2609_v48  ;;  %v2878_v48 = vld [vmem:[%s6762_s17] sm:$0xff] }
 0x802   :  { %2799 = vmatprep.mubr.f32.mxu1 %v5797_v8  ;;  %3042 = vmatprep.mubr.f32.mxu0 %v5797_v8 }
 0x805   :  { %4473 = vmatmul.mubr.msk.f32.gmra.mrb[36].mxu1 %vm341_vm1, %v2610_v4  ;;  %v4510_v4 = vld [vmem:[%s6798_s21 + $0x1] ss:$8 sm:$0xf] }
 0x806   :  { %3215 = vmatprep.mubr.f32.mxu1 %v5797_v8 }
 0x80a   :  { %v2621_v11 = vpop.permute.xlu0 %2620 }
 0x80e   :  { %v2616_v22 = vpop.permute.xlu1 %2615 }
 0x8d0   :  { %v2718_v36 = vpop.f32.mrb[34].mxu0 }
 0x8d1   :  { %v2719_v50 = vadd.f32 %v2718_v36, %v2616_v22  ;;  %v2720_v14 = vpop.f32.mrb[35].mxu0  ;;  %v3475_v36 = vrot.slane %v4510_v4, %v4742_v21 }
 0x8d2   :  { %v2721_v12 = vadd.f32 %v2720_v14, %v2616_v22  ;;  %v3483_v14 = vrot.slane %v4510_v4, %v4740_v20 }
 0x8d4   :  { %v2806_v5 = vadd.f32 %v2721_v12, %v2719_v50  ;;  %v2724_v1 = vpop.f32.mrb[36].mxu0  ;;  %v2795_v27 = vpop.f32.mrb[34].mxu1 }
 0x8d5   :  { %v2725_v49 = vadd.f32 %v2724_v1, %v2621_v11  ;;  %v2796_v10 = vadd.f32 %v2795_v27, %v2616_v22  ;;  %v2726_v52 = vpop.f32.mrb[37].mxu0  ;;  %v2797_v39 = vpop.f32.mrb[35].mxu1 }
 0x8d6   :  { %v2727_v41 = vadd.f32 %v2726_v52, %v2621_v11  ;;  %v2798_v24 = vadd.f32 %v2797_v39, %v2616_v22  ;;  %v3423_v22 = vrot.slane %v3406_v3, %v4792_v37 }
 0x8d7   :  { %v2807_v13 = vadd.f32 %v2806_v5, %v2796_v10 }
 0x8d8   :  { %v2811_v57 = vadd.f32 %v2727_v41, %v2725_v49  ;;  %v2801_v44 = vpop.f32.mrb[36].mxu1 }
 0x8d9   :  { %v2808_v16 = vadd.f32 %v2807_v13, %v2798_v24  ;;  %v2802_v2 = vadd.f32 %v2801_v44, %v2621_v11  ;;  %v2803_v56 = vpop.f32.mrb[37].mxu1 }
 0x8da   :  { %v2804_v53 = vadd.f32 %v2803_v56, %v2621_v11 }
 0x8db   :  { %v2812_v40 = vadd.f32 %v2811_v57, %v2802_v2  ;;  %2809 = vadd.xlane.f32.xlu1 %v2808_v16 }
 0x8dd   :  { %v2813_v42 = vadd.f32 %v2812_v40, %v2804_v53 }
 0x8df   :  { %2814 = vadd.xlane.f32.xlu0 %v2813_v42  ;;  %v4511_v42 = vld [vmem:[%s6798_s21 + $0x2] ss:$8 sm:$0xf] }
 0x8ec   :  { %2867 = vperm.xlu1 %4550, %v2859_v54  }
 0x8f5   :  { %2862 = vperm.xlu0 %4549, %v2858_v32  }
 0x968   :  { %v2810_v18 = vpop.xlane.xlu1 %2809 }
 0x969   :  { %v2816_v43 = vmul.f32 0.001953125, %v2810_v18 }
 0x96b   :  { %v2818_v0 = vsub.f32 %v2719_v50, %v2816_v43  ;;  %v5816_v51 = vsub.f32 %v2721_v12, %v2816_v43  ;;  %v2820_v28 = vsub.f32 %v2796_v10, %v2816_v43  ;;  %v2821_v17 = vsub.f32 %v2798_v24, %v2816_v43 }
 0x96c   :  { %v2815_v6 = vpop.xlane.xlu0 %2814  ;;  %v3479_v50 = vrot.slane %v4510_v4, %v4784_v34  ;;  %v3487_v12 = vrot.slane %v4510_v4, %v4792_v37  ;;  %v2868_v5 = vpop.permute.xlu1 %2867  ;;  %v4564_v4 = vld [vmem:[%s6794_s23 + $0x28] sm:$0xff] }
 0x96d   :  { %v2817_v35 = vmul.f32 0.001953125, %v2815_v6  ;;  %v2826_v47 = vmul.f32 %v2818_v0, %v2818_v0  ;;  %v2827_v63 = vmul.f32 %v5816_v51, %v5816_v51  ;;  %v2828_v59 = vmul.f32 %v2820_v28, %v2820_v28 }
 0x96e   :  { %v2829_v45 = vmul.f32 %v2821_v17, %v2821_v17 }
 0x96f   :  { %v5820_v62 = vsub.f32 %v2725_v49, %v2817_v35  ;;  %v5822_v38 = vsub.f32 %v2727_v41, %v2817_v35  ;;  %v5824_v9 = vsub.f32 %v2802_v2, %v2817_v35  ;;  %v2834_v25 = vadd.f32 %v2827_v63, %v2826_v47 }
 0x970   :  { %v5826_v7 = vsub.f32 %v2804_v53, %v2817_v35 }
 0x971   :  { %v2835_v55 = vadd.f32 %v2834_v25, %v2828_v59  ;;  %v2830_v15 = vmul.f32 %v5820_v62, %v5820_v62  ;;  %v2831_v61 = vmul.f32 %v5822_v38, %v5822_v38  ;;  %v2832_v58 = vmul.f32 %v5824_v9, %v5824_v9 }
 0x972   :  { %v2833_v60 = vmul.f32 %v5826_v7, %v5826_v7 }
 0x973   :  { %v2836_v19 = vadd.f32 %v2835_v55, %v2829_v45  ;;  %v2839_v33 = vadd.f32 %v2831_v61, %v2830_v15 }
 0x974   :  { %v2863_v11 = vpop.permute.xlu0 %2862 }
 0x975   :  { %2837 = vadd.xlane.f32.xlu0 %v2836_v19  ;;  %v2840_v29 = vadd.f32 %v2839_v33, %v2832_v58  ;;  %v3591_v58 = vrot.slane %v4511_v42, %v4784_v34 }
 0x977   :  { %v2841_v30 = vadd.f32 %v2840_v29, %v2833_v60  ;;  %v4560_v29 = vld [vmem:[%s6794_s23 + $0x20] sm:$0xff] }
 0x979   :  { %2842 = vadd.xlane.f32.xlu1 %v2841_v30 }
 0x98a   :  { %2882 = vperm.xlu1 %4550, %v2878_v48   ;;  %v4561_v48 = vld [vmem:[%s6794_s23 + $0x10] sm:$0xff] }
 0x98b   :  { %2887 = vperm.xlu0 %4549, %v2879_v31   ;;  %v4562_v31 = vld [vmem:[%s6794_s23 + $0x30] sm:$0xff] }
 0x98e   :  { %3424 = vrot.lane.b32.xlu1 %v3411_v46, %s4577_s3 }
 0x98f   :  { %3426 = vrot.lane.b32.xlu0 %v3415_v23, %s4577_s3  ;;  %v4563_v23 = vld [vmem:[%s6794_s23 + $0x8] sm:$0xff] }
 0x992   :  { %3428 = vrot.lane.b32.xlu1 %v3419_v26, %s4577_s3 }
 0x993   :  { %3430 = vrot.lane.b32.xlu0 %v3423_v22, %s4577_s3 }
 0x996   :  { %3488 = vrot.lane.b32.xlu1 %v3475_v36, %s4570_s24  ;;  %v4565_v36 = vld [vmem:[%s6794_s23 + $0x18] sm:$0xff] }
 0x997   :  { %3490 = vrot.lane.b32.xlu0 %v3479_v50, %s4570_s24 }
 0x99a   :  { %3492 = vrot.lane.b32.xlu1 %v3483_v14, %s4570_s24  ;;  %v4566_v14 = vld [vmem:[%s6794_s23 + $0x38] sm:$0xff] }
 0x99b   :  { %3494 = vrot.lane.b32.xlu0 %v3487_v12, %s4570_s24 }
 0xa02   :  { %v2838_v1 = vpop.xlane.xlu0 %2837 }
 0xa03   :  { %v2844_v27 = vmul.f32 0.001953125, %v2838_v1 }
 0xa05   :  { %v2846_v49 = vadd.f32 1e-05, %v2844_v27 }
 0xa06   :  { %v2843_v10 = vpop.xlane.xlu1 %2842 }
 0xa07   :  { %4553 = vrsqrt.f32 %v2846_v49  ;;  %v2845_v52 = vmul.f32 0.001953125, %v2843_v10  ;;  %v3599_v49 = vrot.slane %v4511_v42, %v4792_v37  ;;  %v3595_v10 = vrot.slane %v4511_v42, %v4740_v20 }
 0xa09   :  { %v2847_v39 = vadd.f32 1e-05, %v2845_v52  ;;  %v2906_v52 = vld [vmem:[%s6763_s18] sm:$0xff] }
 0xa0a   :  { %v2883_v41 = vpop.permute.xlu1 %2882  ;;  %v2888_v45 = vpop.permute.xlu0 %2887 }
 0xa0b   :  { %4555 = vrsqrt.f32 %v2847_v39  ;;  %v2907_v39 = vld [vmem:[%s6763_s18 + $0x8] sm:$0xff] }
 0xa0e   :  { %v5864_v24 = vpop.permute.xlu1 %3424 }
 0xa0f   :  { %6801 = vst [vmem:[#allocation4_spill] sm:$0xff] %v5864_v24  ;;  %v4332_v24 = vld [vmem:[%s6764_s19] sm:$0xff] }
 0xa11   :  { %v4554_v13 = vpop.eup %4553 }
 0xa12   :  { %v2850_v57 = vmul.f32 %v4554_v13, %v2818_v0  ;;  %v2852_v44 = vmul.f32 %v4554_v13, %v2820_v28  ;;  %v5866_v16 = vpop.permute.xlu1 %3428  ;;  %v2851_v2 = vmul.f32 %v4554_v13, %v5816_v51  ;;  %v2853_v56 = vmul.f32 %v4554_v13, %v2821_v17  ;;  %v2909_v13 = vld [vmem:[%s6763_s18 + $0x18] sm:$0xff] }
 0xa13   :  { %6802 = vst [vmem:[#allocation5_spill] sm:$0xff] %v5866_v16  ;;  %v3587_v51 = vrot.slane %v4511_v42, %v4742_v21  ;;  %v2916_v42 = vld [vmem:[%s6763_s18 + $0x50] sm:$0xff]  ;;  %v4333_v16 = vld [vmem:[%s6764_s19 + $0x8] sm:$0xff] }
 0xa14   :  { %v2870_v53 = vmul.f32 %v2863_v11, %v2850_v57  ;;  %v2872_v40 = vmul.f32 %v2863_v11, %v2852_v44  ;;  %v2871_v32 = vmul.f32 %v2863_v11, %v2851_v2  ;;  %v2873_v18 = vmul.f32 %v2863_v11, %v2853_v56  ;;  %v2910_v57 = vld [vmem:[%s6763_s18 + $0x20] sm:$0xff]  ;;  %v2911_v44 = vld [vmem:[%s6763_s18 + $0x28] sm:$0xff]  ;;  %v2912_v2 = vld [vmem:[%s6763_s18 + $0x30] sm:$0xff] }
 0xa15   :  { %v4556_v54 = vpop.eup %4555  ;;  %v2913_v56 = vld [vmem:[%s6763_s18 + $0x38] sm:$0xff] }
 0xa16   :  { %v2854_v43 = vmul.f32 %v4556_v54, %v5820_v62  ;;  %v2856_v6 = vmul.f32 %v4556_v54, %v5824_v9  ;;  %v5874_v0 = vpop.permute.xlu1 %3488  ;;  %v2855_v17 = vmul.f32 %v4556_v54, %v5822_v38  ;;  %v2857_v35 = vmul.f32 %v4556_v54, %v5826_v7  ;;  %v4559_v7 = vld [vmem:[%s6794_s23] sm:$0xff]  ;;  %v2917_v54 = vld [vmem:[%s6763_s18 + $0x58] sm:$0xff] }
 0xa17   :  { %v3504_v28 = vmul.f32 %v5797_v8, %v5874_v0  ;;  %v2890_v47 = vadd.f32 %v2883_v41, %v2870_v53  ;;  %v2892_v63 = vadd.f32 %v2883_v41, %v2872_v40  ;;  %v2891_v9 = vadd.f32 %v2883_v41, %v2871_v32  ;;  %v2914_v53 = vld [vmem:[%s6763_s18 + $0x40] sm:$0xff]  ;;  %v2915_v40 = vld [vmem:[%s6763_s18 + $0x48] sm:$0xff] }
 0xa18   :  { %v2874_v59 = vmul.f32 %v2868_v5, %v2854_v43  ;;  %v2876_v25 = vmul.f32 %v2868_v5, %v2856_v6  ;;  %v2875_v62 = vmul.f32 %v2868_v5, %v2855_v17  ;;  %v2877_v55 = vmul.f32 %v2868_v5, %v2857_v35  ;;  %v2918_v32 = vld [vmem:[%s6763_s18 + $0x60] sm:$0xff]  ;;  %v2920_v43 = vld [vmem:[%s6763_s18 + $0x70] sm:$0xff]  ;;  %v2921_v6 = vld [vmem:[%s6763_s18 + $0x78] sm:$0xff] }
 0xa19   :  { %3524 = vrot.lane.b32.xlu1 %v3504_v28, %s4572_s26  ;;  %v2893_v15 = vadd.f32 %v2883_v41, %v2873_v18  ;;  %3534 = vrot.lane.b32.xlu0 %v3504_v28, %s4572_s26  ;;  %v2898_v60 = vadd.f32 %v4559_v7, %v2890_v47  ;;  %v2900_v3 = vadd.f32 %v4561_v48, %v2892_v63  ;;  %v2908_v41 = vld [vmem:[%s6763_s18 + $0x10] sm:$0xff]  ;;  %v2919_v18 = vld [vmem:[%s6763_s18 + $0x68] sm:$0xff] }
 0xa1a   :  { %v2894_v61 = vadd.f32 %v2888_v45, %v2874_v59  ;;  %v2896_v19 = vadd.f32 %v2888_v45, %v2876_v25  ;;  %v2895_v38 = vadd.f32 %v2888_v45, %v2875_v62  ;;  %v2897_v33 = vadd.f32 %v2888_v45, %v2877_v55  ;;  %v2922_v28 = vld [vmem:[%s6763_s18 + $0x80] sm:$0xff]  ;;  %v6038_v17 = vpop.permute.xlu1 %3492 }
 0xa1b   :  { %v2899_v26 = vadd.f32 %v4563_v23, %v2891_v9  ;;  %v2901_v50 = vadd.f32 %v4565_v36, %v2893_v15  ;;  %v4512_v63 = vld [vmem:[%s6798_s21 + $0x3] ss:$8 sm:$0xf]  ;;  %v4514_v55 = vld [vmem:[%s6798_s21 + $0x5] ss:$8 sm:$0xf] }
 0xa1c   :  { %v2902_v30 = vadd.f32 %v4560_v29, %v2894_v61  ;;  %v2904_v46 = vadd.f32 %v4562_v31, %v2896_v19  ;;  %v2903_v22 = vadd.f32 %v4564_v4, %v2895_v38  ;;  %v2905_v12 = vadd.f32 %v4566_v14, %v2897_v33  ;;  %v4515_v38 = vld [vmem:[%s6798_s21 + $0x6] ss:$8 sm:$0xf]  ;;  %v4517_v23 = vld [vmem:[%s6798_s21 + $0x20] ss:$8 sm:$0xf] }
 0xa1d   :  { %3600 = vrot.lane.b32.xlu1 %v3587_v51, %s4571_s2  ;;  %3602 = vrot.lane.b32.xlu0 %v3591_v58, %s4571_s2  ;;  %v2923_v51 = vld [vmem:[%s6763_s18 + $0x88] sm:$0xff]  ;;  %v3703_v25 = vrot.slane %v4512_v63, %v4784_v34  ;;  %v3699_v45 = vrot.slane %v4512_v63, %v4742_v21  ;;  %v3711_v62 = vrot.slane %v4512_v63, %v4792_v37 }
 0xa1e   :  { %v4528_v11 = vpack.c.bf16 %v2902_v30, %v2898_v60  ;;  %v4532_v5 = vpack.c.bf16 %v2904_v46, %v2900_v3  ;;  %v4526_v1 = vpack.c.bf16 %v2903_v22, %v2899_v26  ;;  %v4530_v27 = vpack.c.bf16 %v2905_v12, %v2901_v50  ;;  %v4516_v30 = vld [vmem:[%s6798_s21 + $0x7] ss:$8 sm:$0xf]  ;;  %v6103_v50 = vpop.permute.xlu0 %3426 }
 0xa1f   :  { %v3707_v9 = vrot.slane %v4512_v63, %v4740_v20  ;;  %v3903_v15 = vrot.slane %v4514_v55, %v4784_v34  ;;  %v3899_v61 = vrot.slane %v4514_v55, %v4742_v21  ;;  %v3911_v19 = vrot.slane %v4514_v55, %v4792_v37  ;;  %6804 = vst [vmem:[#allocation7_spill] sm:$0xff] %v6103_v50 }
 0xa20   :  { %4527 = vmatprep.subr.bf16.mxu0 %v4526_v1  ;;  %4531 = vmatprep.subr.bf16.mxu1 %v4530_v27  ;;  %v3907_v58 = vrot.slane %v4514_v55, %v4740_v20  ;;  %v4015_v33 = vrot.slane %v4515_v38, %v4784_v34  ;;  %v4011_v7 = vrot.slane %v4515_v38, %v4742_v21 }
 0xa21   :  { %4529 = vmatpush1.bf16.msra.mxu0 %v4528_v11  ;;  %4533 = vmatpush1.bf16.msra.mxu1 %v4532_v5  ;;  %v4023_v60 = vrot.slane %v4515_v38, %v4792_v37  ;;  %v4019_v29 = vrot.slane %v4515_v38, %v4740_v20  ;;  %v4127_v48 = vrot.slane %v4516_v30, %v4784_v34 }
 0xa22   :  { %3606 = vrot.lane.b32.xlu0 %v3599_v49, %s4571_s2  ;;  %3604 = vrot.lane.b32.xlu1 %v3595_v10, %s4571_s2  ;;  %v4123_v3 = vrot.slane %v4516_v30, %v4742_v21  ;;  %v4135_v31 = vrot.slane %v4516_v30, %v4792_v37  ;;  %v4131_v46 = vrot.slane %v4516_v30, %v4740_v20  ;;  %v6105_v14 = vpop.permute.xlu0 %3430 }
 0xa23   :  { %v4239_v26 = vrot.slane %v4517_v23, %v4784_v34  ;;  %v4235_v4 = vrot.slane %v4517_v23, %v4742_v21  ;;  %v4247_v22 = vrot.slane %v4517_v23, %v4792_v37  ;;  %v4243_v36 = vrot.slane %v4517_v23, %v4740_v20  ;;  %6805 = vst [vmem:[#allocation8_spill] sm:$0xff] %v6105_v14 }
 0xa24   :  { %4474 = vmatmul.mubr.msk.f32.vlgmr.msra.gmra.mrb[38].mxu0 %vm188_vm0, %v2906_v52  ;;  %4492 = vmatmul.mubr.msk.f32.vlgmr.msra.gmra.mrb[38].mxu1 %vm188_vm0, %v2906_v52 }
 0xa25   :  { %3048 = vmatprep.mubr.f32.mxu0 %v5797_v8  ;;  %3221 = vmatprep.mubr.f32.mxu1 %v5797_v8 }
 0xa26   :  { %v6107_v12 = vpop.permute.xlu0 %3490 }
 0xa28   :  { %4475 = vmatmul.mubr.msk.f32.gmra.mrb[40].mxu0 %vm188_vm0, %v2907_v39  ;;  %4493 = vmatmul.mubr.msk.f32.gmra.mrb[40].mxu1 %vm188_vm0, %v2907_v39 }
 0xa29   :  { %3054 = vmatprep.mubr.f32.mxu0 %v5797_v8  ;;  %3227 = vmatprep.mubr.f32.mxu1 %v5797_v8 }
 0xa2a   :  { %v6109_v11 = vpop.permute.xlu0 %3494 }
 0xa2c   :  { %4476 = vmatmul.mubr.msk.f32.gmra.mrb[42].mxu0 %vm188_vm0, %v2908_v41  ;;  %4494 = vmatmul.mubr.msk.f32.gmra.mrb[42].mxu1 %vm188_vm0, %v2908_v41 }
 0xa2d   :  { %3060 = vmatprep.mubr.f32.mxu0 %v5797_v8  ;;  %3233 = vmatprep.mubr.f32.mxu1 %v5797_v8 }
 0xa30   :  { %4477 = vmatmul.mubr.msk.f32.gmra.mrb[44].mxu0 %vm188_vm0, %v2909_v13  ;;  %4495 = vmatmul.mubr.msk.f32.gmra.mrb[44].mxu1 %vm188_vm0, %v2909_v13 }
 0xa31   :  { %3066 = vmatprep.mubr.f32.mxu0 %v5797_v8  ;;  %3239 = vmatprep.mubr.f32.mxu1 %v5797_v8 }
 0xa34   :  { %4478 = vmatmul.mubr.msk.f32.gmra.mrb[46].mxu0 %vm188_vm0, %v2910_v57  ;;  %4496 = vmatmul.mubr.msk.f32.gmra.mrb[46].mxu1 %vm188_vm0, %v2910_v57 }
 0xa35   :  { %3072 = vmatprep.mubr.f32.mxu0 %v5797_v8  ;;  %3245 = vmatprep.mubr.f32.mxu1 %v5797_v8 }
 0xa38   :  { %4479 = vmatmul.mubr.msk.f32.gmra.mrb[48].mxu0 %vm188_vm0, %v2911_v44  ;;  %4497 = vmatmul.mubr.msk.f32.gmra.mrb[48].mxu1 %vm188_vm0, %v2911_v44 }
 0xa39   :  { %3078 = vmatprep.mubr.f32.mxu0 %v5797_v8  ;;  %3251 = vmatprep.mubr.f32.mxu1 %v5797_v8 }
 0xa3c   :  { %4480 = vmatmul.mubr.msk.f32.gmra.mrb[50].mxu0 %vm188_vm0, %v2912_v2  ;;  %4498 = vmatmul.mubr.msk.f32.gmra.mrb[50].mxu1 %vm188_vm0, %v2912_v2 }
 0xa3d   :  { %3084 = vmatprep.mubr.f32.mxu0 %v5797_v8  ;;  %3257 = vmatprep.mubr.f32.mxu1 %v5797_v8 }
 0xa40   :  { %4481 = vmatmul.mubr.msk.f32.gmra.mrb[52].mxu0 %vm188_vm0, %v2913_v56  ;;  %4499 = vmatmul.mubr.msk.f32.gmra.mrb[52].mxu1 %vm188_vm0, %v2913_v56 }
 0xa41   :  { %3090 = vmatprep.mubr.f32.mxu0 %v5797_v8  ;;  %3263 = vmatprep.mubr.f32.mxu1 %v5797_v8 }
 0xa44   :  { %4482 = vmatmul.mubr.msk.f32.gmra.mrb[54].mxu0 %vm188_vm0, %v2914_v53  ;;  %4500 = vmatmul.mubr.msk.f32.gmra.mrb[54].mxu1 %vm188_vm0, %v2914_v53 }
 0xa45   :  { %3096 = vmatprep.mubr.f32.mxu0 %v5797_v8  ;;  %3269 = vmatprep.mubr.f32.mxu1 %v5797_v8 }
 0xa48   :  { %4483 = vmatmul.mubr.msk.f32.gmra.mrb[56].mxu0 %vm188_vm0, %v2915_v40  ;;  %4501 = vmatmul.mubr.msk.f32.gmra.mrb[56].mxu1 %vm188_vm0, %v2915_v40 }
 0xa49   :  { %3102 = vmatprep.mubr.f32.mxu0 %v5797_v8  ;;  %3275 = vmatprep.mubr.f32.mxu1 %v5797_v8 }
 0xa4c   :  { %4484 = vmatmul.mubr.msk.f32.gmra.mrb[58].mxu0 %vm188_vm0, %v2916_v42  ;;  %4502 = vmatmul.mubr.msk.f32.gmra.mrb[58].mxu1 %vm188_vm0, %v2916_v42 }
 0xa4d   :  { %3108 = vmatprep.mubr.f32.mxu0 %v5797_v8  ;;  %3281 = vmatprep.mubr.f32.mxu1 %v5797_v8 }
 0xa50   :  { %4485 = vmatmul.mubr.msk.f32.gmra.mrb[60].mxu0 %vm188_vm0, %v2917_v54  ;;  %4503 = vmatmul.mubr.msk.f32.gmra.mrb[60].mxu1 %vm188_vm0, %v2917_v54 }
 0xa51   :  { %3114 = vmatprep.mubr.f32.mxu0 %v5797_v8  ;;  %3287 = vmatprep.mubr.f32.mxu1 %v5797_v8 }
 0xa54   :  { %4486 = vmatmul.mubr.msk.f32.gmra.mrb[62].mxu0 %vm188_vm0, %v2918_v32  ;;  %4504 = vmatmul.mubr.msk.f32.gmra.mrb[62].mxu1 %vm188_vm0, %v2918_v32 }
 0xa55   :  { %3120 = vmatprep.mubr.f32.mxu0 %v5797_v8  ;;  %3293 = vmatprep.mubr.f32.mxu1 %v5797_v8 }
 0xa58   :  { %4487 = vmatmul.mubr.msk.f32.gmra.mrb[64].mxu0 %vm188_vm0, %v2919_v18  ;;  %4505 = vmatmul.mubr.msk.f32.gmra.mrb[64].mxu1 %vm188_vm0, %v2919_v18 }
 0xa59   :  { %3126 = vmatprep.mubr.f32.mxu0 %v5797_v8  ;;  %3299 = vmatprep.mubr.f32.mxu1 %v5797_v8 }
 0xa5c   :  { %4488 = vmatmul.mubr.msk.f32.gmra.mrb[66].mxu0 %vm188_vm0, %v2920_v43  ;;  %4506 = vmatmul.mubr.msk.f32.gmra.mrb[66].mxu1 %vm188_vm0, %v2920_v43 }
 0xa5d   :  { %3132 = vmatprep.mubr.f32.mxu0 %v5797_v8  ;;  %3305 = vmatprep.mubr.f32.mxu1 %v5797_v8 }
 0xa60   :  { %4489 = vmatmul.mubr.msk.f32.gmra.mrb[68].mxu0 %vm188_vm0, %v2921_v6  ;;  %4507 = vmatmul.mubr.msk.f32.gmra.mrb[68].mxu1 %vm188_vm0, %v2921_v6 }
 0xa61   :  { %3138 = vmatprep.mubr.f32.mxu0 %v5797_v8  ;;  %3311 = vmatprep.mubr.f32.mxu1 %v5797_v8 }
 0xa64   :  { %4490 = vmatmul.mubr.msk.f32.gmra.mrb[70].mxu0 %vm188_vm0, %v2922_v28  ;;  %4508 = vmatmul.mubr.msk.f32.gmra.mrb[70].mxu1 %vm188_vm0, %v2922_v28 }
 0xa65   :  { %3144 = vmatprep.mubr.f32.mxu0 %v5797_v8  ;;  %3317 = vmatprep.mubr.f32.mxu1 %v5797_v8 }
 0xa68   :  { %4491 = vmatmul.mubr.msk.f32.gmra.mrb[72].mxu0 %vm188_vm0, %v2923_v51  ;;  %4509 = vmatmul.mubr.msk.f32.gmra.mrb[72].mxu1 %vm188_vm0, %v2923_v51 }
 0xa8b   :  { %v6040_v35 = vpop.permute.xlu1 %3524  ;;  %v6111_v5 = vpop.permute.xlu0 %3534 }
 0xa8c   :  { %6803 = vst [vmem:[#allocation6_spill] sm:$0xff] %v6040_v35  ;;  %6806 = vst [vmem:[#allocation9_spill] sm:$0xff] %v6111_v5 }
 0xa8f   :  { %v6042_v47 = vpop.permute.xlu1 %3600  ;;  %v6125_v52 = vpop.permute.xlu0 %3602 }
 0xa90   :  { %v3616_v59 = vmul.f32 %v5797_v8, %v6042_v47 }
 0xa92   :  { %3646 = vrot.lane.b32.xlu0 %v3616_v59, %s4578_s4  ;;  %3636 = vrot.lane.b32.xlu1 %v3616_v59, %s4578_s4 }
 0xa94   :  { %v6139_v44 = vpop.permute.xlu0 %3606  ;;  %v6153_v42 = vpop.permute.xlu1 %3604 }
 0xa96   :  { %3714 = vrot.lane.b32.xlu0 %v3703_v25, %s4572_s26  ;;  %3712 = vrot.lane.b32.xlu1 %v3699_v45, %s4572_s26 }
 0xa9a   :  { %3718 = vrot.lane.b32.xlu0 %v3711_v62, %s4572_s26  ;;  %3716 = vrot.lane.b32.xlu1 %v3707_v9, %s4572_s26 }
 0xa9e   :  { %3914 = vrot.lane.b32.xlu0 %v3903_v15, %s4573_s1  ;;  %3912 = vrot.lane.b32.xlu1 %v3899_v61, %s4573_s1 }
 0xaa2   :  { %3918 = vrot.lane.b32.xlu0 %v3911_v19, %s4573_s1  ;;  %3916 = vrot.lane.b32.xlu1 %v3907_v58, %s4573_s1 }
 0xaa6   :  { %4026 = vrot.lane.b32.xlu0 %v4015_v33, %s4574_s0  ;;  %4024 = vrot.lane.b32.xlu1 %v4011_v7, %s4574_s0 }
 0xaaa   :  { %4030 = vrot.lane.b32.xlu0 %v4023_v60, %s4574_s0  ;;  %4028 = vrot.lane.b32.xlu1 %v4019_v29, %s4574_s0 }
 0xaae   :  { %4138 = vrot.lane.b32.xlu0 %v4127_v48, %s4575_s25  ;;  %4136 = vrot.lane.b32.xlu1 %v4123_v3, %s4575_s25 }
 0xab2   :  { %4142 = vrot.lane.b32.xlu0 %v4135_v31, %s4575_s25  ;;  %4140 = vrot.lane.b32.xlu1 %v4131_v46, %s4575_s25 }
 0xab6   :  { %4250 = vrot.lane.b32.xlu0 %v4239_v26, %s4576_s28  ;;  %4248 = vrot.lane.b32.xlu1 %v4235_v4, %s4576_s28 }
 0xaba   :  { %4254 = vrot.lane.b32.xlu0 %v4247_v22, %s4576_s28  ;;  %4252 = vrot.lane.b32.xlu1 %v4243_v36, %s4576_s28 }
 0xaf7   :  { %v6113_v1 = vpop.f32.mrb[38].mxu0  ;;  %v6115_v27 = vpop.f32.mrb[38].mxu1 }
 0xaf8   :  { %6807 = vst [vmem:[#allocation10_spill] sm:$0xff] %v6113_v1  ;;  %6808 = vst [vmem:[#allocation11_spill] sm:$0xff] %v6115_v27  ;;  %v6119_v49 = vpop.f32.mrb[39].mxu0  ;;  %v6121_v10 = vpop.f32.mrb[39].mxu1 }
 0xaf9   :  { %3324 = vst [vmem:[#allocation2 + $0x8] sm:$0xff] %v6113_v1  ;;  %3326 = vst [vmem:[#allocation2 + $0x18] sm:$0xff] %v6115_v27 }
 0xafa   :  { %6809 = vst [vmem:[#allocation12_spill] sm:$0xff] %v6119_v49  ;;  %6810 = vst [vmem:[#allocation13_spill] sm:$0xff] %v6121_v10 }
 0xafb   :  { %3325 = vst [vmem:[#allocation2 + $0x10] sm:$0xff] %v6119_v49  ;;  %3327 = vst [vmem:[#allocation2 + $0x20] sm:$0xff] %v6121_v10  ;;  %v6127_v39 = vpop.f32.mrb[40].mxu0  ;;  %v6129_v41 = vpop.f32.mrb[40].mxu1 }
 0xafc   :  { %6811 = vst [vmem:[#allocation14_spill] sm:$0xff] %v6127_v39  ;;  %6812 = vst [vmem:[#allocation15_spill] sm:$0xff] %v6129_v41  ;;  %v6133_v13 = vpop.f32.mrb[41].mxu0  ;;  %v6135_v57 = vpop.f32.mrb[41].mxu1 }
 0xafd   :  { %3328 = vst [vmem:[#allocation2 + $0x38] sm:$0xff] %v6127_v39  ;;  %3330 = vst [vmem:[#allocation2 + $0x48] sm:$0xff] %v6129_v41 }
 0xafe   :  { %6813 = vst [vmem:[#allocation16_spill] sm:$0xff] %v6133_v13  ;;  %6814 = vst [vmem:[#allocation17_spill] sm:$0xff] %v6135_v57 }
 0xaff   :  { %3329 = vst [vmem:[#allocation2 + $0x40] sm:$0xff] %v6133_v13  ;;  %3331 = vst [vmem:[#allocation2 + $0x50] sm:$0xff] %v6135_v57  ;;  %v6141_v2 = vpop.f32.mrb[42].mxu0  ;;  %v6143_v56 = vpop.f32.mrb[42].mxu1 }
 0xb00   :  { %3332 = vst [vmem:[#allocation2 + $0x68] sm:$0xff] %v6141_v2  ;;  %3334 = vst [vmem:[#allocation2 + $0x78] sm:$0xff] %v6143_v56  ;;  %v6147_v53 = vpop.f32.mrb[43].mxu0  ;;  %v6149_v40 = vpop.f32.mrb[43].mxu1 }
 0xb01   :  { %3333 = vst [vmem:[#allocation2 + $0x70] sm:$0xff] %v6147_v53  ;;  %3335 = vst [vmem:[#allocation2 + $0x80] sm:$0xff] %v6149_v40 }
 0xb03   :  { %v6155_v54 = vpop.f32.mrb[44].mxu0  ;;  %v6157_v32 = vpop.f32.mrb[44].mxu1 }
 0xb04   :  { %3336 = vst [vmem:[#allocation2 + $0x98] sm:$0xff] %v6155_v54  ;;  %3338 = vst [vmem:[#allocation2 + $0xa8] sm:$0xff] %v6157_v32  ;;  %v6161_v18 = vpop.f32.mrb[45].mxu0  ;;  %v6163_v43 = vpop.permute.xlu0 %3646 }
 0xb05   :  { %6815 = vst [vmem:[#allocation18_spill] sm:$0xff] %v6163_v43  ;;  %3337 = vst [vmem:[#allocation2 + $0xa0] sm:$0xff] %v6161_v18  ;;  %v6166_v6 = vpop.f32.mrb[45].mxu1  ;;  %v6168_v28 = vpop.permute.xlu1 %3636 }
 0xb06   :  { %6816 = vst [vmem:[#allocation19_spill] sm:$0xff] %v6168_v28  ;;  %3339 = vst [vmem:[#allocation2 + $0xb0] sm:$0xff] %v6166_v6 }
 0xb07   :  { %v6171_v51 = vpop.f32.mrb[46].mxu0  ;;  %v6173_v63 = vpop.f32.mrb[46].mxu1 }
 0xb08   :  { %3340 = vst [vmem:[#allocation2 + $0xc8] sm:$0xff] %v6171_v51  ;;  %v6176_v59 = vpop.permute.xlu0 %3714  ;;  %v6178_v25 = vpop.f32.mrb[47].mxu0  ;;  %3342 = vst [vmem:[#allocation2 + $0xd8] sm:$0xff] %v6173_v63 }
 0xb09   :  { %3341 = vst [vmem:[#allocation2 + $0xd0] sm:$0xff] %v6178_v25  ;;  %v6182_v45 = vpop.permute.xlu1 %3712  ;;  %v6184_v62 = vpop.f32.mrb[47].mxu1 }
 0xb0a   :  { %v3728_v9 = vmul.f32 %v5797_v8, %v6182_v45  ;;  %3343 = vst [vmem:[#allocation2 + $0xe0] sm:$0xff] %v6184_v62 }
 0xb0b   :  { %v6189_v55 = vpop.f32.mrb[48].mxu0  ;;  %v6191_v15 = vpop.f32.mrb[48].mxu1 }
 0xb0c   :  { %v6193_v61 = vpop.permute.xlu0 %3718  ;;  %3758 = vrot.lane.b32.xlu0 %v3728_v9, %s4570_s24  ;;  %3748 = vrot.lane.b32.xlu1 %v3728_v9, %s4570_s24  ;;  %v6197_v19 = vpop.f32.mrb[49].mxu0 }
 0xb0d   :  { %v6199_v58 = vpop.f32.mrb[49].mxu1  ;;  %v6201_v38 = vpop.permute.xlu1 %3716 }
 0xb0f   :  { %v6203_v33 = vpop.f32.mrb[50].mxu0  ;;  %v6205_v7 = vpop.f32.mrb[50].mxu1 }
 0xb10   :  { %v6207_v60 = vpop.permute.xlu0 %3914  ;;  %v6209_v29 = vpop.f32.mrb[51].mxu0 }
 0xb11   :  { %6817 = vst [vmem:[#allocation20_spill] sm:$0xff] %v6207_v60  ;;  %v6211_v30 = vpop.f32.mrb[51].mxu1  ;;  %v6213_v48 = vpop.permute.xlu1 %3912 }
 0xb12   :  { %6818 = vst [vmem:[#allocation21_spill] sm:$0xff] %v6213_v48 }
 0xb13   :  { %v6215_v3 = vpop.f32.mrb[52].mxu0  ;;  %v6217_v31 = vpop.f32.mrb[52].mxu1 }
 0xb14   :  { %v6219_v46 = vpop.permute.xlu0 %3918  ;;  %v6221_v23 = vpop.f32.mrb[53].mxu0 }
 0xb15   :  { %6819 = vst [vmem:[#allocation22_spill] sm:$0xff] %v6219_v46  ;;  %v3932_v26 = vmul.f32 %v5797_v8, %v6219_v46  ;;  %v6225_v4 = vpop.f32.mrb[53].mxu1  ;;  %v6227_v22 = vpop.permute.xlu1 %3916 }
 0xb16   :  { %6820 = vst [vmem:[#allocation23_spill] sm:$0xff] %v6227_v22 }
 0xb17   :  { %3966 = vrot.lane.b32.xlu0 %v3932_v26, %s4581_s7  ;;  %3956 = vrot.lane.b32.xlu1 %v3932_v26, %s4581_s7  ;;  %v6231_v36 = vpop.f32.mrb[54].mxu0  ;;  %v6233_v9 = vpop.f32.mrb[54].mxu1 }
 0xb18   :  { %6821 = vst [vmem:[#allocation24_spill] sm:$0xff] %v6231_v36  ;;  %6822 = vst [vmem:[#allocation25_spill] sm:$0xff] %v6233_v9  ;;  %v4027_v43 = vpop.permute.xlu0 %4026  ;;  %v6235_v5 = vpop.f32.mrb[55].mxu0 }
 0xb19   :  { %v6237_v28 = vpop.f32.mrb[55].mxu1  ;;  %v6239_v41 = vpop.permute.xlu1 %4024 }
 0xb1b   :  { %v6241_v13 = vpop.f32.mrb[56].mxu0  ;;  %v6243_v35 = vpop.f32.mrb[56].mxu1 }
 0xb1c   :  { %6823 = vst [vmem:[#allocation26_spill] sm:$0xff] %v6241_v13  ;;  %6824 = vst [vmem:[#allocation27_spill] sm:$0xff] %v6243_v35  ;;  %v4031_v39 = vpop.permute.xlu0 %4030  ;;  %v6245_v57 = vpop.f32.mrb[57].mxu0 }
 0xb1d   :  { %6825 = vst [vmem:[#allocation28_spill] sm:$0xff] %v6245_v57  ;;  %v4044_v26 = vmul.f32 %v5797_v8, %v4031_v39  ;;  %v6248_v27 = vpop.f32.mrb[57].mxu1  ;;  %v4029_v10 = vpop.permute.xlu1 %4028 }
 0xb1e   :  { %6826 = vst [vmem:[#allocation29_spill] sm:$0xff] %v6248_v27 }
 0xb1f   :  { %4078 = vrot.lane.b32.xlu0 %v4044_v26, %s4579_s27  ;;  %4068 = vrot.lane.b32.xlu1 %v4044_v26, %s4579_s27  ;;  %v6252_v14 = vpop.f32.mrb[58].mxu0  ;;  %v6254_v49 = vpop.f32.mrb[58].mxu1 }
 0xb20   :  { %6827 = vst [vmem:[#allocation30_spill] sm:$0xff] %v6252_v14  ;;  %6828 = vst [vmem:[#allocation31_spill] sm:$0xff] %v6254_v49  ;;  %v4139_v1 = vpop.permute.xlu0 %4138  ;;  %v6262_v50 = vpop.f32.mrb[59].mxu0 }
 0xb21   :  { %6829 = vst [vmem:[#allocation32_spill] sm:$0xff] %v6262_v50  ;;  %v6264_v22 = vpop.f32.mrb[59].mxu1  ;;  %v6266_v46 = vpop.permute.xlu1 %4136  ;;  %v4032_v50 = vsel %vm1186_vm8, %v6239_v41, %v4027_v43 }
 0xb22   :  { %6830 = vst [vmem:[#allocation33_spill] sm:$0xff] %v6264_v22 }
 0xb23   :  { %4341 = vperm.xlu0 %4549, %v4333_v16   ;;  %4336 = vperm.xlu1 %4550, %v4332_v24   ;;  %v6268_v26 = vpop.f32.mrb[60].mxu0  ;;  %v6270_v49 = vpop.f32.mrb[60].mxu1  ;;  %v4033_v24 = vsel %vm1186_vm8, %v4027_v43, %v4029_v10  ;;  %v3498_v43 = vsel %vm813_vm4, %v6038_v17, %v6109_v11 }
 0xb24   :  { %6831 = vst [vmem:[#allocation34_spill] sm:$0xff] %v6268_v26  ;;  %6832 = vst [vmem:[#allocation35_spill] sm:$0xff] %v6270_v49  ;;  %v4143_v14 = vpop.permute.xlu0 %4142  ;;  %v6272_v35 = vpop.f32.mrb[61].mxu0  ;;  %v3496_v49 = vsel %vm813_vm4, %v5874_v0, %v6107_v12 }
 0xb25   :  { %6833 = vst [vmem:[#allocation36_spill] sm:$0xff] %v6272_v35  ;;  %v4156_v48 = vmul.f32 %v5797_v8, %v4143_v14  ;;  %v6275_v60 = vpop.f32.mrb[61].mxu1  ;;  %v4141_v13 = vpop.permute.xlu1 %4140  ;;  %v3505_v9 = vmul.f32 %v3496_v49, %v6141_v2 }
 0xb26   :  { %6834 = vst [vmem:[#allocation37_spill] sm:$0xff] %v6275_v60 }
 0xb27   :  { %4190 = vrot.lane.b32.xlu0 %v4156_v48, %s4582_s22  ;;  %4180 = vrot.lane.b32.xlu1 %v4156_v48, %s4582_s22  ;;  %v6279_v22 = vpop.f32.mrb[62].mxu0  ;;  %v3289_v16 = vpop.f32.mrb[62].mxu1 }
 0xb28   :  { %6835 = vst [vmem:[#allocation38_spill] sm:$0xff] %v6279_v22  ;;  %v4251_v26 = vpop.permute.xlu0 %4250  ;;  %v3118_v35 = vpop.f32.mrb[63].mxu0  ;;  %v6287_v60 = vmul.f32 %v4033_v24, %v3289_v16  ;;  %v4034_v22 = vsel %vm1186_vm8, %v4029_v10, %v4031_v39  ;;  %v3507_v10 = vmul.f32 %v3498_v43, %v6143_v56 }
 0xb29   :  { %v3291_v27 = vpop.f32.mrb[63].mxu1  ;;  %v6290_v48 = vmul.f32 %v4032_v50, %v3118_v35  ;;  %v6295_v36 = vpop.permute.xlu1 %4248 }
 0xb2a   :  { %6836 = vst [vmem:[#allocation39_spill] sm:$0xff] %v6287_v60  ;;  %v6293_v20 = vmul.f32 %v4034_v22, %v3291_v27 }
 0xb2b   :  { %3526 = vrot.lane.b32.xlu0 %v3505_v9, %s4572_s26  ;;  %v6298_v0 = vpop.f32.mrb[64].mxu0  ;;  %v3295_v57 = vpop.f32.mrb[64].mxu1 }
 0xb2c   :  { %6837 = vst [vmem:[#allocation40_spill] sm:$0xff] %v6298_v0  ;;  %v6303_v16 = vpop.permute.xlu0 %4254  ;;  %v3124_v2 = vpop.f32.mrb[65].mxu0  ;;  %v6305_v35 = vmul.f32 %v4033_v24, %v3295_v57  ;;  %v4145_v24 = vsel %vm188_vm0, %v4139_v1, %v4141_v13 }
 0xb2d   :  { %6838 = vst [vmem:[#allocation41_spill] sm:$0xff] %v6303_v16  ;;  %v6309_v27 = vmul.f32 %v5797_v8, %v6303_v16  ;;  %v6312_v39 = vmul.f32 %v4032_v50, %v3124_v2  ;;  %v3297_v9 = vpop.f32.mrb[65].mxu1  ;;  %v3497_v8 = vsel %vm813_vm4, %v6107_v12, %v6038_v17  ;;  %v4146_v2 = vsel %vm188_vm0, %v4141_v13, %v4143_v14 }
 0xb2e   :  { %v6314_v60 = vmul.f32 %v4034_v22, %v3297_v9  ;;  %v4144_v22 = vsel %vm188_vm0, %v6266_v46, %v4139_v1  ;;  %v3511_v9 = vmul.f32 %v3497_v8, %v6161_v18  ;;  %v3508_v18 = vmul.f32 %v6109_v11, %v6149_v40 }
 0xb2f   :  { %6839 = vst [vmem:[#allocation42_spill] sm:$0xff] %v6309_v27  ;;  %3530 = vrot.lane.b32.xlu0 %v3507_v10, %s4572_s26  ;;  %4292 = vrot.lane.b32.xlu1 %v6309_v27, %s6800_s13  ;;  %v6319_v0 = vpop.f32.mrb[66].mxu0  ;;  %v3301_v57 = vpop.f32.mrb[66].mxu1  ;;  %v3506_v27 = vmul.f32 %v3497_v8, %v6147_v53  ;;  %v3513_v53 = vmul.f32 %v6109_v11, %v6166_v6 }
 0xb30   :  { %6840 = vst [vmem:[#allocation43_spill] sm:$0xff] %v6314_v60  ;;  %6841 = vst [vmem:[#allocation44_spill] sm:$0xff] %v6319_v0  ;;  %v3130_v56 = vpop.f32.mrb[67].mxu0  ;;  %v3303_v50 = vpop.f32.mrb[67].mxu1  ;;  %v6328_v10 = vmul.f32 %v4145_v24, %v3301_v57  ;;  %v3608_v6 = vsel %vm894_vm5, %v6042_v47, %v6125_v52  ;;  %v4256_v40 = vsel %vm1342_vm9, %v6295_v36, %v4251_v26 }
 0xb31   :  { %v6332_v16 = vmul.f32 %v4144_v22, %v3130_v56  ;;  %v6334_v0 = vmul.f32 %v4146_v2, %v3303_v50  ;;  %v6336_v60 = vpop.permute.xlu1 %4252 }
 0xb33   :  { %3538 = vrot.lane.b32.xlu0 %v3511_v9, %s4572_s26  ;;  %3528 = vrot.lane.b32.xlu1 %v3506_v27, %s4572_s26  ;;  %v6340_v17 = vpop.f32.mrb[68].mxu0  ;;  %v3307_v12 = vpop.f32.mrb[68].mxu1  ;;  %v3510_v9 = vmul.f32 %v3496_v49, %v6155_v54  ;;  %v3512_v54 = vmul.f32 %v3498_v43, %v6157_v32  ;;  %v3625_v32 = vmul.f32 %v6139_v44, %v6199_v58  ;;  %v6843_v43 = vld [vmem:[#allocation24_spill] sm:$0xff] }
 0xb34   :  { %v3136_v14 = vpop.f32.mrb[69].mxu0  ;;  %v3309_v1 = vpop.f32.mrb[69].mxu1  ;;  %v6342_v13 = vmul.f32 %v4145_v24, %v3307_v12  ;;  %v4257_v24 = vsel %vm1342_vm9, %v4251_v26, %v6336_v60 }
 0xb35   :  { %v6348_v57 = vmul.f32 %v4144_v22, %v3136_v14  ;;  %v6350_v8 = vmul.f32 %v4146_v2, %v3309_v1  ;;  %v3617_v2 = vmul.f32 %v3608_v6, %v6171_v51  ;;  %v3610_v1 = vsel %vm894_vm5, %v6153_v42, %v6139_v44 }
 0xb36   :  { %v3619_v49 = vmul.f32 %v3610_v1, %v6173_v63  ;;  %v3620_v63 = vmul.f32 %v6139_v44, %v6184_v62  ;;  %v3722_v44 = vsel %vm847_vm6, %v6201_v38, %v6193_v61 }
 0xb37   :  { %3542 = vrot.lane.b32.xlu0 %v3513_v53, %s4572_s26  ;;  %3532 = vrot.lane.b32.xlu1 %v3508_v18, %s4572_s26  ;;  %v6354_v27 = vpop.f32.mrb[70].mxu0  ;;  %v3313_v56 = vpop.f32.mrb[70].mxu1  ;;  %v3731_v62 = vmul.f32 %v3722_v44, %v6205_v7  ;;  %v3737_v7 = vmul.f32 %v6193_v61, %v6225_v4 }
 0xb38   :  { %v3142_v50 = vpop.f32.mrb[71].mxu0  ;;  %v6361_v11 = vpop.f32.mrb[71].mxu1  ;;  %v6365_v22 = vmul.f32 %v4257_v24, %v3313_v56  ;;  %v3609_v56 = vsel %vm894_vm5, %v6125_v52, %v6153_v42  ;;  %v3720_v52 = vsel %vm847_vm6, %v6182_v45, %v6176_v59  ;;  %v3721_v45 = vsel %vm847_vm6, %v6176_v59, %v6201_v38 }
 0xb39   :  { %v6369_v12 = vmul.f32 %v4256_v40, %v3142_v50  ;;  %v3618_v50 = vmul.f32 %v3609_v56, %v6178_v25  ;;  %v3729_v42 = vmul.f32 %v3720_v52, %v6203_v33  ;;  %v3622_v25 = vmul.f32 %v3608_v6, %v6189_v55  ;;  %v4513_v55 = vld [vmem:[%s6798_s21 + $0x4] ss:$8 sm:$0xf] }
 0xb3a   :  { %v3730_v58 = vmul.f32 %v3721_v45, %v6209_v29  ;;  %v3735_v33 = vmul.f32 %v3721_v45, %v6221_v23  ;;  %v3732_v59 = vmul.f32 %v6193_v61, %v6211_v30  ;;  %v3821_v29 = vrot.slane %v4513_v55, %v4792_v37  ;;  %v6842_v30 = vld [vmem:[#allocation28_spill] sm:$0xff]  ;;  %v6845_v6 = vld [vmem:[#allocation29_spill] sm:$0xff] }
 0xb3b   :  { %3638 = vrot.lane.b32.xlu0 %v3617_v2, %s4578_s4  ;;  %3536 = vrot.lane.b32.xlu1 %v3510_v9, %s4572_s26  ;;  %v6373_v14 = vpop.f32.mrb[72].mxu0  ;;  %v3319_v47 = vpop.f32.mrb[72].mxu1  ;;  %v3623_v2 = vmul.f32 %v3609_v56, %v6197_v19  ;;  %v3624_v19 = vmul.f32 %v3610_v1, %v6191_v15  ;;  %v3813_v15 = vrot.slane %v4513_v55, %v4784_v34  ;;  %v6849_v1 = vld [vmem:[#allocation21_spill] sm:$0xff]  ;;  %v6851_v56 = vld [vmem:[#allocation27_spill] sm:$0xff] }
 0xb3c   :  { %v3148_v26 = vpop.f32.mrb[73].mxu0  ;;  %v6378_v53 = vpop.f32.mrb[73].mxu1  ;;  %v6380_v18 = vmul.f32 %v4257_v24, %v3319_v47  ;;  %v3734_v23 = vmul.f32 %v3720_v52, %v6215_v3  ;;  %v3829_v34 = vmul.f32 %v3821_v29, %v6237_v28  ;;  %v3809_v4 = vrot.slane %v4513_v55, %v4742_v21  ;;  %v6844_v24 = vld [vmem:[#allocation3_spill] sm:$0xff]  ;;  %v6848_v47 = vld [vmem:[#allocation20_spill] sm:$0xff]  ;;  %v6854_v52 = vld [vmem:[#allocation33_spill] sm:$0xff] }
 0xb3d   :  { %v6384_v51 = vmul.f32 %v4256_v40, %v3148_v26  ;;  %v3827_v38 = vmul.f32 %v3813_v15, %v6235_v5  ;;  %v3736_v61 = vmul.f32 %v3722_v44, %v6217_v31  ;;  %v3831_v5 = vmul.f32 %v3813_v15, %v6842_v30  ;;  %v6846_v40 = vld [vmem:[#allocation25_spill] sm:$0xff]  ;;  %v6847_v31 = vld [vmem:[#allocation26_spill] sm:$0xff] }
 0xb3e   :  { %v3826_v37 = vmul.f32 %v3809_v4, %v6843_v43  ;;  %v3817_v3 = vrot.slane %v4513_v55, %v6844_v24  ;;  %v3833_v28 = vmul.f32 %v3821_v29, %v6845_v6  ;;  %v3830_v9 = vmul.f32 %v3809_v4, %v6847_v31  ;;  %v6857_v55 = vld [vmem:[#allocation31_spill] sm:$0xff]  ;;  %v6862_v4 = vld [vmem:[#allocation40_spill] sm:$0xff] }
 0xb3f   :  { %3642 = vrot.lane.b32.xlu0 %v3619_v49, %s4578_s4  ;;  %3540 = vrot.lane.b32.xlu1 %v3512_v54, %s4572_s26  ;;  %v3920_v26 = vsel %vm1105_vm7, %v6849_v1, %v6848_v47  ;;  %v6850_v49 = vld [vmem:[#allocation32_spill] sm:$0xff] }
 0xb40   :  { %v3828_v21 = vmul.f32 %v3817_v3, %v6846_v40  ;;  %v3929_v54 = vmul.f32 %v3920_v26, %v6850_v49 }
 0xb43   :  { %3650 = vrot.lane.b32.xlu0 %v3623_v2, %s4578_s4  ;;  %3640 = vrot.lane.b32.xlu1 %v3618_v50, %s4578_s4  ;;  %v3832_v50 = vmul.f32 %v3817_v3, %v6851_v56  ;;  %v6852_v2 = vld [vmem:[#allocation22_spill] sm:$0xff]  ;;  %v6869_v3 = vld [vmem:[#allocation4_spill] sm:$0xff] }
 0xb44   :  { %v6873_v56 = vld [vmem:[#allocation8_spill] sm:$0xff] }
 0xb47   :  { %3654 = vrot.lane.b32.xlu0 %v3625_v32, %s4578_s4  ;;  %3644 = vrot.lane.b32.xlu1 %v3620_v63, %s4578_s4  ;;  %v6853_v32 = vld [vmem:[#allocation23_spill] sm:$0xff] }
 0xb48   :  { %v3922_v63 = vsel %vm1105_vm7, %v6853_v32, %v6852_v2  ;;  %v3921_v45 = vsel %vm1105_vm7, %v6848_v47, %v6853_v32  ;;  %v6874_v2 = vld [vmem:[#allocation13_spill] sm:$0xff]  ;;  %v6875_v32 = vld [vmem:[#allocation11_spill] sm:$0xff] }
 0xb4b   :  { %3750 = vrot.lane.b32.xlu0 %v3729_v42, %s4570_s24  ;;  %3648 = vrot.lane.b32.xlu1 %v3622_v25, %s4578_s4  ;;  %v3931_v42 = vmul.f32 %v3922_v63, %v6854_v52  ;;  %v6855_v25 = vld [vmem:[#allocation30_spill] sm:$0xff] }
 0xb4c   :  { %v3928_v44 = vmul.f32 %v6849_v1, %v6855_v25 }
 0xb4f   :  { %3754 = vrot.lane.b32.xlu0 %v3731_v62, %s4570_s24  ;;  %3652 = vrot.lane.b32.xlu1 %v3624_v19, %s4578_s4  ;;  %v6856_v62 = vld [vmem:[#allocation34_spill] sm:$0xff] }
 0xb50   :  { %v3933_v19 = vmul.f32 %v6849_v1, %v6856_v62 }
 0xb53   :  { %3762 = vrot.lane.b32.xlu0 %v3735_v33, %s4570_s24  ;;  %3752 = vrot.lane.b32.xlu1 %v3730_v58, %s4570_s24  ;;  %v3930_v58 = vmul.f32 %v3921_v45, %v6857_v55  ;;  %v6858_v33 = vld [vmem:[#allocation35_spill] sm:$0xff]  ;;  %v6877_v55 = vld [vmem:[#allocation14_spill] sm:$0xff] }
 0xb54   :  { %v3935_v15 = vmul.f32 %v3921_v45, %v6858_v33 }
 0xb57   :  { %3766 = vrot.lane.b32.xlu0 %v3737_v7, %s4570_s24  ;;  %3756 = vrot.lane.b32.xlu1 %v3732_v59, %s4570_s24  ;;  %v6859_v7 = vld [vmem:[#allocation36_spill] sm:$0xff] }
 0xb58   :  { %v3934_v59 = vmul.f32 %v3920_v26, %v6859_v7  ;;  %v6878_v7 = vld [vmem:[#allocation6_spill] sm:$0xff] }
 0xb5b   :  { %3844 = vrot.lane.b32.xlu0 %v3827_v38, %s4577_s3  ;;  %3760 = vrot.lane.b32.xlu1 %v3734_v23, %s4570_s24  ;;  %v6860_v38 = vld [vmem:[#allocation37_spill] sm:$0xff]  ;;  %v6861_v23 = vld [vmem:[#allocation38_spill] sm:$0xff] }
 0xb5c   :  { %v3936_v29 = vmul.f32 %v3922_v63, %v6860_v38 }
 0xb5f   :  { %3848 = vrot.lane.b32.xlu0 %v3829_v34, %s4577_s3  ;;  %3764 = vrot.lane.b32.xlu1 %v3736_v61, %s4570_s24  ;;  %v4040_v34 = vmul.f32 %v6239_v41, %v6861_v23  ;;  %v4045_v61 = vmul.f32 %v6239_v41, %v6862_v4  ;;  %v6865_v41 = vld [vmem:[#allocation44_spill] sm:$0xff] }
 0xb60   :  { %v4152_v30 = vmul.f32 %v6266_v46, %v6865_v41  ;;  %v4567_v23 = vld [vmem:[#allocation2 + $0x28] sm:$0xff]  ;;  %v6880_v41 = vld [vmem:[#allocation15_spill] sm:$0xff] }
 0xb63   :  { %3852 = vrot.lane.b32.xlu0 %v3831_v5, %s4577_s3  ;;  %3842 = vrot.lane.b32.xlu1 %v3826_v37, %s4577_s3 }
 0xb67   :  { %3856 = vrot.lane.b32.xlu0 %v3833_v28, %s4577_s3  ;;  %3846 = vrot.lane.b32.xlu1 %v3828_v21, %s4577_s3  ;;  %v6870_v28 = vld [vmem:[#allocation5_spill] sm:$0xff] }
 0xb6b   :  { %3950 = vrot.lane.b32.xlu0 %v3929_v54, %s4581_s7  ;;  %3850 = vrot.lane.b32.xlu1 %v3830_v9, %s4577_s3  ;;  %v6872_v9 = vld [vmem:[#allocation12_spill] sm:$0xff] }
 0xb6f   :  { %3954 = vrot.lane.b32.xlu0 %v3931_v42, %s4581_s7  ;;  %3854 = vrot.lane.b32.xlu1 %v3832_v50, %s4577_s3  ;;  %v3434_v50 = vsel %vm762_vm11, %v6870_v28, %v6873_v56 }
 0xb70   :  { %v3443_v63 = vmul.f32 %v3434_v50, %v6875_v32 }
 0xb73   :  { %3958 = vrot.lane.b32.xlu0 %v3933_v19, %s4581_s7  ;;  %3948 = vrot.lane.b32.xlu1 %v3928_v44, %s4581_s7  ;;  %v6876_v19 = vld [vmem:[#allocation17_spill] sm:$0xff] }
 0xb74   :  { %v3449_v45 = vmul.f32 %v6873_v56, %v6876_v19 }
 0xb77   :  { %3962 = vrot.lane.b32.xlu0 %v3935_v15, %s4581_s7  ;;  %3952 = vrot.lane.b32.xlu1 %v3930_v58, %s4581_s7 }
 0xb7b   :  { %4062 = vrot.lane.b32.xlu0 %v6290_v48, %s4579_s27  ;;  %3960 = vrot.lane.b32.xlu1 %v3934_v59, %s4581_s7  ;;  %v6863_v48 = vld [vmem:[#allocation39_spill] sm:$0xff] }
 0xb7e   :  { %v6512_v5 = vpop.permute.xlu0 %3758 }
 0xb7f   :  { %4066 = vrot.lane.b32.xlu0 %v6293_v20, %s4579_s27  ;;  %3964 = vrot.lane.b32.xlu1 %v3936_v29, %s4581_s7  ;;  %v6864_v20 = vld [vmem:[#allocation43_spill] sm:$0xff] }
 0xb83   :  { %4070 = vrot.lane.b32.xlu0 %v4045_v61, %s4579_s27  ;;  %4060 = vrot.lane.b32.xlu1 %v4040_v34, %s4579_s27  ;;  %v3440_v34 = vmul.f32 %v4567_v23, %v6869_v3 }
 0xb87   :  { %4074 = vrot.lane.b32.xlu0 %v6305_v35, %s4579_s27  ;;  %4064 = vrot.lane.b32.xlu1 %v6863_v48, %s4579_s27  ;;  %v4157_v35 = vmul.f32 %v6266_v46, %v6340_v17  ;;  %v6866_v46 = vld [vmem:[#allocation41_spill] sm:$0xff]  ;;  %v6879_v48 = vld [vmem:[#allocation16_spill] sm:$0xff] }
 0xb88   :  { %v4258_v17 = vsel %vm1342_vm9, %v6336_v60, %v6866_v46 }
 0xb89   :  { %v4267_v43 = vmul.f32 %v4258_v17, %v6361_v11  ;;  %v4272_v40 = vmul.f32 %v4258_v17, %v6378_v53  ;;  %v3444_v53 = vmul.f32 %v6873_v56, %v6874_v2 }
 0xb8b   :  { %4174 = vrot.lane.b32.xlu0 %v6332_v16, %s4582_s22  ;;  %4072 = vrot.lane.b32.xlu1 %v6312_v39, %s4579_s27  ;;  %v6510_v16 = vpop.permute.xlu1 %3748  ;;  %v6520_v39 = vpop.permute.xlu0 %3966 }
 0xb8f   :  { %4178 = vrot.lane.b32.xlu0 %v6334_v0, %s4582_s22  ;;  %4076 = vrot.lane.b32.xlu1 %v6864_v20, %s4579_s27  ;;  %v6518_v0 = vpop.permute.xlu1 %3956 }
 0xb91   :  { %v6532_v37 = vpop.permute.xlu0 %4078 }
 0xb93   :  { %4182 = vrot.lane.b32.xlu0 %v4157_v35, %s4582_s22  ;;  %4172 = vrot.lane.b32.xlu1 %v4152_v30, %s4582_s22  ;;  %v3448_v30 = vmul.f32 %v3434_v50, %v6880_v41 }
 0xb97   :  { %4186 = vrot.lane.b32.xlu0 %v6342_v13, %s4582_s22  ;;  %4176 = vrot.lane.b32.xlu1 %v6328_v10, %s4582_s22  ;;  %v6530_v13 = vpop.permute.xlu1 %4068  ;;  %v4264_v10 = vmul.f32 %v6295_v36, %v6354_v27  ;;  %v6867_v27 = vld [vmem:[#allocation42_spill] sm:$0xff] }
 0xb9b   :  { %4286 = vrot.lane.b32.xlu0 %v6369_v12, %s6800_s13  ;;  %4184 = vrot.lane.b32.xlu1 %v6348_v57, %s4582_s22  ;;  %v4269_v57 = vmul.f32 %v6295_v36, %v6373_v14  ;;  %v6868_v14 = vld [vmem:[#allocation7_spill] sm:$0xff] }
 0xb9c   :  { %v3432_v6 = vsel %vm762_vm11, %v6869_v3, %v6868_v14 }
 0xb9d   :  { %v3446_v58 = vmul.f32 %v3432_v6, %v6877_v55 }
 0xb9f   :  { %4188 = vrot.lane.b32.xlu1 %v6350_v8, %s4582_s22  ;;  %4290 = vrot.lane.b32.xlu0 %v4267_v43, %s6800_s13 }
 0xba2   :  { %v6541_v12 = vpop.permute.xlu1 %4336  ;;  %v6543_v60 = vpop.permute.xlu0 %4341 }
 0xba3   :  { %4284 = vrot.lane.b32.xlu1 %v4264_v10, %s6800_s13  ;;  %4294 = vrot.lane.b32.xlu0 %v4269_v57, %s6800_s13  ;;  %v6881_v10 = vld [vmem:[#allocation19_spill] sm:$0xff] }
 0xba6   :  { %v6547_v11 = vpop.permute.xlu1 %4180  ;;  %v6549_v24 = vpop.permute.xlu0 %4190 }
 0xba7   :  { %4288 = vrot.lane.b32.xlu1 %v6365_v22, %s6800_s13  ;;  %4298 = vrot.lane.b32.xlu0 %v6380_v18, %s6800_s13  ;;  %v3433_v22 = vsel %vm762_vm11, %v6868_v14, %v6870_v28  ;;  %v6871_v18 = vld [vmem:[#allocation10_spill] sm:$0xff] }
 0xba8   :  { %v3441_v21 = vmul.f32 %v3432_v6, %v6871_v18  ;;  %v3442_v47 = vmul.f32 %v3433_v22, %v6872_v9  ;;  %v3447_v20 = vmul.f32 %v3433_v22, %v6879_v48  ;;  %v6882_v9 = vld [vmem:[#allocation9_spill] sm:$0xff] }
 0xbaa   :  { %v6555_v8 = vpop.permute.xlu1 %4292  ;;  %v3527_v36 = vpop.permute.xlu0 %3526 }
 0xbab   :  { %4296 = vrot.lane.b32.xlu1 %v6384_v51, %s6800_s13  ;;  %4302 = vrot.lane.b32.xlu0 %v6867_v27, %s6800_s13  ;;  %v3544_v59 = vsel %vm847_vm6, %v6878_v7, %v3527_v36 }
 0xbac   :  { %v3562_v61 = vadd.f32 %v3544_v59, %v3440_v34 }
 0xbae   :  { %v3529_v31 = vpop.permute.xlu1 %3528  ;;  %v3531_v1 = vpop.permute.xlu0 %3530 }
 0xbaf   :  { %v3545_v51 = vsel %vm847_vm6, %v3527_v36, %v3529_v31  ;;  %v3546_v26 = vsel %vm847_vm6, %v3529_v31, %v3531_v1  ;;  %4300 = vrot.lane.b32.xlu1 %v4272_v40, %s6800_s13 }
 0xbb0   :  { %v3563_v49 = vadd.f32 %v3545_v51, %v3441_v21  ;;  %v3564_v54 = vadd.f32 %v3546_v26, %v3442_v47 }
 0xbb2   :  { %v3533_v52 = vpop.permute.xlu1 %3532  ;;  %v3539_v42 = vpop.permute.xlu0 %3538 }
 0xbb3   :  { %v3547_v25 = vsel %vm847_vm6, %v3531_v1, %v3533_v52  ;;  %v3566_v44 = vadd.f32 %v3533_v52, %v3444_v53  ;;  %v6883_v53 = vld [vmem:[#allocation18_spill] sm:$0xff] }
 0xbb4   :  { %v3565_v62 = vadd.f32 %v3547_v25, %v3443_v63 }
 0xbb6   :  { %v3537_v33 = vpop.permute.xlu1 %3536  ;;  %v3543_v15 = vpop.permute.xlu0 %3542 }
 0xbb7   :  { %v3549_v38 = vsel %vm847_vm6, %v3537_v33, %v3539_v42  ;;  %v3571_v29 = vadd.f32 %v3543_v15, %v3449_v45  ;;  %v3548_v47 = vsel %vm847_vm6, %v6882_v9, %v3537_v33 }
 0xbb8   :  { %v3568_v4 = vadd.f32 %v3549_v38, %v3446_v58  ;;  %v3567_v56 = vadd.f32 %v3548_v47, %v3440_v34 }
 0xbba   :  { %v3541_v35 = vpop.permute.xlu1 %3540  ;;  %v3639_v46 = vpop.permute.xlu0 %3638 }
 0xbbb   :  { %v3550_v17 = vsel %vm847_vm6, %v3539_v42, %v3541_v35  ;;  %v3551_v43 = vsel %vm847_vm6, %v3541_v35, %v3543_v15  ;;  %v3656_v57 = vsel %vm923_vm10, %v6881_v10, %v3639_v46 }
 0xbbc   :  { %v3569_v36 = vadd.f32 %v3550_v17, %v3447_v20  ;;  %v3570_v27 = vadd.f32 %v3551_v43, %v3448_v30  ;;  %v3674_v14 = vadd.f32 %v3656_v57, %v3562_v61 }
 0xbbe   :  { %v3641_v6 = vpop.permute.xlu1 %3640  ;;  %v3643_v3 = vpop.permute.xlu0 %3642 }
 0xbbf   :  { %v3657_v28 = vsel %vm923_vm10, %v3639_v46, %v3641_v6  ;;  %v3658_v22 = vsel %vm923_vm10, %v3641_v6, %v3643_v3 }
 0xbc0   :  { %v3675_v40 = vadd.f32 %v3657_v28, %v3563_v49  ;;  %v3676_v18 = vadd.f32 %v3658_v22, %v3564_v54 }
 0xbc2   :  { %v3645_v21 = vpop.permute.xlu1 %3644  ;;  %v3651_v31 = vpop.permute.xlu0 %3650 }
 0xbc3   :  { %v3659_v1 = vsel %vm923_vm10, %v3643_v3, %v3645_v21  ;;  %v3678_v51 = vadd.f32 %v3645_v21, %v3566_v44 }
 0xbc4   :  { %v3677_v26 = vadd.f32 %v3659_v1, %v3565_v62 }
 0xbc6   :  { %v3649_v50 = vpop.permute.xlu1 %3648  ;;  %v3655_v2 = vpop.permute.xlu0 %3654 }
 0xbc7   :  { %v3660_v32 = vsel %vm923_vm10, %v6883_v53, %v3649_v50  ;;  %v3661_v63 = vsel %vm923_vm10, %v3649_v50, %v3651_v31  ;;  %v3683_v52 = vadd.f32 %v3655_v2, %v3571_v29 }
 0xbc8   :  { %v3679_v49 = vadd.f32 %v3660_v32, %v3567_v56  ;;  %v3680_v54 = vadd.f32 %v3661_v63, %v3568_v4 }
 0xbca   :  { %v3653_v42 = vpop.permute.xlu1 %3652  ;;  %v3751_v25 = vpop.permute.xlu0 %3750 }
 0xbcb   :  { %v3662_v19 = vsel %vm923_vm10, %v3651_v31, %v3653_v42  ;;  %v3663_v45 = vsel %vm923_vm10, %v3653_v42, %v3655_v2  ;;  %v3768_v44 = vsel %vm813_vm4, %v6510_v16, %v3751_v25 }
 0xbcc   :  { %v3681_v62 = vadd.f32 %v3662_v19, %v3569_v36  ;;  %v3682_v55 = vadd.f32 %v3663_v45, %v3570_v27  ;;  %v3786_v58 = vadd.f32 %v3768_v44, %v3674_v14 }
 0xbce   :  { %v3753_v33 = vpop.permute.xlu1 %3752  ;;  %v3755_v15 = vpop.permute.xlu0 %3754 }
 0xbcf   :  { %v3769_v7 = vsel %vm813_vm4, %v3751_v25, %v3753_v33  ;;  %v3770_v59 = vsel %vm813_vm4, %v3753_v33, %v3755_v15 }
 0xbd0   :  { %v3787_v38 = vadd.f32 %v3769_v7, %v3675_v40  ;;  %v3788_v29 = vadd.f32 %v3770_v59, %v3676_v18 }
 0xbd2   :  { %v3757_v23 = vpop.permute.xlu1 %3756  ;;  %v3763_v34 = vpop.permute.xlu0 %3762 }
 0xbd3   :  { %v3771_v4 = vsel %vm813_vm4, %v3755_v15, %v3757_v23  ;;  %v3790_v61 = vadd.f32 %v3757_v23, %v3678_v51 }
 0xbd4   :  { %v3789_v48 = vadd.f32 %v3771_v4, %v3677_v26 }
 0xbd6   :  { %v3761_v20 = vpop.permute.xlu1 %3760  ;;  %v3767_v41 = vpop.permute.xlu0 %3766 }
 0xbd7   :  { %v3772_v16 = vsel %vm813_vm4, %v6512_v5, %v3761_v20  ;;  %v3773_v30 = vsel %vm813_vm4, %v3761_v20, %v3763_v34  ;;  %v3795_v35 = vadd.f32 %v3767_v41, %v3683_v52 }
 0xbd8   :  { %v3791_v46 = vadd.f32 %v3772_v16, %v3679_v49  ;;  %v3792_v17 = vadd.f32 %v3773_v30, %v3680_v54 }
 0xbda   :  { %v3765_v43 = vpop.permute.xlu1 %3764  ;;  %v3845_v10 = vpop.permute.xlu0 %3844 }
 0xbdb   :  { %v3774_v57 = vsel %vm813_vm4, %v3763_v34, %v3765_v43  ;;  %v3775_v36 = vsel %vm813_vm4, %v3765_v43, %v3767_v41 }
 0xbdc   :  { %v3793_v27 = vadd.f32 %v3774_v57, %v3681_v62  ;;  %v3794_v14 = vadd.f32 %v3775_v36, %v3682_v55 }
 0xbde   :  { %v3843_v6 = vpop.permute.xlu1 %3842  ;;  %v3849_v3 = vpop.permute.xlu0 %3848 }
 0xbdf   :  { %v3858_v62 = vsel %vm762_vm11, %v3843_v6, %v3845_v10  ;;  %v3874_v15 = vadd.f32 %v3843_v6, %v3786_v58  ;;  %v3878_v7 = vadd.f32 %v3849_v3, %v3790_v61 }
 0xbe0   :  { %v3875_v23 = vadd.f32 %v3858_v62, %v3787_v38 }
 0xbe2   :  { %v3847_v28 = vpop.permute.xlu1 %3846  ;;  %v3853_v22 = vpop.permute.xlu0 %3852 }
 0xbe3   :  { %v3859_v55 = vsel %vm762_vm11, %v3845_v10, %v3847_v28  ;;  %v3860_v33 = vsel %vm762_vm11, %v3847_v28, %v3849_v3 }
 0xbe4   :  { %v3876_v34 = vadd.f32 %v3859_v55, %v3788_v29  ;;  %v3877_v4 = vadd.f32 %v3860_v33, %v3789_v48 }
 0xbe6   :  { %v3851_v40 = vpop.permute.xlu1 %3850  ;;  %v3857_v18 = vpop.permute.xlu0 %3856 }
 0xbe7   :  { %v3861_v59 = vsel %vm762_vm11, %v3851_v40, %v3853_v22  ;;  %v3879_v20 = vadd.f32 %v3851_v40, %v3791_v46  ;;  %v6636_v57 = vadd.f32 %v3857_v18, %v3795_v35 }
 0xbe8   :  { %v3880_v61 = vadd.f32 %v3861_v59, %v3792_v17 }
 0xbea   :  { %v3855_v5 = vpop.permute.xlu1 %3854  ;;  %v3951_v21 = vpop.permute.xlu0 %3950 }
 0xbeb   :  { %v3862_v30 = vsel %vm762_vm11, %v3853_v22, %v3855_v5  ;;  %v3863_v43 = vsel %vm762_vm11, %v3855_v5, %v3857_v18 }
 0xbec   :  { %v3881_v3 = vadd.f32 %v3862_v30, %v3793_v27  ;;  %v3882_v28 = vadd.f32 %v3863_v43, %v3794_v14 }
 0xbee   :  { %v3949_v31 = vpop.permute.xlu1 %3948  ;;  %v3955_v9 = vpop.permute.xlu0 %3954 }
 0xbef   :  { %v3968_v10 = vsel %vm1139_vm12, %v3949_v31, %v3951_v21  ;;  %v3971_v58 = vsel %vm1139_vm12, %v3955_v9, %v6518_v0  ;;  %v3986_v38 = vadd.f32 %v3949_v31, %v3874_v15 }
 0xbf0   :  { %v3987_v22 = vadd.f32 %v3968_v10, %v3875_v23  ;;  %v3990_v40 = vadd.f32 %v3971_v58, %v3878_v7 }
 0xbf2   :  { %v3953_v47 = vpop.permute.xlu1 %3952  ;;  %v3959_v1 = vpop.permute.xlu0 %3958 }
 0xbf3   :  { %v3969_v29 = vsel %vm1139_vm12, %v3951_v21, %v3953_v47  ;;  %v3970_v48 = vsel %vm1139_vm12, %v3953_v47, %v3955_v9  ;;  %v3991_v17 = vadd.f32 %v3959_v1, %v3879_v20 }
 0xbf4   :  { %v3988_v35 = vadd.f32 %v3969_v29, %v3876_v34  ;;  %v3989_v31 = vadd.f32 %v3970_v48, %v3877_v4 }
 0xbf6   :  { %v3961_v51 = vpop.permute.xlu1 %3960  ;;  %v3963_v26 = vpop.permute.xlu0 %3962 }
 0xbf7   :  { %v3972_v46 = vsel %vm1139_vm12, %v3959_v1, %v3961_v51  ;;  %v3973_v36 = vsel %vm1139_vm12, %v3961_v51, %v3963_v26 }
 0xbf8   :  { %v3992_v9 = vadd.f32 %v3972_v46, %v3880_v61  ;;  %v3993_v47 = vadd.f32 %v3973_v36, %v3881_v3 }
 0xbfa   :  { %v3965_v56 = vpop.permute.xlu1 %3964  ;;  %v4063_v50 = vpop.permute.xlu0 %4062 }
 0xbfb   :  { %v3974_v51 = vsel %vm1139_vm12, %v3963_v26, %v3965_v56  ;;  %v3975_v33 = vsel %vm1139_vm12, %v3965_v56, %v6520_v39 }
 0xbfe   :  { %v4061_v2 = vpop.permute.xlu1 %4060  ;;  %v4067_v53 = vpop.permute.xlu0 %4066 }
 0xbff   :  { %v4080_v6 = vsel %vm1215_vm13, %v4061_v2, %v4063_v50  ;;  %v4098_v18 = vadd.f32 %v4061_v2, %v3986_v38  ;;  %v4083_v1 = vsel %vm1215_vm13, %v4067_v53, %v6530_v13 }
 0xc00   :  { %v4099_v62 = vadd.f32 %v4080_v6, %v3987_v22  ;;  %v4102_v56 = vadd.f32 %v4083_v1, %v3990_v40 }
 0xc02   :  { %v4065_v32 = vpop.permute.xlu1 %4064  ;;  %v6613_v63 = vpop.permute.xlu0 %4070 }
 0xc03   :  { %v4081_v55 = vsel %vm1215_vm13, %v4063_v50, %v4065_v32  ;;  %v4082_v27 = vsel %vm1215_vm13, %v4065_v32, %v4067_v53  ;;  %v4103_v53 = vadd.f32 %v6613_v63, %v3991_v17  ;;  %v3994_v17 = vadd.f32 %v3974_v51, %v3882_v28 }
 0xc04   :  { %v4100_v23 = vadd.f32 %v4081_v55, %v3988_v35  ;;  %v4101_v34 = vadd.f32 %v4082_v27, %v3989_v31 }
 0xc06   :  { %v6615_v52 = vpop.permute.xlu1 %4072  ;;  %v6617_v49 = vpop.permute.xlu0 %4074 }
 0xc07   :  { %v4084_v2 = vsel %vm1215_vm13, %v6613_v63, %v6615_v52  ;;  %v4085_v39 = vsel %vm1215_vm13, %v6615_v52, %v6617_v49 }
 0xc08   :  { %v4104_v20 = vadd.f32 %v4084_v2, %v3992_v9  ;;  %v4105_v61 = vadd.f32 %v4085_v39, %v3993_v47 }
 0xc0a   :  { %v6619_v54 = vpop.permute.xlu1 %4076  ;;  %v4175_v42 = vpop.permute.xlu0 %4174 }
 0xc0b   :  { %v4086_v46 = vsel %vm1215_vm13, %v6617_v49, %v6619_v54 }
 0xc0e   :  { %v4173_v25 = vpop.permute.xlu1 %4172  ;;  %v4179_v19 = vpop.permute.xlu0 %4178 }
 0xc0f   :  { %v4192_v21 = vsel %vm1295_vm14, %v4173_v25, %v4175_v42  ;;  %v4210_v14 = vadd.f32 %v4173_v25, %v4098_v18  ;;  %v4195_v4 = vsel %vm1295_vm14, %v4179_v19, %v6547_v11  ;;  %v3995_v18 = vadd.f32 %v3975_v33, %v6636_v57 }
 0xc10   :  { %v4211_v15 = vadd.f32 %v4192_v21, %v4099_v62  ;;  %v4214_v11 = vadd.f32 %v4195_v4, %v4102_v56 }
 0xc12   :  { %v4177_v45 = vpop.permute.xlu1 %4176  ;;  %v6621_v44 = vpop.permute.xlu0 %4182 }
 0xc13   :  { %v4193_v26 = vsel %vm1295_vm14, %v4175_v42, %v4177_v45  ;;  %v4194_v50 = vsel %vm1295_vm14, %v4177_v45, %v4179_v19  ;;  %v4215_v19 = vadd.f32 %v6621_v44, %v4103_v53 }
 0xc14   :  { %v4212_v45 = vadd.f32 %v4193_v26, %v4100_v23  ;;  %v4213_v30 = vadd.f32 %v4194_v50, %v4101_v34 }
 0xc16   :  { %v6627_v41 = vpop.permute.xlu1 %4184  ;;  %v6629_v16 = vpop.permute.xlu0 %4186 }
 0xc17   :  { %v4196_v36 = vsel %vm1295_vm14, %v6621_v44, %v6627_v41  ;;  %v4197_v6 = vsel %vm1295_vm14, %v6627_v41, %v6629_v16  ;;  %v4106_v41 = vadd.f32 %v4086_v46, %v3994_v17 }
 0xc18   :  { %v4216_v44 = vadd.f32 %v4196_v36, %v4104_v20  ;;  %v4217_v21 = vadd.f32 %v4197_v6, %v4105_v61 }
 0xc1a   :  { %v6643_v5 = vpop.permute.xlu1 %4188  ;;  %v4287_v0 = vpop.permute.xlu0 %4286 }
 0xc1b   :  { %v4198_v9 = vsel %vm1295_vm14, %v6629_v16, %v6643_v5  ;;  %v4199_v57 = vsel %vm1295_vm14, %v6643_v5, %v6549_v24 }
 0xc1c   :  { %v4218_v1 = vadd.f32 %v4198_v9, %v4106_v41 }
 0xc1e   :  { %v4285_v7 = vpop.permute.xlu1 %4284  ;;  %v4291_v59 = vpop.permute.xlu0 %4290 }
 0xc1f   :  { %v4304_v32 = vsel %vm1371_vm15, %v4285_v7, %v4287_v0  ;;  %v4322_v25 = vadd.f32 %v4285_v7, %v4210_v14  ;;  %v4307_v52 = vsel %vm1371_vm15, %v4291_v59, %v6555_v8  ;;  %v4087_v8 = vsel %vm1215_vm13, %v6619_v54, %v6532_v37 }
 0xc20   :  { %v4323_v13 = vadd.f32 %v4304_v32, %v4211_v15  ;;  %v4326_v3 = vadd.f32 %v4307_v52, %v4214_v11  ;;  %v4107_v31 = vadd.f32 %v4087_v8, %v3995_v18 }
 0xc21   :  { %v4344_v42 = vadd.f32 %v6541_v12, %v4322_v25 }
 0xc22   :  { %v4345_v43 = vadd.f32 %v6541_v12, %v4323_v13  ;;  %v4289_v10 = vpop.permute.xlu1 %4288  ;;  %v4295_v58 = vpop.permute.xlu0 %4294  ;;  %v4348_v28 = vadd.f32 %v6541_v12, %v4326_v3  ;;  %v4219_v2 = vadd.f32 %v4199_v57, %v4107_v31 }
 0xc23   :  { %v4305_v38 = vsel %vm1371_vm15, %v4287_v0, %v4289_v10  ;;  %v4306_v63 = vsel %vm1371_vm15, %v4289_v10, %v4291_v59  ;;  %4364 = vrot.lane.b32.xlu1 %v4344_v42, %s4576_s28  ;;  %v4327_v0 = vadd.f32 %v4295_v58, %v4215_v19 }
 0xc24   :  { %v4324_v29 = vadd.f32 %v4305_v38, %v4212_v45  ;;  %v4325_v48 = vadd.f32 %v4306_v63, %v4213_v30  ;;  %4366 = vrot.lane.b32.xlu0 %v4345_v43, %s4576_s28 }
 0xc25   :  { %v4349_v47 = vadd.f32 %v6543_v60, %v4327_v0 }
 0xc26   :  { %v4346_v22 = vadd.f32 %v6541_v12, %v4324_v29  ;;  %v4347_v40 = vadd.f32 %v6541_v12, %v4325_v48  ;;  %v4297_v35 = vpop.permute.xlu1 %4296  ;;  %v4299_v49 = vpop.permute.xlu0 %4298 }
 0xc27   :  { %v4308_v37 = vsel %vm1371_vm15, %v4295_v58, %v4297_v35  ;;  %v4309_v54 = vsel %vm1371_vm15, %v4297_v35, %v4299_v49 }
 0xc28   :  { %4368 = vrot.lane.b32.xlu1 %v4346_v22, %s4576_s28  ;;  %4370 = vrot.lane.b32.xlu0 %v4347_v40, %s4576_s28  ;;  %v4328_v62 = vadd.f32 %v4308_v37, %v4216_v44  ;;  %v4329_v51 = vadd.f32 %v4309_v54, %v4217_v21 }
 0xc2a   :  { %v4301_v55 = vpop.permute.xlu1 %4300  ;;  %v4303_v27 = vpop.permute.xlu0 %4302  ;;  %v4350_v24 = vadd.f32 %v6543_v60, %v4328_v62  ;;  %v4351_v12 = vadd.f32 %v6543_v60, %v4329_v51 }
 0xc2b   :  { %v4310_v14 = vsel %vm1371_vm15, %v4299_v49, %v4301_v55  ;;  %v4311_v33 = vsel %vm1371_vm15, %v4301_v55, %v4303_v27 }
 0xc2c   :  { %4372 = vrot.lane.b32.xlu1 %v4348_v28, %s4576_s28  ;;  %4374 = vrot.lane.b32.xlu0 %v4349_v47, %s4576_s28  ;;  %v4330_v16 = vadd.f32 %v4310_v14, %v4218_v1  ;;  %v4331_v5 = vadd.f32 %v4311_v33, %v4219_v2 }
 0xc2e   :  { %v4352_v15 = vadd.f32 %v6543_v60, %v4330_v16  ;;  %v4353_v7 = vadd.f32 %v6543_v60, %v4331_v5 }
 0xc30   :  { %4376 = vrot.lane.b32.xlu1 %v4350_v24, %s4576_s28  ;;  %4378 = vrot.lane.b32.xlu0 %v4351_v12, %s4576_s28 }
 0xc34   :  { %4380 = vrot.lane.b32.xlu1 %v4352_v15, %s4576_s28  ;;  %4382 = vrot.lane.b32.xlu0 %v4353_v7, %s4576_s28 }
 0xc95   :  { %v4365_v59 = vpop.permute.xlu1 %4364 }
 0xc96   :  { %v4367_v26 = vpop.permute.xlu0 %4366 }
 0xc97   :  { %v4384_v50 = vsel %vm1342_vm9, %v4365_v59, %v4367_v26 }
 0xc98   :  { %4400 = vst [vmem:[%s6765_s20] sm:$0xff] %v4384_v50 }
 0xc9a   :  { %v4369_v32 = vpop.permute.xlu1 %4368  ;;  %v4371_v25 = vpop.permute.xlu0 %4370 }
 0xc9b   :  { %v4385_v23 = vsel %vm1342_vm9, %v4367_v26, %v4369_v32  ;;  %v4386_v34 = vsel %vm1342_vm9, %v4369_v32, %v4371_v25 }
 0xc9c   :  { %4401 = vst [vmem:[%s6765_s20 + $0x8] sm:$0xff] %v4385_v23  ;;  %4402 = vst [vmem:[%s6765_s20 + $0x10] sm:$0xff] %v4386_v34 }
 0xc9e   :  { %v4373_v60 = vpop.permute.xlu1 %4372  ;;  %v4375_v39 = vpop.permute.xlu0 %4374 }
 0xc9f   :  { %v4387_v13 = vsel %vm1342_vm9, %v4371_v25, %v4373_v60 }
 0xca0   :  { %4403 = vst [vmem:[%s6765_s20 + $0x18] sm:$0xff] %v4387_v13 }
 0xca2   :  { %v4377_v56 = vpop.permute.xlu1 %4376  ;;  %v4379_v53 = vpop.permute.xlu0 %4378 }
 0xca3   :  { %v4388_v4 = vsel %vm1342_vm9, %v4375_v39, %v4377_v56  ;;  %v4389_v42 = vsel %vm1342_vm9, %v4377_v56, %v4379_v53 }
 0xca4   :  { %4404 = vst [vmem:[%s6765_s20 + $0x20] sm:$0xff] %v4388_v4  ;;  %4405 = vst [vmem:[%s6765_s20 + $0x28] sm:$0xff] %v4389_v42 }
 0xca6   :  { %v4381_v20 = vpop.permute.xlu1 %4380  ;;  %v4383_v45 = vpop.permute.xlu0 %4382 }
 0xca7   :  { %v4390_v30 = vsel %vm1342_vm9, %v4379_v53, %v4381_v20  ;;  %v4391_v43 = vsel %vm1342_vm9, %v4381_v20, %v4383_v45 }
 0xca8   :  { %4406 = vst [vmem:[%s6765_s20 + $0x30] sm:$0xff] %v4390_v30  ;;  %4407 = vst [vmem:[%s6765_s20 + $0x38] sm:$0xff] %v4391_v43 }

</bundles_post_ra>
